<compile_context>
chip_gen: v7x
topology: tpu7x:2x2x1
jax: 0.10.0
libtpu: 0.0.40
codegen_flags: <defaults>
</compile_context>

<pallas_src>
import functools

import jax
import jax.numpy as jnp
from jax.experimental import pallas as pl
from jax.experimental.pallas import tpu as pltpu

LANE = 128


def _round_up(x, m):
    return ((x + m - 1) // m) * m


# ----------------------------------------------------------------------------
# Trace-time weight preparation
# ----------------------------------------------------------------------------
def _blockdiag3(w):
    """[K, N] -> block-diagonal [3K, 3N]; applies w to all 3 spatial groups in one matmul."""
    z = jnp.zeros_like(w)
    return jnp.concatenate([
        jnp.concatenate([w, z, z], axis=1),
        jnp.concatenate([z, w, z], axis=1),
        jnp.concatenate([z, z, w], axis=1)], axis=0)


def _prep_gvp_packed(p, si):
    """bf16 matmul weights; ws split into (scalar, vector-norm) parts; wh/wv block-diag."""
    ws = p['ws']
    return [_blockdiag3(p['wh']).astype(jnp.bfloat16),
            ws[:si].astype(jnp.bfloat16),
            ws[si:].astype(jnp.bfloat16),
            p['b'].astype(jnp.float32),
            _blockdiag3(p['wv']).astype(jnp.bfloat16)]


# ----------------------------------------------------------------------------
# Shared in-kernel math (packed x|y|z lane layout for vector channels)
# ----------------------------------------------------------------------------
def _gvp_packed(s, vpack, wh3, ws_s, ws_v, b, wv3, act):
    """One GVP.  s [T,Si] f32, vpack [T,3*Vi] f32 (x|y|z lane groups).

    wh3 [3Vi,3H], ws_s [Si,So], ws_v [H,So], wv3 [3H,3Vo] are bf16; b [1,So] f32.
    Returns (s_out [T,So] f32, v_out [T,3*Vo] f32).
    """
    h = wh3.shape[1] // 3
    vh = jnp.dot(vpack.astype(jnp.bfloat16), wh3, preferred_element_type=jnp.float32)
    vn = jnp.sqrt(jnp.maximum(
        vh[:, :h] ** 2 + vh[:, h:2 * h] ** 2 + vh[:, 2 * h:] ** 2, 1e-8))
    s_out = (jnp.dot(s.astype(jnp.bfloat16), ws_s, preferred_element_type=jnp.float32)
             + jnp.dot(vn.astype(jnp.bfloat16), ws_v, preferred_element_type=jnp.float32)
             + b)
    v_out = jnp.dot(vh.astype(jnp.bfloat16), wv3, preferred_element_type=jnp.float32)
    if act:  # activations=(relu, sigmoid), vector_gate=False
        vo = v_out.shape[1] // 3
        von = jnp.sqrt(jnp.maximum(
            v_out[:, :vo] ** 2 + v_out[:, vo:2 * vo] ** 2 + v_out[:, 2 * vo:] ** 2, 1e-8))
        gate = jax.nn.sigmoid(von)
        v_out = v_out * jnp.concatenate([gate, gate, gate], axis=-1)
        s_out = jax.nn.relu(s_out)
    return s_out, v_out


def _layernorm_packed(s, vpack, gamma, beta, nv):
    """GVP LayerNorm: standard LN on scalars, RMS-over-channels norm on packed vectors."""
    mu = jnp.mean(s, axis=-1, keepdims=True)
    var = jnp.mean(jnp.square(s - mu), axis=-1, keepdims=True)
    s = (s - mu) * jax.lax.rsqrt(var + 1e-5) * gamma + beta
    sq = jnp.maximum(
        vpack[:, :nv] ** 2 + vpack[:, nv:2 * nv] ** 2 + vpack[:, 2 * nv:] ** 2, 1e-8)
    inv = jax.lax.rsqrt(jnp.mean(sq, axis=-1, keepdims=True))
    return s, vpack * inv


# ----------------------------------------------------------------------------
# Kernel 1: fused message function (all edge types) + scatter-sum aggregation
# ----------------------------------------------------------------------------
def message_kernel(et_ref, dst_ref, s_ref, v_ref,
                   a_wh, a_wss, a_wsv, a_b, a_wv,
                   b_wh, b_wss, b_wsv, b_b, b_wv,
                   c_wh, c_wss, c_wsv, c_b, c_wv,
                   out_ref):
    del et_ref  # only used by the index_maps (weight selection)

    @pl.when(pl.program_id(0) == 0)
    def _init():
        out_ref[...] = jnp.zeros_like(out_ref)

    s = s_ref[...]                              # [tile_e, si_tot]  f32
    v = v_ref[...]                              # [tile_e, 3*vi_tot] f32 (x|y|z)
    s, v = _gvp_packed(s, v, a_wh[0], a_wss[0], a_wsv[0], a_b[0], a_wv[0], True)
    s, v = _gvp_packed(s, v, b_wh[0], b_wss[0], b_wsv[0], b_b[0], b_wv[0], True)
    s, v = _gvp_packed(s, v, c_wh[0], c_wss[0], c_wsv[0], c_b[0], c_wv[0], False)

    t = s.shape[0]
    pad = out_ref.shape[1] - (s.shape[1] + v.shape[1])
    parts = [s, v]
    if pad:
        parts.append(jnp.zeros((t, pad), jnp.float32))
    # lane-dense (128-wide) message slab: [s | v_x | v_y | v_z | 0...]
    msg = jnp.concatenate(parts, axis=-1).astype(jnp.bfloat16)

    # pre-transposed one-hot scatter: [n_dst, tile_e] @ [tile_e, 128]
    # padded edges carry dst == -1 -> never match the iota -> no contribution
    onehot = (jax.lax.broadcasted_iota(jnp.int32, (out_ref.shape[0], t), 0)
              == dst_ref[...]).astype(jnp.bfloat16)
    out_ref[...] += jnp.dot(onehot, msg, preferred_element_type=jnp.float32)


def message_pass_fused(et_ids, dst_row, s_all, v_all, weights, n_dst_pad, tile_e):
    e_tot, si_tot = s_all.shape
    vi3 = v_all.shape[1]
    n_tiles = e_tot // tile_e

    data_specs = [pl.BlockSpec((1, tile_e), lambda i, et: (0, i)),          # dst (lane-dense)
                  pl.BlockSpec((tile_e, si_tot), lambda i, et: (i, 0)),
                  pl.BlockSpec((tile_e, vi3), lambda i, et: (i, 0))]
    w_specs = [pl.BlockSpec((1,) + w.shape[1:], lambda i, et: (et[i], 0, 0))
               for w in weights]

    grid_spec = pltpu.PrefetchScalarGridSpec(
        num_scalar_prefetch=1,
        grid=(n_tiles,),
        in_specs=data_specs + w_specs,
        out_specs=pl.BlockSpec((n_dst_pad, LANE), lambda i, et: (0, 0)),
    )
    return pl.pallas_call(
        message_kernel,
        grid_spec=grid_spec,
        out_shape=jax.ShapeDtypeStruct((n_dst_pad, LANE), jnp.float32),
        compiler_params=pltpu.CompilerParams(
            dimension_semantics=("arbitrary",),
            vmem_limit_bytes=32 * 1024 * 1024),
    )(et_ids, dst_row, s_all, v_all, *weights)


# ----------------------------------------------------------------------------
# Kernel 2: fused node update (all node types): residual + LN + feed-forward + LN
# ----------------------------------------------------------------------------
def node_kernel(nt_ref, x_ref, dh_ref, ln_ref,
                f1_wh, f1_wss, f1_wsv, f1_b, f1_wv,
                f2_wh, f2_wss, f2_wsv, f2_b, f2_wv,
                out_ref, *, ns, nv):
    del nt_ref  # only used by the index_maps (weight selection)
    ln = ln_ref[0]                               # [4, ns] rows: g0, be0, g1, be1

    x = x_ref[...] + dh_ref[...]                 # residual (dropout0 = identity, eval mode)
    s = x[:, :ns]
    v = x[:, ns:ns + 3 * nv]
    s, v = _layernorm_packed(s, v, ln[0:1], ln[1:2], nv)

    fs, fv = _gvp_packed(s, v, f1_wh[0], f1_wss[0], f1_wsv[0], f1_b[0], f1_wv[0], True)
    fs, fv = _gvp_packed(fs, fv, f2_wh[0], f2_wss[0], f2_wsv[0], f2_b[0], f2_wv[0], False)

    s, v = _layernorm_packed(s + fs, v + fv, ln[2:3], ln[3:4], nv)   # dropout1 = identity

    t = s.shape[0]
    pad = out_ref.shape[1] - (ns + 3 * nv)
    parts = [s, v]
    if pad:
        parts.append(jnp.zeros((t, pad), jnp.float32))
    out_ref[...] = jnp.concatenate(parts, axis=-1)   # single lane-dense 128-wide store


def node_update_fused(nt_ids, x_slab, dh_slab, weights, ns, nv, tile_n):
    n_tot = x_slab.shape[0]
    n_tiles = n_tot // tile_n

    data_specs = [pl.BlockSpec((tile_n, LANE), lambda i, nt: (i, 0)),
                  pl.BlockSpec((tile_n, LANE), lambda i, nt: (i, 0))]
    w_specs = [pl.BlockSpec((1,) + w.shape[1:], lambda i, nt: (nt[i], 0, 0))
               for w in weights]

    grid_spec = pltpu.PrefetchScalarGridSpec(
        num_scalar_prefetch=1,
        grid=(n_tiles,),
        in_specs=data_specs + w_specs,
        out_specs=pl.BlockSpec((tile_n, LANE), lambda i, nt: (i, 0)),
    )
    return pl.pallas_call(
        functools.partial(node_kernel, ns=ns, nv=nv),
        grid_spec=grid_spec,
        out_shape=jax.ShapeDtypeStruct((n_tot, LANE), jnp.float32),
        compiler_params=pltpu.CompilerParams(
            dimension_semantics=("parallel",),
            vmem_limit_bytes=32 * 1024 * 1024),
    )(nt_ids, x_slab, dh_slab, *weights)


# ----------------------------------------------------------------------------
# Full GVPHeteroConvLayer forward (update_edge_attr=False, node_mask=None, eval mode)
# ----------------------------------------------------------------------------
def gvp_hetero_conv_layer(x_dict, edge_index_dict, edge_attr_dict, params):
    node_order = list(x_dict.keys())
    ns = x_dict[node_order[0]][0].shape[1]
    nv = x_dict[node_order[0]][1].shape[2]
    for nt in node_order:
        assert x_dict[nt][0].shape[1] == ns and x_dict[nt][1].shape[2] == nv, \
            "fused kernels require identical (ns, nv) across node types"
    assert ns + 3 * nv <= LANE

    counts = {nt: x_dict[nt][0].shape[0] for nt in node_order}
    tile_n = min(256, _round_up(max(counts.values()), 8))

    # ---- pack node features into lane-dense slabs [N_pad, 128]: [s | v_x | v_y | v_z | 0] ----
    slabs, node_off, nt_ids = [], {}, []
    off = 0
    for idx, nt in enumerate(node_order):
        s, v = x_dict[nt]
        n = counts[nt]
        n_pad = _round_up(n, tile_n)
        vpack = jnp.transpose(v, (1, 0, 2)).reshape(n, 3 * nv)
        slab = jnp.concatenate([s, vpack], axis=-1)
        slab = jnp.pad(slab, ((0, n_pad - n), (0, LANE - slab.shape[1])))
        slabs.append(slab)
        node_off[nt] = off
        off += n_pad
        nt_ids += [idx] * (n_pad // tile_n)
    x_slab = jnp.concatenate(slabs, axis=0)
    n_tot = off
    nt_ids = jnp.array(nt_ids, jnp.int32)

    # ---- fused message pass over all edge types (global padded dst index space) ----
    et_order = list(edge_index_dict.keys())
    emax = max(edge_index_dict[et].shape[1] for et in et_order)
    n_split = -(-emax // 512)
    tile_e = _round_up(-(-emax // n_split), LANE)   # balanced, multiple of 128

    s_parts, v_parts, d_parts, et_ids = [], [], [], []
    si_tot = None
    for idx, et in enumerate(et_order):
        src, _, dst = et
        ei = edge_index_dict[et]
        s_src, v_src = x_dict[src]
        s_dst, v_dst = x_dict[dst]
        es, ev = edge_attr_dict[et]
        e = ei.shape[1]
        # gather + concat glue: message input = tuple_cat((s_j, v_j), edge_attr, (s_i, v_i))
        # TODO(synk): stream this gather in-kernel at production edge counts.
        s_cat = jnp.concatenate([s_src[ei[0]], es, s_dst[ei[1]]], axis=-1)
        v_cat = jnp.concatenate([v_src[:, ei[0]], ev, v_dst[:, ei[1]]], axis=-1)  # [3, e, vi_tot]
        v_pack = jnp.transpose(v_cat, (1, 0, 2)).reshape(e, -1)                   # x|y|z lanes
        if si_tot is None:
            si_tot = s_cat.shape[1]
        assert s_cat.shape[1] == si_tot, "fused kernels require identical edge-type dims"
        e_pad = _round_up(e, tile_e)
        pad = e_pad - e
        s_parts.append(jnp.pad(s_cat, ((0, pad), (0, 0))))
        v_parts.append(jnp.pad(v_pack, ((0, pad), (0, 0))))
        d = node_off[dst] + ei[1].astype(jnp.int32)
        d_parts.append(jnp.concatenate([d, jnp.full((pad,), -1, jnp.int32)]))
        et_ids += [idx] * (e_pad // tile_e)
    s_all = jnp.concatenate(s_parts, axis=0)
    v_all = jnp.concatenate(v_parts, axis=0)
    dst_row = jnp.concatenate(d_parts)[None, :]               # [1, E_tot] lane-dense
    et_ids = jnp.array(et_ids, jnp.int32)

    per_et = []
    for et in et_order:
        p1, p2, p3 = params['conv'][et]
        per_et.append(_prep_gvp_packed(p1, si_tot)
                      + _prep_gvp_packed(p2, ns)
                      + _prep_gvp_packed(p3, ns))
    msg_weights = [jnp.stack([w[k] for w in per_et], axis=0) for k in range(len(per_et[0]))]

    dh_slab = message_pass_fused(et_ids, dst_row, s_all, v_all, msg_weights, n_tot, tile_e)

    # ---- fused node update over all node types (message slab fed in directly) ----
    per_nt = []
    for nt in node_order:
        p = params['node'][nt]
        ln = jnp.concatenate([p['g0'], p['be0'], p['g1'], p['be1']], axis=0)   # [4, ns]
        per_nt.append([ln]
                      + _prep_gvp_packed(p['ff1'], ns)
                      + _prep_gvp_packed(p['ff2'], 4 * ns))
    node_weights = [jnp.stack([w[k] for w in per_nt], axis=0) for k in range(len(per_nt[0]))]

    out_slab = node_update_fused(nt_ids, x_slab, dh_slab, node_weights, ns, nv, tile_n)

    # ---- unpack back to (s [N, ns], v [3, N, nv]) per node type ----
    out = {}
    for nt in node_order:
        n = counts[nt]
        o = node_off[nt]
        s = out_slab[o:o + n, :ns]
        v = jnp.transpose(out_slab[o:o + n, ns:ns + 3 * nv].reshape(n, 3, nv), (1, 0, 2))
        out[nt] = (s, v)
    return out


# ----------------------------------------------------------------------------
# Pure-JAX reference (for correctness check)
# ----------------------------------------------------------------------------
def _gvp_ref(s, v, p, act):
    vh = jnp.einsum('dec,ch->deh', v, p['wh'])
    vn = jnp.sqrt(jnp.maximum(jnp.sum(vh * vh, axis=0), 1e-8))
    so = jnp.concatenate([s, vn], -1) @ p['ws'] + p['b']
    vo = jnp.einsum('deh,ho->deo', vh, p['wv'])
    if act:
        von = jnp.sqrt(jnp.maximum(jnp.sum(vo * vo, axis=0), 1e-8))
        vo = vo * jax.nn.sigmoid(von)[None]
        so = jax.nn.relu(so)
    return so, vo


def _layernorm_ref(s, v, g, b):
    mu = s.mean(-1, keepdims=True)
    var = ((s - mu) ** 2).mean(-1, keepdims=True)
    s = (s - mu) / jnp.sqrt(var + 1e-5) * g + b
    sq = jnp.maximum(jnp.sum(v * v, axis=0), 1e-8)
    denom = jnp.sqrt(sq.mean(-1, keepdims=True))
    return s, v / denom[None]


def layer_ref(x_dict, edge_index_dict, edge_attr_dict, params):
    agg = {}
    for et, ei in edge_index_dict.items():
        src, _, dst = et
        s_src, v_src = x_dict[src]
        s_dst, v_dst = x_dict[dst]
        es, ev = edge_attr_dict[et]
        s_cat = jnp.concatenate([s_src[ei[0]], es, s_dst[ei[1]]], -1)
        v_cat = jnp.concatenate([v_src[:, ei[0]], ev, v_dst[:, ei[1]]], -1)
        p1, p2, p3 = params['conv'][et]
        ms, mv = _gvp_ref(s_cat, v_cat, p1, True)
        ms, mv = _gvp_ref(ms, mv, p2, True)
        ms, mv = _gvp_ref(ms, mv, p3, False)
        n_dst = s_dst.shape[0]
        seg_s = jax.ops.segment_sum(ms, ei[1], num_segments=n_dst)
        seg_v = jax.vmap(lambda vv: jax.ops.segment_sum(vv, ei[1], num_segments=n_dst))(mv)
        if dst in agg:
            agg[dst] = (agg[dst][0] + seg_s, agg[dst][1] + seg_v)
        else:
            agg[dst] = (seg_s, seg_v)
    out = {}
    for k, (xs, xv) in x_dict.items():
        dhs, dhv = agg[k]
        pn = params['node'][k]
        s = xs + dhs
        v = xv + dhv
        s, v = _layernorm_ref(s, v, pn['g0'], pn['be0'])
        fs, fv = _gvp_ref(s, v, pn['ff1'], True)
        fs, fv = _gvp_ref(fs, fv, pn['ff2'], False)
        s = s + fs
        v = v + fv
        s, v = _layernorm_ref(s, v, pn['g1'], pn['be1'])
        out[k] = (s, v)
    return out


# ----------------------------------------------------------------------------
# Deterministic parameter init
# ----------------------------------------------------------------------------
def init_gvp(key, si, vi, so, vo):
    h = max(vi, vo)
    k1, k2, k3, k4 = jax.random.split(key, 4)

    def lin(k, fi, fo):
        lim = 1.0 / (fi ** 0.5)
        return jax.random.uniform(k, (fi, fo), jnp.float32, -lim, lim)

    return dict(wh=lin(k1, vi, h),
                ws=lin(k2, si + h, so),
                b=jax.random.uniform(k3, (1, so), jnp.float32, -0.1, 0.1),
                wv=lin(k4, h, vo))


if __name__ == "__main__":
    key = jax.random.PRNGKey(0)

    ns, nv = 32, 8          # node scalar / vector channels (same for all node types)
    se_dim, ve_dim = 16, 4  # edge scalar / vector channels
    n_nodes = {'a': 16, 'b': 12}
    edge_types = [('a', 'aa', 'a'), ('a', 'ab', 'b'), ('b', 'ba', 'a')]
    n_edges = {('a', 'aa', 'a'): 80, ('a', 'ab', 'b'): 48, ('b', 'ba', 'a'): 33}

    # --- inputs ---
    x_dict = {}
    for nt, n in n_nodes.items():
        key, k1, k2 = jax.random.split(key, 3)
        x_dict[nt] = (jax.random.normal(k1, (n, ns), jnp.float32),
                      0.5 * jax.random.normal(k2, (3, n, nv), jnp.float32))

    edge_index_dict, edge_attr_dict = {}, {}
    for et in edge_types:
        src, _, dst = et
        E = n_edges[et]
        key, k1, k2, k3, k4 = jax.random.split(key, 5)
        ei = jnp.stack([jax.random.randint(k1, (E,), 0, n_nodes[src]),
                        jax.random.randint(k2, (E,), 0, n_nodes[dst])]).astype(jnp.int32)
        edge_index_dict[et] = ei
        edge_attr_dict[et] = (jax.random.normal(k3, (E, se_dim), jnp.float32),
                              0.5 * jax.random.normal(k4, (3, E, ve_dim), jnp.float32))

    # --- parameters (deterministic, synthetic) ---
    params = {'conv': {}, 'node': {}}
    si_tot, vi_tot = ns + se_dim + ns, nv + ve_dim + nv
    for et in edge_types:
        key, k1, k2, k3 = jax.random.split(key, 4)
        params['conv'][et] = (init_gvp(k1, si_tot, vi_tot, ns, nv),   # message GVP 1
                              init_gvp(k2, ns, nv, ns, nv),           # message GVP 2
                              init_gvp(k3, ns, nv, ns, nv))           # message GVP 3
    for nt in n_nodes:
        key, k1, k2 = jax.random.split(key, 3)
        params['node'][nt] = dict(
            g0=jnp.ones((1, ns), jnp.float32), be0=jnp.zeros((1, ns), jnp.float32),
            ff1=init_gvp(k1, ns, nv, 4 * ns, 2 * nv),
            ff2=init_gvp(k2, 4 * ns, 2 * nv, ns, nv),
            g1=jnp.ones((1, ns), jnp.float32), be1=jnp.zeros((1, ns), jnp.float32))

    # --- run Pallas kernels (2 launches per layer) ---
    out = gvp_hetero_conv_layer(x_dict, edge_index_dict, edge_attr_dict, params)
    jax.block_until_ready(out)

    # --- check against pure-JAX (f32) reference ---
    ref = layer_ref(x_dict, edge_index_dict, edge_attr_dict, params)
    for k in out:
        for got, want in zip(out[k], ref[k]):
            assert got.shape == want.shape, (k, got.shape, want.shape)
            assert jnp.allclose(got, want, atol=3e-2, rtol=3e-2), f"mismatch for node type {k}"

    print("KERNEL_OK")
</pallas_src>

<mosaic_0001>
module attributes {stable_mosaic.version = 11 : i64} {
  func.func @message_kernel(%arg0: i32, %arg1: memref<3xi32, #tpu.memory_space<smem>>, %arg2: memref<1x128xi32, #tpu.memory_space<vmem>>, %arg3: memref<128x80xf32, #tpu.memory_space<vmem>>, %arg4: memref<128x60xf32, #tpu.memory_space<vmem>>, %arg5: memref<1x60x60xbf16, #tpu.memory_space<vmem>>, %arg6: memref<1x80x32xbf16, #tpu.memory_space<vmem>>, %arg7: memref<1x20x32xbf16, #tpu.memory_space<vmem>>, %arg8: memref<1x1x32xf32, #tpu.memory_space<vmem>>, %arg9: memref<1x60x24xbf16, #tpu.memory_space<vmem>>, %arg10: memref<1x24x24xbf16, #tpu.memory_space<vmem>>, %arg11: memref<1x32x32xbf16, #tpu.memory_space<vmem>>, %arg12: memref<1x8x32xbf16, #tpu.memory_space<vmem>>, %arg13: memref<1x1x32xf32, #tpu.memory_space<vmem>>, %arg14: memref<1x24x24xbf16, #tpu.memory_space<vmem>>, %arg15: memref<1x24x24xbf16, #tpu.memory_space<vmem>>, %arg16: memref<1x32x32xbf16, #tpu.memory_space<vmem>>, %arg17: memref<1x8x32xbf16, #tpu.memory_space<vmem>>, %arg18: memref<1x1x32xf32, #tpu.memory_space<vmem>>, %arg19: memref<1x24x24xbf16, #tpu.memory_space<vmem>>, %arg20: memref<32x128xf32, #tpu.memory_space<vmem>>) attributes {dimension_semantics = [#tpu.dimension_semantics<arbitrary>], iteration_bounds = array<i64: 3>, scalar_prefetch = 1 : i64, scratch_operands = 0 : i64, tpu.core_type = #tpu.core_type<tc>, window_params = [{transform_indices = @transform_0, window_bounds = array<i64: 1, 128>}, {transform_indices = @transform_1, window_bounds = array<i64: 128, 80>}, {transform_indices = @transform_2, window_bounds = array<i64: 128, 60>}, {transform_indices = @transform_3, window_bounds = array<i64: 1, 60, 60>}, {transform_indices = @transform_4, window_bounds = array<i64: 1, 80, 32>}, {transform_indices = @transform_5, window_bounds = array<i64: 1, 20, 32>}, {transform_indices = @transform_6, window_bounds = array<i64: 1, 1, 32>}, {transform_indices = @transform_7, window_bounds = array<i64: 1, 60, 24>}, {transform_indices = @transform_8, window_bounds = array<i64: 1, 24, 24>}, {transform_indices = @transform_9, window_bounds = array<i64: 1, 32, 32>}, {transform_indices = @transform_10, window_bounds = array<i64: 1, 8, 32>}, {transform_indices = @transform_11, window_bounds = array<i64: 1, 1, 32>}, {transform_indices = @transform_12, window_bounds = array<i64: 1, 24, 24>}, {transform_indices = @transform_13, window_bounds = array<i64: 1, 24, 24>}, {transform_indices = @transform_14, window_bounds = array<i64: 1, 32, 32>}, {transform_indices = @transform_15, window_bounds = array<i64: 1, 8, 32>}, {transform_indices = @transform_16, window_bounds = array<i64: 1, 1, 32>}, {transform_indices = @transform_17, window_bounds = array<i64: 1, 24, 24>}, {pipeline_mode = #tpu.pipeline_mode<synchronous>, transform_indices = @transform_18, window_bounds = array<i64: 32, 128>}]} {
    %c0_i32 = arith.constant 0 : i32
    %0 = arith.cmpi eq, %arg0, %c0_i32 : i32
    %1 = arith.extui %0 : i1 to i32
    %c0_i32_0 = arith.constant 0 : i32
    %2 = arith.cmpi ne, %1, %c0_i32_0 : i32
    scf.if %2 {
      %cst_77 = arith.constant 0.000000e+00 : f32
      %155 = vector.broadcast %cst_77 : f32 to vector<32x128xf32>
      %c0_78 = arith.constant 0 : index
      %c0_79 = arith.constant 0 : index
      %156 = vector.load %arg20[%c0_78, %c0_79] : memref<32x128xf32, #tpu.memory_space<vmem>>, vector<32x128xf32>
      tpu.vector_store %arg20[%c0_78, %c0_79], %155 {strides = array<i32>} : memref<32x128xf32, #tpu.memory_space<vmem>>, vector<32x128xf32>,
    } else {
    }
    %c0 = arith.constant 0 : index
    %c0_1 = arith.constant 0 : index
    %3 = vector.load %arg3[%c0, %c0_1] : memref<128x80xf32, #tpu.memory_space<vmem>>, vector<128x80xf32>
    %c0_2 = arith.constant 0 : index
    %c0_3 = arith.constant 0 : index
    %4 = vector.load %arg4[%c0_2, %c0_3] : memref<128x60xf32, #tpu.memory_space<vmem>>, vector<128x60xf32>
    %c0_4 = arith.constant 0 : index
    %c0_5 = arith.constant 0 : index
    %c0_6 = arith.constant 0 : index
    %5 = vector.load %arg5[%c0_4, %c0_5, %c0_6] : memref<1x60x60xbf16, #tpu.memory_space<vmem>>, vector<1x60x60xbf16>
    %6 = vector.shape_cast %5 : vector<1x60x60xbf16> to vector<60x60xbf16>
    %c0_7 = arith.constant 0 : index
    %c0_8 = arith.constant 0 : index
    %c0_9 = arith.constant 0 : index
    %7 = vector.load %arg6[%c0_7, %c0_8, %c0_9] : memref<1x80x32xbf16, #tpu.memory_space<vmem>>, vector<1x80x32xbf16>
    %8 = vector.shape_cast %7 : vector<1x80x32xbf16> to vector<80x32xbf16>
    %c0_10 = arith.constant 0 : index
    %c0_11 = arith.constant 0 : index
    %c0_12 = arith.constant 0 : index
    %9 = vector.load %arg7[%c0_10, %c0_11, %c0_12] : memref<1x20x32xbf16, #tpu.memory_space<vmem>>, vector<1x20x32xbf16>
    %10 = vector.shape_cast %9 : vector<1x20x32xbf16> to vector<20x32xbf16>
    %c0_13 = arith.constant 0 : index
    %c0_14 = arith.constant 0 : index
    %c0_15 = arith.constant 0 : index
    %11 = vector.load %arg8[%c0_13, %c0_14, %c0_15] : memref<1x1x32xf32, #tpu.memory_space<vmem>>, vector<1x1x32xf32>
    %12 = vector.shape_cast %11 : vector<1x1x32xf32> to vector<1x32xf32>
    %c0_16 = arith.constant 0 : index
    %c0_17 = arith.constant 0 : index
    %c0_18 = arith.constant 0 : index
    %13 = vector.load %arg9[%c0_16, %c0_17, %c0_18] : memref<1x60x24xbf16, #tpu.memory_space<vmem>>, vector<1x60x24xbf16>
    %14 = vector.shape_cast %13 : vector<1x60x24xbf16> to vector<60x24xbf16>
    %15 = arith.truncf %4 : vector<128x60xf32> to vector<128x60xbf16>
    %cst = arith.constant dense<0.000000e+00> : vector<128x60xf32>
    %16 = tpu.matmul %15, %6, %cst {dimension_numbers = #tpu.dot_dimension_numbers<[1], [0], [0], [1], [0, 0, 1, 1], [], []>} : vector<128x60xbf16>, vector<60x60xbf16>, vector<128x60xf32> -> vector<128x60xf32>
    %17 = vector.extract_strided_slice %16 {offsets = [0, 0], sizes = [128, 20], strides = [1, 1]} : vector<128x60xf32> to vector<128x20xf32>
    %18 = arith.mulf %17, %17 : vector<128x20xf32>
    %19 = vector.extract_strided_slice %16 {offsets = [0, 20], sizes = [128, 20], strides = [1, 1]} : vector<128x60xf32> to vector<128x20xf32>
    %20 = arith.mulf %19, %19 : vector<128x20xf32>
    %21 = arith.addf %18, %20 : vector<128x20xf32>
    %22 = vector.extract_strided_slice %16 {offsets = [0, 40], sizes = [128, 20], strides = [1, 1]} : vector<128x60xf32> to vector<128x20xf32>
    %23 = arith.mulf %22, %22 : vector<128x20xf32>
    %24 = arith.addf %21, %23 : vector<128x20xf32>
    %cst_19 = arith.constant 9.99999993E-9 : f32
    %25 = vector.broadcast %cst_19 : f32 to vector<128x20xf32>
    %26 = arith.maximumf %24, %25 : vector<128x20xf32>
    %27 = math.sqrt %26 : vector<128x20xf32>
    %28 = arith.truncf %3 : vector<128x80xf32> to vector<128x80xbf16>
    %cst_20 = arith.constant dense<0.000000e+00> : vector<128x32xf32>
    %29 = tpu.matmul %28, %8, %cst_20 {dimension_numbers = #tpu.dot_dimension_numbers<[1], [0], [0], [1], [0, 0, 1, 1], [], []>} : vector<128x80xbf16>, vector<80x32xbf16>, vector<128x32xf32> -> vector<128x32xf32>
    %30 = arith.truncf %27 : vector<128x20xf32> to vector<128x20xbf16>
    %cst_21 = arith.constant dense<0.000000e+00> : vector<128x32xf32>
    %31 = tpu.matmul %30, %10, %cst_21 {dimension_numbers = #tpu.dot_dimension_numbers<[1], [0], [0], [1], [0, 0, 1, 1], [], []>} : vector<128x20xbf16>, vector<20x32xbf16>, vector<128x32xf32> -> vector<128x32xf32>
    %32 = arith.addf %29, %31 : vector<128x32xf32>
    %33 = vector.broadcast %12 : vector<1x32xf32> to vector<128x32xf32>
    %34 = arith.addf %32, %33 : vector<128x32xf32>
    %35 = arith.truncf %16 : vector<128x60xf32> to vector<128x60xbf16>
    %cst_22 = arith.constant dense<0.000000e+00> : vector<128x24xf32>
    %36 = tpu.matmul %35, %14, %cst_22 {dimension_numbers = #tpu.dot_dimension_numbers<[1], [0], [0], [1], [0, 0, 1, 1], [], []>} : vector<128x60xbf16>, vector<60x24xbf16>, vector<128x24xf32> -> vector<128x24xf32>
    %37 = vector.extract_strided_slice %36 {offsets = [0, 0], sizes = [128, 8], strides = [1, 1]} : vector<128x24xf32> to vector<128x8xf32>
    %38 = arith.mulf %37, %37 : vector<128x8xf32>
    %39 = vector.extract_strided_slice %36 {offsets = [0, 8], sizes = [128, 8], strides = [1, 1]} : vector<128x24xf32> to vector<128x8xf32>
    %40 = arith.mulf %39, %39 : vector<128x8xf32>
    %41 = arith.addf %38, %40 : vector<128x8xf32>
    %42 = vector.extract_strided_slice %36 {offsets = [0, 16], sizes = [128, 8], strides = [1, 1]} : vector<128x24xf32> to vector<128x8xf32>
    %43 = arith.mulf %42, %42 : vector<128x8xf32>
    %44 = arith.addf %41, %43 : vector<128x8xf32>
    %cst_23 = arith.constant 9.99999993E-9 : f32
    %45 = vector.broadcast %cst_23 : f32 to vector<128x8xf32>
    %46 = arith.maximumf %44, %45 : vector<128x8xf32>
    %47 = math.sqrt %46 : vector<128x8xf32>
    %48 = arith.negf %47 : vector<128x8xf32>
    %49 = math.exp %48 : vector<128x8xf32>
    %cst_24 = arith.constant 1.000000e+00 : f32
    %50 = vector.broadcast %cst_24 : f32 to vector<128x8xf32>
    %51 = arith.addf %50, %49 : vector<128x8xf32>
    %52 = arith.divf %50, %51 : vector<128x8xf32>
    %53 = tpu.concatenate %52, %52, %52 in 1 : vector<128x8xf32>, vector<128x8xf32>, vector<128x8xf32> -> vector<128x24xf32>
    %54 = arith.mulf %36, %53 : vector<128x24xf32>
    %cst_25 = arith.constant 0.000000e+00 : f32
    %55 = vector.broadcast %cst_25 : f32 to vector<128x32xf32>
    %56 = arith.maximumf %34, %55 : vector<128x32xf32>
    %c0_26 = arith.constant 0 : index
    %c0_27 = arith.constant 0 : index
    %c0_28 = arith.constant 0 : index
    %57 = vector.load %arg10[%c0_26, %c0_27, %c0_28] : memref<1x24x24xbf16, #tpu.memory_space<vmem>>, vector<1x24x24xbf16>
    %58 = vector.shape_cast %57 : vector<1x24x24xbf16> to vector<24x24xbf16>
    %c0_29 = arith.constant 0 : index
    %c0_30 = arith.constant 0 : index
    %c0_31 = arith.constant 0 : index
    %59 = vector.load %arg11[%c0_29, %c0_30, %c0_31] : memref<1x32x32xbf16, #tpu.memory_space<vmem>>, vector<1x32x32xbf16>
    %60 = vector.shape_cast %59 : vector<1x32x32xbf16> to vector<32x32xbf16>
    %c0_32 = arith.constant 0 : index
    %c0_33 = arith.constant 0 : index
    %c0_34 = arith.constant 0 : index
    %61 = vector.load %arg12[%c0_32, %c0_33, %c0_34] : memref<1x8x32xbf16, #tpu.memory_space<vmem>>, vector<1x8x32xbf16>
    %62 = vector.shape_cast %61 : vector<1x8x32xbf16> to vector<8x32xbf16>
    %c0_35 = arith.constant 0 : index
    %c0_36 = arith.constant 0 : index
    %c0_37 = arith.constant 0 : index
    %63 = vector.load %arg13[%c0_35, %c0_36, %c0_37] : memref<1x1x32xf32, #tpu.memory_space<vmem>>, vector<1x1x32xf32>
    %64 = vector.shape_cast %63 : vector<1x1x32xf32> to vector<1x32xf32>
    %c0_38 = arith.constant 0 : index
    %c0_39 = arith.constant 0 : index
    %c0_40 = arith.constant 0 : index
    %65 = vector.load %arg14[%c0_38, %c0_39, %c0_40] : memref<1x24x24xbf16, #tpu.memory_space<vmem>>, vector<1x24x24xbf16>
    %66 = vector.shape_cast %65 : vector<1x24x24xbf16> to vector<24x24xbf16>
    %67 = arith.truncf %54 : vector<128x24xf32> to vector<128x24xbf16>
    %cst_41 = arith.constant dense<0.000000e+00> : vector<128x24xf32>
    %68 = tpu.matmul %67, %58, %cst_41 {dimension_numbers = #tpu.dot_dimension_numbers<[1], [0], [0], [1], [0, 0, 1, 1], [], []>} : vector<128x24xbf16>, vector<24x24xbf16>, vector<128x24xf32> -> vector<128x24xf32>
    %69 = vector.extract_strided_slice %68 {offsets = [0, 0], sizes = [128, 8], strides = [1, 1]} : vector<128x24xf32> to vector<128x8xf32>
    %70 = arith.mulf %69, %69 : vector<128x8xf32>
    %71 = vector.extract_strided_slice %68 {offsets = [0, 8], sizes = [128, 8], strides = [1, 1]} : vector<128x24xf32> to vector<128x8xf32>
    %72 = arith.mulf %71, %71 : vector<128x8xf32>
    %73 = arith.addf %70, %72 : vector<128x8xf32>
    %74 = vector.extract_strided_slice %68 {offsets = [0, 16], sizes = [128, 8], strides = [1, 1]} : vector<128x24xf32> to vector<128x8xf32>
    %75 = arith.mulf %74, %74 : vector<128x8xf32>
    %76 = arith.addf %73, %75 : vector<128x8xf32>
    %cst_42 = arith.constant 9.99999993E-9 : f32
    %77 = vector.broadcast %cst_42 : f32 to vector<128x8xf32>
    %78 = arith.maximumf %76, %77 : vector<128x8xf32>
    %79 = math.sqrt %78 : vector<128x8xf32>
    %80 = arith.truncf %56 : vector<128x32xf32> to vector<128x32xbf16>
    %cst_43 = arith.constant dense<0.000000e+00> : vector<128x32xf32>
    %81 = tpu.matmul %80, %60, %cst_43 {dimension_numbers = #tpu.dot_dimension_numbers<[1], [0], [0], [1], [0, 0, 1, 1], [], []>} : vector<128x32xbf16>, vector<32x32xbf16>, vector<128x32xf32> -> vector<128x32xf32>
    %82 = arith.truncf %79 : vector<128x8xf32> to vector<128x8xbf16>
    %cst_44 = arith.constant dense<0.000000e+00> : vector<128x32xf32>
    %83 = tpu.matmul %82, %62, %cst_44 {dimension_numbers = #tpu.dot_dimension_numbers<[1], [0], [0], [1], [0, 0, 1, 1], [], []>} : vector<128x8xbf16>, vector<8x32xbf16>, vector<128x32xf32> -> vector<128x32xf32>
    %84 = arith.addf %81, %83 : vector<128x32xf32>
    %85 = vector.broadcast %64 : vector<1x32xf32> to vector<128x32xf32>
    %86 = arith.addf %84, %85 : vector<128x32xf32>
    %87 = arith.truncf %68 : vector<128x24xf32> to vector<128x24xbf16>
    %cst_45 = arith.constant dense<0.000000e+00> : vector<128x24xf32>
    %88 = tpu.matmul %87, %66, %cst_45 {dimension_numbers = #tpu.dot_dimension_numbers<[1], [0], [0], [1], [0, 0, 1, 1], [], []>} : vector<128x24xbf16>, vector<24x24xbf16>, vector<128x24xf32> -> vector<128x24xf32>
    %89 = vector.extract_strided_slice %88 {offsets = [0, 0], sizes = [128, 8], strides = [1, 1]} : vector<128x24xf32> to vector<128x8xf32>
    %90 = arith.mulf %89, %89 : vector<128x8xf32>
    %91 = vector.extract_strided_slice %88 {offsets = [0, 8], sizes = [128, 8], strides = [1, 1]} : vector<128x24xf32> to vector<128x8xf32>
    %92 = arith.mulf %91, %91 : vector<128x8xf32>
    %93 = arith.addf %90, %92 : vector<128x8xf32>
    %94 = vector.extract_strided_slice %88 {offsets = [0, 16], sizes = [128, 8], strides = [1, 1]} : vector<128x24xf32> to vector<128x8xf32>
    %95 = arith.mulf %94, %94 : vector<128x8xf32>
    %96 = arith.addf %93, %95 : vector<128x8xf32>
    %cst_46 = arith.constant 9.99999993E-9 : f32
    %97 = vector.broadcast %cst_46 : f32 to vector<128x8xf32>
    %98 = arith.maximumf %96, %97 : vector<128x8xf32>
    %99 = math.sqrt %98 : vector<128x8xf32>
    %100 = arith.negf %99 : vector<128x8xf32>
    %101 = math.exp %100 : vector<128x8xf32>
    %cst_47 = arith.constant 1.000000e+00 : f32
    %102 = vector.broadcast %cst_47 : f32 to vector<128x8xf32>
    %103 = arith.addf %102, %101 : vector<128x8xf32>
    %104 = arith.divf %102, %103 : vector<128x8xf32>
    %105 = tpu.concatenate %104, %104, %104 in 1 : vector<128x8xf32>, vector<128x8xf32>, vector<128x8xf32> -> vector<128x24xf32>
    %106 = arith.mulf %88, %105 : vector<128x24xf32>
    %cst_48 = arith.constant 0.000000e+00 : f32
    %107 = vector.broadcast %cst_48 : f32 to vector<128x32xf32>
    %108 = arith.maximumf %86, %107 : vector<128x32xf32>
    %c0_49 = arith.constant 0 : index
    %c0_50 = arith.constant 0 : index
    %c0_51 = arith.constant 0 : index
    %109 = vector.load %arg15[%c0_49, %c0_50, %c0_51] : memref<1x24x24xbf16, #tpu.memory_space<vmem>>, vector<1x24x24xbf16>
    %110 = vector.shape_cast %109 : vector<1x24x24xbf16> to vector<24x24xbf16>
    %c0_52 = arith.constant 0 : index
    %c0_53 = arith.constant 0 : index
    %c0_54 = arith.constant 0 : index
    %111 = vector.load %arg16[%c0_52, %c0_53, %c0_54] : memref<1x32x32xbf16, #tpu.memory_space<vmem>>, vector<1x32x32xbf16>
    %112 = vector.shape_cast %111 : vector<1x32x32xbf16> to vector<32x32xbf16>
    %c0_55 = arith.constant 0 : index
    %c0_56 = arith.constant 0 : index
    %c0_57 = arith.constant 0 : index
    %113 = vector.load %arg17[%c0_55, %c0_56, %c0_57] : memref<1x8x32xbf16, #tpu.memory_space<vmem>>, vector<1x8x32xbf16>
    %114 = vector.shape_cast %113 : vector<1x8x32xbf16> to vector<8x32xbf16>
    %c0_58 = arith.constant 0 : index
    %c0_59 = arith.constant 0 : index
    %c0_60 = arith.constant 0 : index
    %115 = vector.load %arg18[%c0_58, %c0_59, %c0_60] : memref<1x1x32xf32, #tpu.memory_space<vmem>>, vector<1x1x32xf32>
    %116 = vector.shape_cast %115 : vector<1x1x32xf32> to vector<1x32xf32>
    %c0_61 = arith.constant 0 : index
    %c0_62 = arith.constant 0 : index
    %c0_63 = arith.constant 0 : index
    %117 = vector.load %arg19[%c0_61, %c0_62, %c0_63] : memref<1x24x24xbf16, #tpu.memory_space<vmem>>, vector<1x24x24xbf16>
    %118 = vector.shape_cast %117 : vector<1x24x24xbf16> to vector<24x24xbf16>
    %119 = arith.truncf %106 : vector<128x24xf32> to vector<128x24xbf16>
    %cst_64 = arith.constant dense<0.000000e+00> : vector<128x24xf32>
    %120 = tpu.matmul %119, %110, %cst_64 {dimension_numbers = #tpu.dot_dimension_numbers<[1], [0], [0], [1], [0, 0, 1, 1], [], []>} : vector<128x24xbf16>, vector<24x24xbf16>, vector<128x24xf32> -> vector<128x24xf32>
    %121 = vector.extract_strided_slice %120 {offsets = [0, 0], sizes = [128, 8], strides = [1, 1]} : vector<128x24xf32> to vector<128x8xf32>
    %122 = arith.mulf %121, %121 : vector<128x8xf32>
    %123 = vector.extract_strided_slice %120 {offsets = [0, 8], sizes = [128, 8], strides = [1, 1]} : vector<128x24xf32> to vector<128x8xf32>
    %124 = arith.mulf %123, %123 : vector<128x8xf32>
    %125 = arith.addf %122, %124 : vector<128x8xf32>
    %126 = vector.extract_strided_slice %120 {offsets = [0, 16], sizes = [128, 8], strides = [1, 1]} : vector<128x24xf32> to vector<128x8xf32>
    %127 = arith.mulf %126, %126 : vector<128x8xf32>
    %128 = arith.addf %125, %127 : vector<128x8xf32>
    %cst_65 = arith.constant 9.99999993E-9 : f32
    %129 = vector.broadcast %cst_65 : f32 to vector<128x8xf32>
    %130 = arith.maximumf %128, %129 : vector<128x8xf32>
    %131 = math.sqrt %130 : vector<128x8xf32>
    %132 = arith.truncf %108 : vector<128x32xf32> to vector<128x32xbf16>
    %cst_66 = arith.constant dense<0.000000e+00> : vector<128x32xf32>
    %133 = tpu.matmul %132, %112, %cst_66 {dimension_numbers = #tpu.dot_dimension_numbers<[1], [0], [0], [1], [0, 0, 1, 1], [], []>} : vector<128x32xbf16>, vector<32x32xbf16>, vector<128x32xf32> -> vector<128x32xf32>
    %134 = arith.truncf %131 : vector<128x8xf32> to vector<128x8xbf16>
    %cst_67 = arith.constant dense<0.000000e+00> : vector<128x32xf32>
    %135 = tpu.matmul %134, %114, %cst_67 {dimension_numbers = #tpu.dot_dimension_numbers<[1], [0], [0], [1], [0, 0, 1, 1], [], []>} : vector<128x8xbf16>, vector<8x32xbf16>, vector<128x32xf32> -> vector<128x32xf32>
    %136 = arith.addf %133, %135 : vector<128x32xf32>
    %137 = vector.broadcast %116 : vector<1x32xf32> to vector<128x32xf32>
    %138 = arith.addf %136, %137 : vector<128x32xf32>
    %139 = arith.truncf %120 : vector<128x24xf32> to vector<128x24xbf16>
    %cst_68 = arith.constant dense<0.000000e+00> : vector<128x24xf32>
    %140 = tpu.matmul %139, %118, %cst_68 {dimension_numbers = #tpu.dot_dimension_numbers<[1], [0], [0], [1], [0, 0, 1, 1], [], []>} : vector<128x24xbf16>, vector<24x24xbf16>, vector<128x24xf32> -> vector<128x24xf32>
    %cst_69 = arith.constant 0.000000e+00 : f32
    %141 = vector.broadcast %cst_69 : f32 to vector<128x72xf32>
    %142 = tpu.concatenate %138, %140, %141 in 1 : vector<128x32xf32>, vector<128x24xf32>, vector<128x72xf32> -> vector<128x128xf32>
    %143 = arith.truncf %142 : vector<128x128xf32> to vector<128x128xbf16>
    %144 = tpu.iota {dimensions = array<i32: 0>} : vector<32x128xi32>
    %c0_70 = arith.constant 0 : index
    %c0_71 = arith.constant 0 : index
    %145 = vector.load %arg2[%c0_70, %c0_71] : memref<1x128xi32, #tpu.memory_space<vmem>>, vector<1x128xi32>
    %146 = vector.broadcast %145 : vector<1x128xi32> to vector<32x128xi32>
    %147 = arith.cmpi eq, %144, %146 : vector<32x128xi32>
    %148 = arith.extui %147 : vector<32x128xi1> to vector<32x128xi32>
    %149 = arith.sitofp %148 : vector<32x128xi32> to vector<32x128xf32>
    %150 = arith.truncf %149 : vector<32x128xf32> to vector<32x128xbf16>
    %c0_72 = arith.constant 0 : index
    %c0_73 = arith.constant 0 : index
    %151 = vector.load %arg20[%c0_72, %c0_73] : memref<32x128xf32, #tpu.memory_space<vmem>>, vector<32x128xf32>
    %cst_74 = arith.constant dense<0.000000e+00> : vector<32x128xf32>
    %152 = tpu.matmul %150, %143, %cst_74 {dimension_numbers = #tpu.dot_dimension_numbers<[1], [0], [0], [1], [0, 0, 1, 1], [], []>} : vector<32x128xbf16>, vector<128x128xbf16>, vector<32x128xf32> -> vector<32x128xf32>
    %153 = arith.addf %151, %152 : vector<32x128xf32>
    %c0_75 = arith.constant 0 : index
    %c0_76 = arith.constant 0 : index
    %154 = vector.load %arg20[%c0_75, %c0_76] : memref<32x128xf32, #tpu.memory_space<vmem>>, vector<32x128xf32>
    tpu.vector_store %arg20[%c0_75, %c0_76], %153 {strides = array<i32>} : memref<32x128xf32, #tpu.memory_space<vmem>>, vector<32x128xf32>,
    return
  }
  func.func @transform_0(%arg0: i32, %arg1: memref<3xi32, #tpu.memory_space<smem>>) -> (i32, i32) {
    %c0_i32 = arith.constant 0 : i32
    %c0_i32_0 = arith.constant 0 : i32
    return %c0_i32, %arg0 : i32, i32
  }
  func.func @transform_1(%arg0: i32, %arg1: memref<3xi32, #tpu.memory_space<smem>>) -> (i32, i32) {
    %c0_i32 = arith.constant 0 : i32
    %c0_i32_0 = arith.constant 0 : i32
    return %arg0, %c0_i32 : i32, i32
  }
  func.func @transform_2(%arg0: i32, %arg1: memref<3xi32, #tpu.memory_space<smem>>) -> (i32, i32) {
    %c0_i32 = arith.constant 0 : i32
    %c0_i32_0 = arith.constant 0 : i32
    return %arg0, %c0_i32 : i32, i32
  }
  func.func @transform_3(%arg0: i32, %arg1: memref<3xi32, #tpu.memory_space<smem>>) -> (i32, i32, i32) {
    %0 = arith.index_cast %arg0 : i32 to index
    %1 = memref.load %arg1[%0] : memref<3xi32, #tpu.memory_space<smem>>
    %c0_i32 = arith.constant 0 : i32
    %c0_i32_0 = arith.constant 0 : i32
    %c0_i32_1 = arith.constant 0 : i32
    return %1, %c0_i32, %c0_i32_0 : i32, i32, i32
  }
  func.func @transform_4(%arg0: i32, %arg1: memref<3xi32, #tpu.memory_space<smem>>) -> (i32, i32, i32) {
    %0 = arith.index_cast %arg0 : i32 to index
    %1 = memref.load %arg1[%0] : memref<3xi32, #tpu.memory_space<smem>>
    %c0_i32 = arith.constant 0 : i32
    %c0_i32_0 = arith.constant 0 : i32
    %c0_i32_1 = arith.constant 0 : i32
    return %1, %c0_i32, %c0_i32_0 : i32, i32, i32
  }
  func.func @transform_5(%arg0: i32, %arg1: memref<3xi32, #tpu.memory_space<smem>>) -> (i32, i32, i32) {
    %0 = arith.index_cast %arg0 : i32 to index
    %1 = memref.load %arg1[%0] : memref<3xi32, #tpu.memory_space<smem>>
    %c0_i32 = arith.constant 0 : i32
    %c0_i32_0 = arith.constant 0 : i32
    %c0_i32_1 = arith.constant 0 : i32
    return %1, %c0_i32, %c0_i32_0 : i32, i32, i32
  }
  func.func @transform_6(%arg0: i32, %arg1: memref<3xi32, #tpu.memory_space<smem>>) -> (i32, i32, i32) {
    %0 = arith.index_cast %arg0 : i32 to index
    %1 = memref.load %arg1[%0] : memref<3xi32, #tpu.memory_space<smem>>
    %c0_i32 = arith.constant 0 : i32
    %c0_i32_0 = arith.constant 0 : i32
    %c0_i32_1 = arith.constant 0 : i32
    return %1, %c0_i32, %c0_i32_0 : i32, i32, i32
  }
  func.func @transform_7(%arg0: i32, %arg1: memref<3xi32, #tpu.memory_space<smem>>) -> (i32, i32, i32) {
    %0 = arith.index_cast %arg0 : i32 to index
    %1 = memref.load %arg1[%0] : memref<3xi32, #tpu.memory_space<smem>>
    %c0_i32 = arith.constant 0 : i32
    %c0_i32_0 = arith.constant 0 : i32
    %c0_i32_1 = arith.constant 0 : i32
    return %1, %c0_i32, %c0_i32_0 : i32, i32, i32
  }
  func.func @transform_8(%arg0: i32, %arg1: memref<3xi32, #tpu.memory_space<smem>>) -> (i32, i32, i32) {
    %0 = arith.index_cast %arg0 : i32 to index
    %1 = memref.load %arg1[%0] : memref<3xi32, #tpu.memory_space<smem>>
    %c0_i32 = arith.constant 0 : i32
    %c0_i32_0 = arith.constant 0 : i32
    %c0_i32_1 = arith.constant 0 : i32
    return %1, %c0_i32, %c0_i32_0 : i32, i32, i32
  }
  func.func @transform_9(%arg0: i32, %arg1: memref<3xi32, #tpu.memory_space<smem>>) -> (i32, i32, i32) {
    %0 = arith.index_cast %arg0 : i32 to index
    %1 = memref.load %arg1[%0] : memref<3xi32, #tpu.memory_space<smem>>
    %c0_i32 = arith.constant 0 : i32
    %c0_i32_0 = arith.constant 0 : i32
    %c0_i32_1 = arith.constant 0 : i32
    return %1, %c0_i32, %c0_i32_0 : i32, i32, i32
  }
  func.func @transform_10(%arg0: i32, %arg1: memref<3xi32, #tpu.memory_space<smem>>) -> (i32, i32, i32) {
    %0 = arith.index_cast %arg0 : i32 to index
    %1 = memref.load %arg1[%0] : memref<3xi32, #tpu.memory_space<smem>>
    %c0_i32 = arith.constant 0 : i32
    %c0_i32_0 = arith.constant 0 : i32
    %c0_i32_1 = arith.constant 0 : i32
    return %1, %c0_i32, %c0_i32_0 : i32, i32, i32
  }
  func.func @transform_11(%arg0: i32, %arg1: memref<3xi32, #tpu.memory_space<smem>>) -> (i32, i32, i32) {
    %0 = arith.index_cast %arg0 : i32 to index
    %1 = memref.load %arg1[%0] : memref<3xi32, #tpu.memory_space<smem>>
    %c0_i32 = arith.constant 0 : i32
    %c0_i32_0 = arith.constant 0 : i32
    %c0_i32_1 = arith.constant 0 : i32
    return %1, %c0_i32, %c0_i32_0 : i32, i32, i32
  }
  func.func @transform_12(%arg0: i32, %arg1: memref<3xi32, #tpu.memory_space<smem>>) -> (i32, i32, i32) {
    %0 = arith.index_cast %arg0 : i32 to index
    %1 = memref.load %arg1[%0] : memref<3xi32, #tpu.memory_space<smem>>
    %c0_i32 = arith.constant 0 : i32
    %c0_i32_0 = arith.constant 0 : i32
    %c0_i32_1 = arith.constant 0 : i32
    return %1, %c0_i32, %c0_i32_0 : i32, i32, i32
  }
  func.func @transform_13(%arg0: i32, %arg1: memref<3xi32, #tpu.memory_space<smem>>) -> (i32, i32, i32) {
    %0 = arith.index_cast %arg0 : i32 to index
    %1 = memref.load %arg1[%0] : memref<3xi32, #tpu.memory_space<smem>>
    %c0_i32 = arith.constant 0 : i32
    %c0_i32_0 = arith.constant 0 : i32
    %c0_i32_1 = arith.constant 0 : i32
    return %1, %c0_i32, %c0_i32_0 : i32, i32, i32
  }
  func.func @transform_14(%arg0: i32, %arg1: memref<3xi32, #tpu.memory_space<smem>>) -> (i32, i32, i32) {
    %0 = arith.index_cast %arg0 : i32 to index
    %1 = memref.load %arg1[%0] : memref<3xi32, #tpu.memory_space<smem>>
    %c0_i32 = arith.constant 0 : i32
    %c0_i32_0 = arith.constant 0 : i32
    %c0_i32_1 = arith.constant 0 : i32
    return %1, %c0_i32, %c0_i32_0 : i32, i32, i32
  }
  func.func @transform_15(%arg0: i32, %arg1: memref<3xi32, #tpu.memory_space<smem>>) -> (i32, i32, i32) {
    %0 = arith.index_cast %arg0 : i32 to index
    %1 = memref.load %arg1[%0] : memref<3xi32, #tpu.memory_space<smem>>
    %c0_i32 = arith.constant 0 : i32
    %c0_i32_0 = arith.constant 0 : i32
    %c0_i32_1 = arith.constant 0 : i32
    return %1, %c0_i32, %c0_i32_0 : i32, i32, i32
  }
  func.func @transform_16(%arg0: i32, %arg1: memref<3xi32, #tpu.memory_space<smem>>) -> (i32, i32, i32) {
    %0 = arith.index_cast %arg0 : i32 to index
    %1 = memref.load %arg1[%0] : memref<3xi32, #tpu.memory_space<smem>>
    %c0_i32 = arith.constant 0 : i32
    %c0_i32_0 = arith.constant 0 : i32
    %c0_i32_1 = arith.constant 0 : i32
    return %1, %c0_i32, %c0_i32_0 : i32, i32, i32
  }
  func.func @transform_17(%arg0: i32, %arg1: memref<3xi32, #tpu.memory_space<smem>>) -> (i32, i32, i32) {
    %0 = arith.index_cast %arg0 : i32 to index
    %1 = memref.load %arg1[%0] : memref<3xi32, #tpu.memory_space<smem>>
    %c0_i32 = arith.constant 0 : i32
    %c0_i32_0 = arith.constant 0 : i32
    %c0_i32_1 = arith.constant 0 : i32
    return %1, %c0_i32, %c0_i32_0 : i32, i32, i32
  }
  func.func @transform_18(%arg0: i32, %arg1: memref<3xi32, #tpu.memory_space<smem>>) -> (i32, i32) {
    %c0_i32 = arith.constant 0 : i32
    %c0_i32_0 = arith.constant 0 : i32
    %c0_i32_1 = arith.constant 0 : i32
    return %c0_i32, %c0_i32_0 : i32, i32
  }
}

</mosaic_0001>

<bundles_post_ra>
// kernel: tpu_custom_call.1
= control target key start
LH: loop header
LB: loop body
LE: loop exit
PB: predicated region body
PF: predicated region fallthrough
CT: control target
= control target key end

     0   :  { %s8662_s0 = inlined_call_operand.vmem [shape: s32[3], index: 0, kind: input, shape index: {}]   ;;  %s8663_s1 = inlined_call_operand.vmem [shape: s32[1,384], index: 1, kind: input, shape index: {}]   ;;  %s8664_s2 = inlined_call_operand.vmem [shape: f32[384,80], index: 2, kind: input, shape index: {}]   ;;  %s8665_s3 = inlined_call_operand.vmem [shape: f32[384,60], index: 3, kind: input, shape index: {}]   ;;  %s8666_s4 = inlined_call_operand.vmem [shape: bf16[3,60,60], index: 4, kind: input, shape index: {}]   ;;  %s8667_s5 = inlined_call_operand.vmem [shape: bf16[3,80,32], index: 5, kind: input, shape index: {}]   ;;  %s8668_s6 = inlined_call_operand.vmem [shape: bf16[3,20,32], index: 6, kind: input, shape index: {}]   ;;  %s8669_s7 = inlined_call_operand.vmem [shape: f32[3,1,32], index: 7, kind: input, shape index: {}]   ;;  %s8670_s8 = inlined_call_operand.vmem [shape: bf16[3,60,24], index: 8, kind: input, shape index: {}]   ;;  %s8671_s9 = inlined_call_operand.vmem [shape: bf16[3,24,24], index: 9, kind: input, shape index: {}]   ;;  %s8672_s10 = inlined_call_operand.vmem [shape: bf16[3,32,32], index: 10, kind: input, shape index: {}]   ;;  %s8673_s11 = inlined_call_operand.vmem [shape: bf16[3,8,32], index: 11, kind: input, shape index: {}]   ;;  %s8674_s12 = inlined_call_operand.vmem [shape: f32[3,1,32], index: 12, kind: input, shape index: {}]   ;;  %s8675_s13 = inlined_call_operand.vmem [shape: bf16[3,24,24], index: 13, kind: input, shape index: {}]   ;;  %s8676_s14 = inlined_call_operand.vmem [shape: bf16[3,24,24], index: 14, kind: input, shape index: {}]   ;;  %s8677_s15 = inlined_call_operand.vmem [shape: bf16[3,32,32], index: 15, kind: input, shape index: {}]   ;;  %s8678_s16 = inlined_call_operand.vmem [shape: bf16[3,8,32], index: 16, kind: input, shape index: {}]   ;;  %s8679_s17 = inlined_call_operand.vmem [shape: f32[3,1,32], index: 17, kind: input, shape index: {}]   ;;  %s8680_s18 = inlined_call_operand.vmem [shape: bf16[3,24,24], index: 18, kind: input, shape index: {}]   ;;  %s8681_s19 = inlined_call_operand.hbm [shape: f32[32,128], index: 19, kind: output, shape index: {}]  }
   0x1   :  { %8688 = sst [smem:[#allocation21_spill]] %s8662_s0 }
   0x2   :  { %8689 = sst [smem:[#allocation22_spill]] %s8663_s1  ;;  %s8708_s20 = sld [smem:[#allocation21_spill]] }
   0x3   :  { %8690 = sst [smem:[#allocation23_spill]] %s8664_s2 }
   0x4   :  { %8691 = sst [smem:[#allocation24_spill]] %s8665_s3 }
   0x5   :  { %8692 = sst [smem:[#allocation25_spill]] %s8666_s4 }
   0x6   :  { %8693 = sst [smem:[#allocation26_spill]] %s8667_s5 }
   0x7   :  { %8694 = sst [smem:[#allocation27_spill]] %s8668_s6 }
   0x8   :  { %8695 = sst [smem:[#allocation28_spill]] %s8669_s7 }
   0x9   :  { %8696 = sst [smem:[#allocation29_spill]] %s8670_s8 }
   0xa   :  { %8697 = sst [smem:[#allocation30_spill]] %s8671_s9 }
   0xb   :  { %8698 = sst [smem:[#allocation31_spill]] %s8672_s10 }
   0xc   :  { %8699 = sst [smem:[#allocation32_spill]] %s8673_s11 }
   0xd   :  { %8700 = sst [smem:[#allocation33_spill]] %s8674_s12 }
   0xe   :  { %8701 = sst [smem:[#allocation34_spill]] %s8675_s13  ;;  %s24_s13 = sshll.u32 %s8708_s20, 4  ;;  %s25_s13 = int_to_ptr.vmem [resolvable:$true] %s24_s13 }
   0xf   :  { %8702 = sst [smem:[#allocation35_spill]] %s8676_s14  ;;  %s6366_s21 = scalar_lea.vmem %s25_s13, 16 }
  0x10   :  { %8703 = sst [smem:[#allocation36_spill]] %s8677_s15  ;;  %p6367_p0 = scmp.ne.s32.totalorder %s25_s13, %s6366_s21 }
  0x11   :  { %8704 = sst [smem:[#allocation37_spill]] %s8678_s16  ;;  %p6371_p1 = scmp.lt.s32.totalorder %s25_s13, %s25_s13 }
  0x12   :  { %8705 = sst [smem:[#allocation38_spill]] %s8679_s17  ;;  %p6372_p2 = scmp.lt.s32.totalorder %s6366_s21, %s6366_s21 }
  0x13   :  { %8706 = sst [smem:[#allocation39_spill]] %s8680_s18 }
  0x14   :  { %8707 = sst [smem:[#allocation40_spill]] %s8681_s19  ;;  %p6373_p3 = por %p6372_p2, %p6371_p1 }
  0x16   :  { %p6374_p4 = pnand %p6373_p3, %p6367_p0 }
  0x18   :  { %6377 = shalt.err (!%p6374_p4)  }
  0x19   :  { %s6418_s1 = smov [#allocation3]  }
  0x1a   :  { %27 = dma.vmem_to_smem %s25_s13, 16, %s6418_s1, [#allocation2] }
  0x1b   :  { %6408 = dma.done.wait [#allocation2], 16 }
  0x1c   :  { %6409 = vsyncadd [#allocation2], 4294967280 }
  0x1d   :  { %29 = sfence }
  0x1e   :  { %30 = vsyncpa [#allocation5], 0  ;;  %s6533_s22 = smov 0  }
  0x1f LB: > { %8709 = sst [smem:[#allocation8_spill]] %s6416_s22  ;;  %s6539_s2 = sadd.s32 4294967295, %s6416_s22   ;;  %s6416_s22 = sphi %s6533_s22, %s36_s22  }
  0x20   : > { %p5296_p5 = scmp.ge.s32.totalorder %s6416_s22, 1  ;;  %p737_p6 = scmp.lt.s32.totalorder %s6416_s22, 4 }
  0x22   : > { %p738_p7 = pnand %p5296_p5, %p737_p6 }
  0x24   : > { %741 = sbr.rel (%p738_p7) target bundleno = 2505 (0x9c9), region = 92 }
  0x2b   : > { %p876_p8 = scmp.lt.s32.totalorder %s6539_s2, 2  ;;  %s5297_s13 = sshll.u32 %s6539_s2, 4 }
  0x2c   : > { %p880_p9 = scmp.lt.s32.totalorder %s5297_s13, 47  ;;  %s891_s23 = sld [smem:[#allocation3 + %s6539_s2]] }
  0x2d   : > { %s6547_s24 = scalar_select %p876_p8, %s6539_s2, 2 }
  0x2e   : > { %s8766_s13 = smov (!%p880_p9, %s5297_s13), 47  ;;  %s898_s28 = sld [smem:[#allocation3 + %s6539_s2]] }
  0x2f   : > { %8710 = sst [smem:[#allocation9_spill]] %s6547_s24  ;;  %s5298_s29 = sshll.u32 %s8766_s13, 3 }
  0x30   : > { %s905_s0 = sld [smem:[#allocation3 + %s6539_s2]] }
  0x31   : > { %s8712_s21 = sld [smem:[#allocation23_spill]]  ;;  %s8713_s18 = sld [smem:[#allocation24_spill]] }
  0x32   : > { %p892_p10 = scmp.lt.s32.totalorder %s891_s23, 2  ;;  %s912_s16 = sld [smem:[#allocation3 + %s6539_s2]] }
  0x33   : > { %s917_s15 = sld [smem:[#allocation3 + %s6539_s2]] }
  0x34   : > { %s924_s14 = sld [smem:[#allocation3 + %s6539_s2]]  ;;  %s8768_s23 = smov (!%p892_p10, %s891_s23), 2 }
  0x35   : > { %p899_p11 = scmp.lt.s32.totalorder %s898_s28, 2  ;;  %s931_s25 = sld [smem:[#allocation3 + %s6539_s2]] }
  0x36   : > { %s5513_s3 = sshll.u32 %s8768_s23, 5  ;;  %p906_p12 = scmp.lt.s32.totalorder %s905_s0, 2 }
  0x37   : > { %s6558_s1 = scalar_lea.vmem %s8712_s21, %s5298_s29  ;;  %s6563_s17 = scalar_lea.vmem %s8713_s18, %s5298_s29 }
  0x38   : > { %s8714_s4 = sld [smem:[#allocation25_spill]]  ;;  %s8770_s28 = smov (!%p899_p11, %s898_s28), 2 }
  0x39   : > { %s938_s20 = sld [smem:[#allocation3 + %s6539_s2]]  ;;  %s8772_s0 = smov (!%p906_p12, %s905_s0), 2 }
  0x3a   : > { %s5979_s18 = smul.u32 40, %s8770_s28  ;;  %p913_p13 = scmp.lt.s32.totalorder %s912_s16, 2 }
  0x3b   : > { %s5980_s19 = smul.u32 12, %s8772_s0  ;;  %p918_p0 = scmp.lt.s32.totalorder %s917_s15, 2 }
  0x3c   : > { %s8715_s5 = sld [smem:[#allocation26_spill]]  ;;  %p925_p1 = scmp.lt.s32.totalorder %s924_s14, 2 }
  0x3d   : > { %s8716_s6 = sld [smem:[#allocation27_spill]]  ;;  %p932_p2 = scmp.lt.s32.totalorder %s931_s25, 2 }
  0x3e   : > { %s6572_s30 = scalar_lea.vmem %s8714_s4, %s5513_s3  ;;  %s8774_s16 = smov (!%p913_p13, %s912_s16), 2 }
  0x3f   : > { %s8776_s15 = smov (!%p918_p0, %s917_s15), 2  ;;  %p939_p3 = scmp.lt.s32.totalorder %s938_s20, 2 }
  0x40   : > { %s5514_s22 = sshll.u32 %s8776_s15, 5  ;;  %s8718_s8 = sld [smem:[#allocation29_spill]] }
  0x41   : > { %s8778_s14 = smov (!%p925_p1, %s924_s14), 2  ;;  %s8780_s25 = smov (!%p932_p2, %s931_s25), 2 }
  0x42   : > { %s6578_s23 = scalar_lea.vmem %s8715_s5, %s5979_s18  ;;  %s944_s18 = sld [smem:[#allocation3 + %s6539_s2]] }
  0x43   : > { %s6583_s3 = scalar_lea.vmem %s8716_s6, %s5980_s19  ;;  %s949_s19 = sld [smem:[#allocation3 + %s6539_s2]] }
  0x44   : > { %s5981_s13 = smul.u32 12, %s8778_s14  ;;  %s956_s4 = sld [smem:[#allocation3 + %s6539_s2]] }
  0x45   : > { %s5515_s5 = sshll.u32 %s8780_s25, 4  ;;  %s963_s6 = sld [smem:[#allocation3 + %s6539_s2]] }
  0x46   : > { %s6595_s21 = scalar_lea.vmem %s8718_s8, %s5514_s22  ;;  %s8719_s9 = sld [smem:[#allocation30_spill]] }
  0x47   : > { %s8720_s10 = sld [smem:[#allocation31_spill]]  ;;  %s8782_s20 = smov (!%p939_p3, %s938_s20), 2 }
  0x48   : > { %p945_p4 = scmp.lt.s32.totalorder %s944_s18, 2  ;;  %s5310_s27 = sshll.u32 %s8782_s20, 2 }
  0x49   : > { %p950_p5 = scmp.lt.s32.totalorder %s949_s19, 2  ;;  %s970_s14 = sld [smem:[#allocation3 + %s6539_s2]] }
  0x4a   : > { %s8722_s11 = sld [smem:[#allocation32_spill]]  ;;  %p957_p6 = scmp.lt.s32.totalorder %s956_s4, 2 }
  0x4b   : > { %s8784_s18 = smov (!%p945_p4, %s944_s18), 2  ;;  %s8786_s19 = smov (!%p950_p5, %s949_s19), 2 }
  0x4c   : > { %s6603_s0 = scalar_lea.vmem %s8719_s9, %s5981_s13  ;;  %p964_p7 = scmp.lt.s32.totalorder %s963_s6, 2 }
  0x4d   : > { %s6608_s7 = scalar_lea.vmem %s8720_s10, %s5515_s5  ;;  %s5982_s13 = smul.u32 12, %s8786_s19 }
  0x4e   : > { %8721 = sst [smem:[#allocation10_spill]] %s6608_s7  ;;  %s8788_s4 = smov (!%p957_p6, %s956_s4), 2 }
  0x4f   : > { %s976_s28 = sld [smem:[#allocation3 + %s6539_s2]]  ;;  %p971_p8 = scmp.lt.s32.totalorder %s970_s14, 2 }
  0x50   : > { %s6614_s29 = scalar_lea.vmem %s8722_s11, %s5310_s27  ;;  %s8724_s8 = sld [smem:[#allocation34_spill]] }
  0x51   : > { %s5983_s27 = smul.u32 12, %s8788_s4  ;;  %s981_s22 = sld [smem:[#allocation3 + %s6539_s2]] }
  0x52   : > { %s8790_s6 = smov (!%p964_p7, %s963_s6), 2  ;;  %s8725_s11 = sld [smem:[#allocation35_spill]] }
  0x53   : > { %s5516_s24 = sshll.u32 %s8790_s6, 4  ;;  %s8726_s5 = sld [smem:[#allocation36_spill]] }
  0x54   : > { %s8792_s14 = smov (!%p971_p8, %s970_s14), 2  ;;  %s8727_s20 = sld [smem:[#allocation37_spill]] }
  0x55   : > { %p977_p9 = scmp.lt.s32.totalorder %s976_s28, 2  ;;  %s8728_s6 = sld [smem:[#allocation38_spill]] }
  0x56   : > { %s6626_s9 = scalar_lea.vmem %s8724_s8, %s5982_s13  ;;  %s5315_s8 = sshll.u32 %s8792_s14, 2 }
  0x57   : > { %s8794_s28 = smov (!%p977_p9, %s976_s28), 2  ;;  %p982_p10 = scmp.lt.s32.totalorder %s981_s22, 2 }
  0x58   : > { %s6632_s7 = scalar_lea.vmem %s8725_s11, %s5983_s27  ;;  %p5317_p11 = scmp.ne.s32.totalorder %s6539_s2, 0 }
  0x59   : > { %s6637_s12 = scalar_lea.vmem %s8726_s5, %s5516_s24  ;;  %s8796_s22 = smov (!%p982_p10, %s981_s22), 2  ;;  %v6419_v0 = vmov (!%p5317_p11), 0.0  }
  0x5a   : > { %s6644_s15 = scalar_lea.vmem %s8727_s20, %s5315_s8  ;;  %s5984_s25 = smul.u32 12, %s8796_s22  ;;  %993 = vst [vmem:[#allocation4] sm:$0xff] (!%p5317_p11), %v6419_v0  ;;  %994 = vst [vmem:[#allocation4 + $0x8] sm:$0xff] (!%p5317_p11), %v6419_v0 }
  0x5b   : > { %s979_s27 = scalar_lea.vmem %s8728_s6, %s8794_s28  ;;  %s8729_s24 = sld [smem:[#allocation39_spill]]  ;;  %995 = vst [vmem:[#allocation4 + $0x10] sm:$0xff] (!%p5317_p11), %v6419_v0  ;;  %996 = vst [vmem:[#allocation4 + $0x18] sm:$0xff] (!%p5317_p11), %v6419_v0 }
  0x5c   : > { %992 = sbr.rel (%p5317_p11) target bundleno = 99 (0x63), region = 96 }
  0x61   : > { %s6653_s19 = scalar_lea.vmem %s8729_s24, %s5984_s25 }
  0x63 PF: > { %v6051_v1 = vld [vmem:[%s6572_s30] sm:$0xff]   ;;  %v6052_v2 = vld [vmem:[%s6572_s30 + $0x8] sm:$0xff]   ;;  %v6053_v3 = vld [vmem:[%s6572_s30 + $0x10] sm:$0xff]   ;;  %vm1090_vm0 = vcmask 490496   ;;  %vm1115_vm1 = vcmask 1045504   ;;  %vm1554_vm2 = vcmask 1041408  }
  0x64   : > { %5652 = vmatprep.subr.bf16.mxu0 %v6051_v1  ;;  %v1013_v4 = vld [vmem:[%s6563_s17] sm:$0xff]  ;;  %v1014_v5 = vld [vmem:[%s6563_s17 + $0x8] sm:$0xff]  ;;  %v6054_v7 = vld [vmem:[%s6572_s30 + $0x18] sm:$0x3f]   ;;  %s6420_s30 = smov 108   ;;  %vm1529_vm3 = vcmask 162816  }
  0x65   : > { %5653 = vmatpush3.bf16.msra.mxu0 %v6051_v1  ;;  %v1059_v6 = vpack.c.bf16 %v1014_v5, %v1013_v4  ;;  %v1015_v8 = vld [vmem:[%s6563_s17 + $0x10] sm:$0xff]  ;;  %v1016_v9 = vld [vmem:[%s6563_s17 + $0x18] sm:$0xff]  ;;  %v1017_v10 = vld [vmem:[%s6563_s17 + $0x20] sm:$0xff]  ;;  %v1117_v12 = vsel %vm1115_vm1, %v6054_v7, 0  ;;  %s6425_s14 = smov 16   ;;  %s8730_s22 = sld [smem:[#allocation28_spill]] }
  0x66   : > { %5654 = vmatprep.subr.bf16.mxu0 %v6052_v2  ;;  %v1018_v11 = vld [vmem:[%s6563_s17 + $0x28] sm:$0xff]  ;;  %v6055_v13 = vld [vmem:[%s6595_s21] sm:$0xff]   ;;  %v1060_v14 = vpack.c.bf16 %v1016_v9, %v1015_v8  ;;  %v1019_v17 = vld [vmem:[%s6563_s17 + $0x30] sm:$0xff]  ;;  %s6428_s28 = smov [#allocation4]   ;;  %p5989_p12 = scmp.eq.s32.totalorder %s6539_s2, 2 }
  0x67   : > { %5660 = vmatprep.mubr.msk.bf16.mxu0 %vm1090_vm0, %v1059_v6  ;;  %v6056_v15 = vld [vmem:[%s6595_s21 + $0x8] sm:$0xff]   ;;  %v1061_v16 = vpack.c.bf16 %v1018_v11, %v1017_v10  ;;  %v1020_v18 = vld [vmem:[%s6563_s17 + $0x38] sm:$0xff]  ;;  %v1021_v19 = vld [vmem:[%s6563_s17 + $0x40] sm:$0xff] }
  0x68   : > { %v1022_v20 = vld [vmem:[%s6563_s17 + $0x48] sm:$0xff]  ;;  %v6057_v21 = vld [vmem:[%s6595_s21 + $0x10] sm:$0xff]   ;;  %v1062_v22 = vpack.c.bf16 %v1020_v18, %v1019_v17  ;;  %v6058_v24 = vld [vmem:[%s6595_s21 + $0x18] sm:$0x3f]   ;;  %s6423_s21 = smov 120  }
  0x69   : > { %5655 = vmatpush3.bf16.msra.mxu0 %v6052_v2  ;;  %v1063_v23 = vpack.c.bf16 %v1022_v20, %v1021_v19  ;;  %v1023_v25 = vld [vmem:[%s6563_s17 + $0x50] sm:$0xff]  ;;  %v1024_v26 = vld [vmem:[%s6563_s17 + $0x58] sm:$0xff]  ;;  %v1025_v27 = vld [vmem:[%s6563_s17 + $0x60] sm:$0xff]  ;;  %v1885_v34 = vsel %vm1115_vm1, %v6058_v24, 0 }
  0x6a   : > { %5656 = vmatprep.subr.bf16.mxu0 %v6053_v3  ;;  %v1026_v28 = vld [vmem:[%s6563_s17 + $0x68] sm:$0xff]  ;;  %v1064_v29 = vpack.c.bf16 %v1024_v26, %v1023_v25  ;;  %v1027_v31 = vld [vmem:[%s6563_s17 + $0x70] sm:$0xff]  ;;  %v1028_v32 = vld [vmem:[%s6563_s17 + $0x78] sm:$0xff]  ;;  %s6421_s17 = smov 88  }
  0x6b   : > { %v1065_v30 = vpack.c.bf16 %v1026_v28, %v1025_v27  ;;  %v1066_v33 = vpack.c.bf16 %v1028_v32, %v1027_v31  ;;  %v6059_v53 = vld [vmem:[%s6583_s3] sm:$0xff]   ;;  %v6060_v60 = vld [vmem:[%s6583_s3 + $0x8] ss:$0 sps:$4 sm:$0x33]   ;;  %s6422_s3 = smov 112   ;;  %s8731_s8 = scalar_lea.vmem %s8730_s22, %s8774_s16 }
  0x6c   : > { %5676 = vmatprep.subr.bf16.mxu1 %v6059_v53  ;;  %v1556_v61 = vsel %vm1554_vm2, %v6060_v60, 0 }
  0x6d   : > { %5657 = vmatpush3.bf16.msra.mxu0 %v6053_v3  ;;  %5677 = vmatpush3.bf16.msra.mxu1 %v6059_v53 }
  0x6e   : > { %5970 = vmatprep.subr.msk.bf16.mxu0 %vm1115_vm1, %v6054_v7  ;;  %5971 = vmatprep.subr.msk.bf16.mxu1 %vm1554_vm2, %v6060_v60 }
  0x71   : > { %5659 = vmatpush3.bf16.msra.mxu0 %v1117_v12  ;;  %5679 = vmatpush3.bf16.msra.mxu1 %v1556_v61 }
  0x72   : > { %5722 = vmatprep.subr.bf16.mxu0 %v6055_v13 }
  0x74   : > { %5661 = vmatmul.mubr.msk.bf16.vlgmr.msra.gmra.mrb[0].mxu0 %vm1090_vm0, %v1060_v14 }
  0x75   : > { %5664 = vmatprep.mubr.msk.bf16.mxu0 %vm1090_vm0, %v1061_v16  ;;  %5723 = vmatpush3.bf16.msra.mxu0 %v6055_v13 }
  0x76   : > { %5724 = vmatprep.subr.bf16.mxu0 %v6056_v15 }
  0x79   : > { %5725 = vmatpush3.bf16.msra.mxu0 %v6056_v15 }
  0x7a   : > { %5726 = vmatprep.subr.bf16.mxu0 %v6057_v21 }
  0x7c   : > { %5665 = vmatmul.mubr.msk.bf16.gmra.mrb[4].mxu0 %vm1090_vm0, %v1062_v22 }
  0x7d   : > { %5668 = vmatprep.mubr.msk.bf16.mxu0 %vm1090_vm0, %v1063_v23  ;;  %5727 = vmatpush3.bf16.msra.mxu0 %v6057_v21 }
  0x7e   : > { %5972 = vmatprep.subr.msk.bf16.mxu0 %vm1115_vm1, %v6058_v24 }
  0x81   : > { %5729 = vmatpush3.bf16.msra.mxu0 %v1885_v34 }
  0x84   : > { %5669 = vmatmul.mubr.msk.bf16.gmra.mrb[8].mxu0 %vm1090_vm0, %v1064_v29 }
  0x85   : > { %5672 = vmatprep.mubr.msk.bf16.mxu0 %vm1090_vm0, %v1065_v30 }
  0x8c   : > { %5673 = vmatmul.mubr.msk.bf16.gmra.mrb[12].mxu0 %vm1090_vm0, %v1066_v33 }
 0x147   : > { %v5662_v35 = vpop.f32.mrb[0].mxu0 }
 0x148   : > { %v6692_v36 = vmul.f32 %v5662_v35, %v5662_v35  ;;  %v1153_v37 = vpop.f32.mrb[1].mxu0 }
 0x149   : > { %v5663_v38 = vpop.f32.mrb[2].mxu0  ;;  %v6704_v44 = vmul.f32 %v1153_v37, %v1153_v37 }
 0x14a   : > { %v6694_v39 = vmul.f32 %v5663_v38, %v5663_v38  ;;  %v1830_v40 = vpack.c.bf16 %v5663_v38, %v5662_v35  ;;  %1252 = vrot.lane.b32.xlu0 %v6692_v36, %s6420_s30  ;;  %v1156_v41 = vpop.f32.mrb[3].mxu0 }
 0x14b   : > { %v1829_v42 = vpack.c.bf16 %v1156_v41, %v1153_v37  ;;  %v6708_v47 = vmul.f32 %v1156_v41, %v1156_v41 }
 0x14c   : > { %1254 = vrot.lane.b32.xlu1 %v6694_v39, %s6420_s30 }
 0x14d   : > { %5730 = vmatprep.mubr.msk.bf16.mxu0 %vm1090_vm0, %v1829_v42 }
 0x14e   : > { %1316 = vrot.lane.b32.xlu0 %v6692_v36, %s6421_s17  ;;  %5731 = vmatmul.mubr.msk.bf16.vlgmr.msra.gmra.mrb[16].mxu0 %vm1090_vm0, %v1830_v40 }
 0x14f   : > { %v5666_v43 = vpop.f32.mrb[4].mxu0 }
 0x150   : > { %1318 = vrot.lane.b32.xlu1 %v6694_v39, %s6421_s17  ;;  %v1169_v45 = vpop.f32.mrb[5].mxu0  ;;  %v6715_v51 = vmul.f32 %v5666_v43, %v5666_v43 }
 0x151   : > { %v5667_v46 = vpop.f32.mrb[6].mxu0  ;;  %v1220_v63 = vmul.f32 %v1169_v45, %v1169_v45 }
 0x152   : > { %v1832_v48 = vpack.c.bf16 %v5667_v46, %v5666_v43  ;;  %1248 = vrot.lane.b32.xlu0 %v6704_v44, %s6420_s30  ;;  %v1172_v49 = vpop.f32.mrb[7].mxu0  ;;  %v1223_v56 = vmul.f32 %v5667_v46, %v5667_v46 }
 0x153   : > { %v1831_v50 = vpack.c.bf16 %v1172_v49, %v1169_v45  ;;  %v6744_v2 = vmul.f32 %v1172_v49, %v1172_v49 }
 0x154   : > { %1250 = vrot.lane.b32.xlu1 %v6708_v47, %s6420_s30 }
 0x155   : > { %5734 = vmatprep.mubr.msk.bf16.mxu0 %vm1090_vm0, %v1831_v50 }
 0x156   : > { %1312 = vrot.lane.b32.xlu0 %v6704_v44, %s6421_s17  ;;  %5735 = vmatmul.mubr.msk.bf16.gmra.mrb[20].mxu0 %vm1090_vm0, %v1832_v48 }
 0x157   : > { %v6720_v52 = vpop.f32.mrb[8].mxu0 }
 0x158   : > { %1314 = vrot.lane.b32.xlu1 %v6708_v47, %s6421_s17  ;;  %v1185_v54 = vpop.f32.mrb[9].mxu0 }
 0x159   : > { %v6725_v55 = vpop.f32.mrb[10].mxu0  ;;  %v6756_v6 = vmul.f32 %v1185_v54, %v1185_v54 }
 0x15a   : > { %1260 = vrot.lane.b32.xlu0 %v6715_v51, %s6420_s30  ;;  %v1834_v57 = vpack.c.bf16 %v6725_v55, %v6720_v52  ;;  %v1188_v58 = vpop.f32.mrb[11].mxu0 }
 0x15b   : > { %v1833_v59 = vpack.c.bf16 %v1188_v58, %v1185_v54  ;;  %v6762_v7 = vmul.f32 %v1188_v58, %v1188_v58 }
 0x15c   : > { %1262 = vrot.lane.b32.xlu1 %v1223_v56, %s6420_s30 }
 0x15d   : > { %5738 = vmatprep.mubr.msk.bf16.mxu0 %vm1090_vm0, %v1833_v59 }
 0x15e   : > { %1324 = vrot.lane.b32.xlu0 %v6715_v51, %s6421_s17  ;;  %5739 = vmatmul.mubr.msk.bf16.gmra.mrb[24].mxu0 %vm1090_vm0, %v1834_v57 }
 0x15f   : > { %v6737_v62 = vpop.f32.mrb[12].mxu0 }
 0x160   : > { %1326 = vrot.lane.b32.xlu1 %v1223_v56, %s6421_s17  ;;  %v6740_v0 = vpop.f32.mrb[13].mxu0 }
 0x161   : > { %v6742_v1 = vpop.f32.mrb[14].mxu0 }
 0x162   : > { %1256 = vrot.lane.b32.xlu0 %v1220_v63, %s6420_s30  ;;  %v1836_v3 = vpack.c.bf16 %v6742_v1, %v6737_v62  ;;  %v6749_v4 = vpop.f32.mrb[15].mxu0 }
 0x163   : > { %v1835_v5 = vpack.c.bf16 %v6749_v4, %v6740_v0 }
 0x164   : > { %1258 = vrot.lane.b32.xlu1 %v6744_v2, %s6420_s30 }
 0x165   : > { %5742 = vmatprep.mubr.msk.bf16.mxu0 %vm1090_vm0, %v1835_v5 }
 0x166   : > { %1320 = vrot.lane.b32.xlu0 %v1220_v63, %s6421_s17  ;;  %5743 = vmatmul.mubr.msk.bf16.gmra.mrb[28].mxu0 %vm1090_vm0, %v1836_v3 }
 0x168   : > { %1322 = vrot.lane.b32.xlu1 %v6744_v2, %s6421_s17 }
 0x16a   : > { %1264 = vrot.lane.b32.xlu0 %v6756_v6, %s6420_s30 }
 0x16c   : > { %1266 = vrot.lane.b32.xlu1 %v6762_v7, %s6420_s30 }
 0x1bc   : > { %v1253_v8 = vpop.permute.xlu0 %1252 }
 0x1bd   : > { %v1298_v10 = vadd.f32 %v1253_v8, %v6692_v36 }
 0x1be   : > { %v1255_v9 = vpop.permute.xlu1 %1254 }
 0x1bf   : > { %v1299_v12 = vadd.f32 %v1255_v9, %v6694_v39 }
 0x1c0   : > { %v1317_v11 = vpop.permute.xlu0 %1316 }
 0x1c1   : > { %v1362_v13 = vadd.f32 %v1317_v11, %v1298_v10 }
 0x1c2   : > { %v1319_v14 = vpop.permute.xlu1 %1318 }
 0x1c3   : > { %v1363_v15 = vadd.f32 %v1319_v14, %v1299_v12  ;;  %v6772_v18 = vmax.f32 %v1362_v13, 1e-08 }
 0x1c4   : > { %v1249_v16 = vpop.permute.xlu0 %1248 }
 0x1c5   : > { %v6770_v17 = vmax.f32 %v1363_v15, 1e-08  ;;  %v1296_v20 = vadd.f32 %v1249_v16, %v6704_v44  ;;  %vm1408_vm4 = vcmp.eq.f32.partialorder %v6772_v18, inf  ;;  %vm1410_vm5 = vcmp.eq.f32.partialorder %v6772_v18, 0.0 }
 0x1c6   : > { %v1251_v19 = vpop.permute.xlu1 %1250  ;;  %v1411_v43 = vand.u32 2147483648, %v6772_v18 }
 0x1c7   : > { %6078 = vrsqrt.f32 %v6770_v17  ;;  %v1297_v22 = vadd.f32 %v1251_v19, %v6708_v47  ;;  %vm1415_vm6 = vcmp.eq.f32.partialorder %v6770_v17, inf  ;;  %vm1417_vm7 = vcmp.eq.f32.partialorder %v6770_v17, 0.0 }
 0x1c8   : > { %v1313_v21 = vpop.permute.xlu0 %1312  ;;  %6080 = vrsqrt.f32 %v6772_v18  ;;  %v1418_v49 = vand.u32 2147483648, %v6770_v17 }
 0x1c9   : > { %v1360_v23 = vadd.f32 %v1313_v21, %v1296_v20 }
 0x1ca   : > { %v1315_v24 = vpop.permute.xlu1 %1314 }
 0x1cb   : > { %v1376_v25 = vmax.f32 %v1360_v23, 1e-08  ;;  %v1361_v26 = vadd.f32 %v1315_v24, %v1297_v22 }
 0x1cc   : > { %v1261_v27 = vpop.permute.xlu0 %1260 }
 0x1cd   : > { %v1377_v28 = vmax.f32 %v1361_v26, 1e-08  ;;  %6082 = vrsqrt.f32 %v1376_v25  ;;  %v1302_v30 = vadd.f32 %v1261_v27, %v6715_v51  ;;  %vm1394_vm8 = vcmp.eq.f32.partialorder %v1376_v25, inf }
 0x1ce   : > { %v1263_v29 = vpop.permute.xlu1 %1262  ;;  %v1397_v54 = vand.u32 2147483648, %v1376_v25  ;;  %vm1396_vm10 = vcmp.eq.f32.partialorder %v1376_v25, 0.0 }
 0x1cf   : > { %6084 = vrsqrt.f32 %v1377_v28  ;;  %v1303_v32 = vadd.f32 %v1263_v29, %v1223_v56  ;;  %vm1401_vm9 = vcmp.eq.f32.partialorder %v1377_v28, inf  ;;  %vm1403_vm11 = vcmp.eq.f32.partialorder %v1377_v28, 0.0 }
 0x1d0   : > { %v1325_v31 = vpop.permute.xlu0 %1324 }
 0x1d1   : > { %v6079_v33 = vpop.eup %6078  ;;  %v1366_v34 = vadd.f32 %v1325_v31, %v1302_v30 }
 0x1d2   : > { %v1327_v35 = vpop.permute.xlu1 %1326  ;;  %v6081_v37 = vpop.eup %6080  ;;  %v1414_v40 = vmul.f32 %v6079_v33, %v6770_v17 }
 0x1d3   : > { %v1367_v36 = vadd.f32 %v1327_v35, %v1303_v32  ;;  %v6782_v41 = vmax.f32 %v1366_v34, 1e-08  ;;  %v1407_v46 = vmul.f32 %v6081_v37, %v6772_v18 }
 0x1d4   : > { %v1257_v38 = vpop.permute.xlu0 %1256  ;;  %v1416_v56 = vsel %vm1415_vm6, %v6770_v17, %v1414_v40 }
 0x1d5   : > { %v6779_v39 = vmax.f32 %v1367_v36, 1e-08  ;;  %v1300_v45 = vadd.f32 %v1257_v38, %v1220_v63  ;;  %v1404_v63 = vand.u32 2147483648, %v1377_v28  ;;  %v1409_v3 = vsel %vm1408_vm4, %v6772_v18, %v1407_v46 }
 0x1d6   : > { %v1259_v42 = vpop.permute.xlu1 %1258  ;;  %v1412_v12 = vsel %vm1410_vm5, %v1411_v43, %v1409_v3  ;;  %vm1436_vm14 = vcmp.eq.f32.partialorder %v6782_v41, inf  ;;  %v1439_v18 = vand.u32 2147483648, %v6782_v41  ;;  %vm1438_vm4 = vcmp.eq.f32.partialorder %v6782_v41, 0.0 }
 0x1d7   : > { %v6083_v44 = vpop.eup %6082  ;;  %6086 = vrsqrt.f32 %v6779_v39  ;;  %v1301_v51 = vadd.f32 %v1259_v42, %v6744_v2  ;;  %v1419_v2 = vsel %vm1417_vm7, %v1418_v49, %v1416_v56  ;;  %vm1443_vm12 = vcmp.eq.f32.partialorder %v6779_v39, inf }
 0x1d8   : > { %v1321_v47 = vpop.permute.xlu0 %1320  ;;  %v1393_v48 = vmul.f32 %v6083_v44, %v1376_v25  ;;  %6088 = vrsqrt.f32 %v6782_v41  ;;  %v1513_v13 = vpack.c.bf16 %v1419_v2, %v1412_v12  ;;  %vm1445_vm15 = vcmp.eq.f32.partialorder %v6779_v39, 0.0 }
 0x1d9   : > { %v6085_v50 = vpop.eup %6084  ;;  %v1364_v53 = vadd.f32 %v1321_v47, %v1300_v45  ;;  %v6978_v12 = vmul.f32 %v6720_v52, %v6720_v52  ;;  %v6998_v52 = vmul.f32 %v6740_v0, %v6740_v0  ;;  %v7014_v0 = vmul.f32 %v6742_v1, %v6742_v1  ;;  %v6062_v1 = vld [vmem:[%s6578_s23 + $0x8] sm:$0xff]  }
 0x1da   : > { %v1323_v57 = vpop.permute.xlu1 %1322  ;;  %v1395_v58 = vsel %vm1394_vm8, %v1376_v25, %v1393_v48  ;;  %v1400_v59 = vmul.f32 %v6085_v50, %v1377_v28  ;;  %v1446_v25 = vand.u32 2147483648, %v6779_v39 }
 0x1db   : > { %v1380_v60 = vmax.f32 %v1364_v53, 1e-08  ;;  %v1365_v61 = vadd.f32 %v1323_v57, %v1301_v51  ;;  %v1398_v9 = vsel %vm1396_vm10, %v1397_v54, %v1395_v58 }
 0x1dc   : > { %v1402_v5 = vsel %vm1401_vm9, %v1377_v28, %v1400_v59 }
 0x1dd   : > { %6090 = vrsqrt.f32 %v1380_v60  ;;  %v1381_v8 = vmax.f32 %v1365_v61, 1e-08  ;;  %v1405_v10 = vsel %vm1403_vm11, %v1404_v63, %v1402_v5  ;;  %vm1422_vm13 = vcmp.eq.f32.partialorder %v1380_v60, inf }
 0x1de   : > { %v1512_v11 = vpack.c.bf16 %v1405_v10, %v1398_v9  ;;  %v1425_v26 = vand.u32 2147483648, %v1380_v60  ;;  %vm1424_vm1 = vcmp.eq.f32.partialorder %v1380_v60, 0.0 }
 0x1df   : > { %6092 = vrsqrt.f32 %v1381_v8  ;;  %vm1429_vm0 = vcmp.eq.f32.partialorder %v1381_v8, inf  ;;  %v1432_v27 = vand.u32 2147483648, %v1381_v8  ;;  %vm1431_vm2 = vcmp.eq.f32.partialorder %v1381_v8, 0.0 }
 0x1e0   : > { %5680 = vmatprep.mubr.msk.bf16.mxu1 %vm1529_vm3, %v1512_v11 }
 0x1e1   : > { %5681 = vmatmul.mubr.msk.bf16.vlgmr.msra.gmra.mrb[0].mxu1 %vm1529_vm3, %v1513_v13  ;;  %v6087_v14 = vpop.eup %6086  ;;  %v6982_v13 = vmul.f32 %v6725_v55, %v6725_v55  ;;  %v7002_v55 = vmul.f32 %v6749_v4, %v6749_v4  ;;  %v6063_v4 = vld [vmem:[%s6578_s23 + $0x10] sm:$0xff]  }
 0x1e2   : > { %v6089_v15 = vpop.eup %6088  ;;  %v1442_v16 = vmul.f32 %v6087_v14, %v6779_v39  ;;  %v7010_v14 = vmul.f32 %v6737_v62, %v6737_v62  ;;  %v6061_v62 = vld [vmem:[%s6578_s23] sm:$0xff]  }
 0x1e3   : > { %v1435_v19 = vmul.f32 %v6089_v15, %v6782_v41  ;;  %5696 = vmatprep.subr.bf16.mxu1 %v6061_v62  ;;  %v6064_v15 = vld [vmem:[%s6578_s23 + $0x18] sm:$0xff]  }
 0x1e4   : > { %v1444_v22 = vsel %vm1443_vm12, %v6779_v39, %v1442_v16  ;;  %5697 = vmatpush3.bf16.msra.mxu1 %v6061_v62  ;;  %v6065_v16 = vld [vmem:[%s6578_s23 + $0x20] sm:$0xff]   ;;  %s6424_s23 = smov 8  }
 0x1e5   : > { %v1437_v28 = vsel %vm1436_vm14, %v6782_v41, %v1435_v19  ;;  %v1447_v30 = vsel %vm1445_vm15, %v1446_v25, %v1444_v22  ;;  %5698 = vmatprep.subr.bf16.mxu1 %v6062_v1  ;;  %v7035_v19 = vpop.permute.xlu1 %1266  ;;  %v7042_v62 = vld [vmem:[%s6603_s0] sm:$0xff]  }
 0x1e6   : > { %v1440_v34 = vsel %vm1438_vm4, %v1439_v18, %v1437_v28 }
 0x1e7   : > { %v6091_v17 = vpop.eup %6090  ;;  %v1515_v35 = vpack.c.bf16 %v1447_v30, %v1440_v34 }
 0x1e8   : > { %v1421_v20 = vmul.f32 %v6091_v17, %v1380_v60  ;;  %5699 = vmatpush3.bf16.msra.mxu1 %v6062_v1  ;;  %v7033_v17 = vpop.permute.xlu0 %1264 }
 0x1e9   : > { %v6093_v21 = vpop.eup %6092  ;;  %5700 = vmatprep.subr.bf16.mxu1 %v6063_v4 }
 0x1ea   : > { %v1423_v23 = vsel %vm1422_vm13, %v1380_v60, %v1421_v20  ;;  %v1428_v24 = vmul.f32 %v6093_v21, %v1381_v8 }
 0x1eb   : > { %v1426_v31 = vsel %vm1424_vm1, %v1425_v26, %v1423_v23 }
 0x1ec   : > { %v1430_v29 = vsel %vm1429_vm0, %v1381_v8, %v1428_v24  ;;  %5701 = vmatpush3.bf16.msra.mxu1 %v6063_v4 }
 0x1ed   : > { %v1433_v32 = vsel %vm1431_vm2, %v1432_v27, %v1430_v29  ;;  %5702 = vmatprep.subr.bf16.mxu1 %v6064_v15 }
 0x1ee   : > { %v1514_v33 = vpack.c.bf16 %v1433_v32, %v1426_v31 }
 0x1f0   : > { %5684 = vmatprep.mubr.msk.bf16.mxu1 %vm1529_vm3, %v1514_v33  ;;  %5703 = vmatpush3.bf16.msra.mxu1 %v6064_v15 }
 0x1f1   : > { %5685 = vmatmul.mubr.msk.bf16.gmra.mrb[4].mxu1 %vm1529_vm3, %v1515_v35  ;;  %5704 = vmatprep.subr.bf16.mxu1 %v6065_v16 }
 0x1f4   : > { %5705 = vmatpush3.bf16.msra.mxu1 %v6065_v16 }
 0x1f5   : > { %5746 = vmatprep.subr.bf16.mxu1 %v7042_v62 }
 0x221   : > { %v6816_v36 = vpop.f32.mrb[16].mxu0 }
 0x222   : > { %v6820_v37 = vmul.f32 %v6816_v36, %v6816_v36  ;;  %v6822_v38 = vpop.f32.mrb[17].mxu0 }
 0x223   : > { %v6824_v39 = vpop.f32.mrb[18].mxu0  ;;  %v6834_v41 = vmul.f32 %v6822_v38, %v6822_v38 }
 0x224   : > { %2084 = vrot.lane.b32.xlu0 %v6820_v37, %s6422_s3  ;;  %2020 = vrot.lane.b32.xlu1 %v6820_v37, %s6423_s21  ;;  %v6830_v40 = vpop.f32.mrb[19].mxu0  ;;  %v6838_v42 = vmul.f32 %v6824_v39, %v6824_v39 }
 0x225   : > { %v6858_v47 = vmul.f32 %v6830_v40, %v6830_v40 }
 0x228   : > { %2016 = vrot.lane.b32.xlu0 %v6834_v41, %s6423_s21  ;;  %2022 = vrot.lane.b32.xlu1 %v6838_v42, %s6423_s21 }
 0x229   : > { %v6844_v43 = vpop.f32.mrb[20].mxu0 }
 0x22a   : > { %v6846_v44 = vpop.f32.mrb[21].mxu0  ;;  %v6868_v49 = vmul.f32 %v6844_v43, %v6844_v43 }
 0x22b   : > { %v6848_v45 = vpop.f32.mrb[22].mxu0  ;;  %v6892_v57 = vmul.f32 %v6846_v44, %v6846_v44 }
 0x22c   : > { %2080 = vrot.lane.b32.xlu0 %v6834_v41, %s6422_s3  ;;  %2086 = vrot.lane.b32.xlu1 %v6838_v42, %s6422_s3  ;;  %v6854_v46 = vpop.f32.mrb[23].mxu0  ;;  %v6872_v50 = vmul.f32 %v6848_v45, %v6848_v45 }
 0x22d   : > { %v6896_v58 = vmul.f32 %v6854_v46, %v6854_v46 }
 0x230   : > { %2082 = vrot.lane.b32.xlu1 %v6858_v47, %s6422_s3  ;;  %2018 = vrot.lane.b32.xlu0 %v6858_v47, %s6423_s21 }
 0x231   : > { %v6864_v48 = vpop.f32.mrb[24].mxu0 }
 0x232   : > { %v6874_v51 = vpop.f32.mrb[25].mxu0  ;;  %v6914_v63 = vmul.f32 %v6864_v48, %v6864_v48 }
 0x233   : > { %v6876_v53 = vpop.f32.mrb[26].mxu0  ;;  %v6930_v5 = vmul.f32 %v6874_v51, %v6874_v51 }
 0x234   : > { %2028 = vrot.lane.b32.xlu0 %v6868_v49, %s6423_s21  ;;  %2030 = vrot.lane.b32.xlu1 %v6872_v50, %s6423_s21  ;;  %v6882_v54 = vpop.f32.mrb[27].mxu0  ;;  %v6918_v3 = vmul.f32 %v6876_v53, %v6876_v53 }
 0x235   : > { %v6934_v2 = vmul.f32 %v6882_v54, %v6882_v54 }
 0x238   : > { %2092 = vrot.lane.b32.xlu0 %v6868_v49, %s6422_s3  ;;  %2094 = vrot.lane.b32.xlu1 %v6872_v50, %s6422_s3 }
 0x239   : > { %v6888_v56 = vpop.f32.mrb[28].mxu0 }
 0x23a   : > { %v6898_v59 = vpop.f32.mrb[29].mxu0  ;;  %v6946_v8 = vmul.f32 %v6888_v56, %v6888_v56 }
 0x23b   : > { %v6900_v60 = vpop.f32.mrb[30].mxu0  ;;  %v6962_v10 = vmul.f32 %v6898_v59, %v6898_v59 }
 0x23c   : > { %2024 = vrot.lane.b32.xlu0 %v6892_v57, %s6423_s21  ;;  %2026 = vrot.lane.b32.xlu1 %v6896_v58, %s6423_s21  ;;  %v6906_v61 = vpop.f32.mrb[31].mxu0  ;;  %v6950_v9 = vmul.f32 %v6900_v60, %v6900_v60 }
 0x23d   : > { %v6966_v11 = vmul.f32 %v6906_v61, %v6906_v61 }
 0x240   : > { %2088 = vrot.lane.b32.xlu0 %v6892_v57, %s6422_s3  ;;  %2090 = vrot.lane.b32.xlu1 %v6896_v58, %s6422_s3 }
 0x244   : > { %2036 = vrot.lane.b32.xlu0 %v6914_v63, %s6423_s21  ;;  %2038 = vrot.lane.b32.xlu1 %v6918_v3, %s6423_s21 }
 0x248   : > { %2100 = vrot.lane.b32.xlu0 %v6914_v63, %s6422_s3  ;;  %2102 = vrot.lane.b32.xlu1 %v6918_v3, %s6422_s3 }
 0x24c   : > { %2032 = vrot.lane.b32.xlu0 %v6930_v5, %s6423_s21  ;;  %2034 = vrot.lane.b32.xlu1 %v6934_v2, %s6423_s21 }
 0x250   : > { %2096 = vrot.lane.b32.xlu0 %v6930_v5, %s6422_s3  ;;  %2098 = vrot.lane.b32.xlu1 %v6934_v2, %s6422_s3 }
 0x254   : > { %2044 = vrot.lane.b32.xlu0 %v6946_v8, %s6423_s21  ;;  %2046 = vrot.lane.b32.xlu1 %v6950_v9, %s6423_s21 }
 0x258   : > { %2108 = vrot.lane.b32.xlu0 %v6946_v8, %s6422_s3  ;;  %2110 = vrot.lane.b32.xlu1 %v6950_v9, %s6422_s3 }
 0x25c   : > { %2040 = vrot.lane.b32.xlu0 %v6962_v10, %s6423_s21  ;;  %2042 = vrot.lane.b32.xlu1 %v6966_v11, %s6423_s21 }
 0x260   : > { %2104 = vrot.lane.b32.xlu0 %v6962_v10, %s6422_s3  ;;  %2106 = vrot.lane.b32.xlu1 %v6966_v11, %s6422_s3 }
 0x264   : > { %1268 = vrot.lane.b32.xlu0 %v6978_v12, %s6420_s30  ;;  %1270 = vrot.lane.b32.xlu1 %v6982_v13, %s6420_s30 }
 0x268   : > { %1328 = vrot.lane.b32.xlu0 %v6756_v6, %s6421_s17  ;;  %1330 = vrot.lane.b32.xlu1 %v6762_v7, %s6421_s17 }
 0x26c   : > { %1332 = vrot.lane.b32.xlu0 %v6978_v12, %s6421_s17  ;;  %1334 = vrot.lane.b32.xlu1 %v6982_v13, %s6421_s17 }
 0x270   : > { %1272 = vrot.lane.b32.xlu0 %v6998_v52, %s6420_s30  ;;  %1274 = vrot.lane.b32.xlu1 %v7002_v55, %s6420_s30 }
 0x274   : > { %1276 = vrot.lane.b32.xlu0 %v7010_v14, %s6420_s30  ;;  %1278 = vrot.lane.b32.xlu1 %v7014_v0, %s6420_s30 }
 0x278   : > { %1336 = vrot.lane.b32.xlu0 %v6998_v52, %s6421_s17  ;;  %1338 = vrot.lane.b32.xlu1 %v7002_v55, %s6421_s17 }
 0x27c   : > { %1340 = vrot.lane.b32.xlu0 %v7010_v14, %s6421_s17  ;;  %1342 = vrot.lane.b32.xlu1 %v7014_v0, %s6421_s17 }
 0x296   : > { %v2085_v20 = vpop.permute.xlu0 %2084  ;;  %v2021_v21 = vpop.permute.xlu1 %2020 }
 0x297   : > { %v2066_v18 = vadd.f32 %v2021_v21, %v6820_v37 }
 0x299   : > { %v2130_v22 = vadd.f32 %v2085_v20, %v2066_v18 }
 0x29a   : > { %v2017_v23 = vpop.permute.xlu0 %2016  ;;  %v2023_v24 = vpop.permute.xlu1 %2022 }
 0x29b   : > { %v2146_v25 = vmax.f32 %v2130_v22, 1e-08  ;;  %v2064_v26 = vadd.f32 %v2017_v23, %v6834_v41  ;;  %v2067_v27 = vadd.f32 %v2023_v24, %v6838_v42 }
 0x29d   : > { %6094 = vrsqrt.f32 %v2146_v25  ;;  %vm2176_vm5 = vcmp.eq.f32.partialorder %v2146_v25, inf  ;;  %v2179_v16 = vand.u32 2147483648, %v2146_v25  ;;  %vm2178_vm6 = vcmp.eq.f32.partialorder %v2146_v25, 0.0 }
 0x29e   : > { %v2081_v28 = vpop.permute.xlu0 %2080  ;;  %v2087_v29 = vpop.permute.xlu1 %2086 }
 0x29f   : > { %v2128_v30 = vadd.f32 %v2081_v28, %v2064_v26  ;;  %v2131_v31 = vadd.f32 %v2087_v29, %v2067_v27 }
 0x2a1   : > { %v2144_v32 = vmax.f32 %v2128_v30, 1e-08  ;;  %v2147_v33 = vmax.f32 %v2131_v31, 1e-08 }
 0x2a2   : > { %v2083_v34 = vpop.permute.xlu1 %2082  ;;  %v2019_v35 = vpop.permute.xlu0 %2018 }
 0x2a3   : > { %6096 = vrsqrt.f32 %v2144_v32  ;;  %v2065_v37 = vadd.f32 %v2019_v35, %v6858_v47  ;;  %vm2162_vm7 = vcmp.eq.f32.partialorder %v2144_v32, inf  ;;  %vm2164_vm8 = vcmp.eq.f32.partialorder %v2144_v32, 0.0 }
 0x2a4   : > { %6098 = vrsqrt.f32 %v2147_v33  ;;  %vm2183_vm9 = vcmp.eq.f32.partialorder %v2147_v33, inf  ;;  %vm2185_vm10 = vcmp.eq.f32.partialorder %v2147_v33, 0.0 }
 0x2a5   : > { %v2129_v41 = vadd.f32 %v2083_v34, %v2065_v37 }
 0x2a6   : > { %v2029_v1 = vpop.permute.xlu0 %2028  ;;  %v2031_v4 = vpop.permute.xlu1 %2030 }
 0x2a7   : > { %v6095_v15 = vpop.eup %6094  ;;  %v2145_v20 = vmax.f32 %v2129_v41, 1e-08  ;;  %v2070_v18 = vadd.f32 %v2029_v1, %v6868_v49  ;;  %v2071_v22 = vadd.f32 %v2031_v4, %v6872_v50  ;;  %v2165_v50 = vand.u32 2147483648, %v2144_v32 }
 0x2a8   : > { %v2175_v42 = vmul.f32 %v6095_v15, %v2146_v25  ;;  %v2186_v4 = vand.u32 2147483648, %v2147_v33 }
 0x2a9   : > { %6100 = vrsqrt.f32 %v2145_v20  ;;  %vm2169_vm11 = vcmp.eq.f32.partialorder %v2145_v20, inf  ;;  %vm2171_vm12 = vcmp.eq.f32.partialorder %v2145_v20, 0.0 }
 0x2aa   : > { %v2177_v21 = vsel %vm2176_vm5, %v2146_v25, %v2175_v42  ;;  %v2093_v23 = vpop.permute.xlu0 %2092  ;;  %v2095_v47 = vpop.permute.xlu1 %2094 }
 0x2ab   : > { %v2180_v24 = vsel %vm2178_vm6, %v2179_v16, %v2177_v21  ;;  %v2134_v27 = vadd.f32 %v2093_v23, %v2070_v18  ;;  %v2135_v28 = vadd.f32 %v2095_v47, %v2071_v22 }
 0x2ac   : > { %v5368_v26 = vmul.f32 -1.442695, %v2180_v24 }
 0x2ad   : > { %v6097_v29 = vpop.eup %6096  ;;  %v7047_v34 = vmax.f32 %v2134_v27, 1e-08  ;;  %v7049_v25 = vmax.f32 %v2135_v28, 1e-08 }
 0x2ae   : > { %v6099_v30 = vpop.eup %6098  ;;  %6102 = vpow2.f32 %v5368_v26  ;;  %v2161_v31 = vmul.f32 %v6097_v29, %v2144_v32  ;;  %v2025_v49 = vpop.permute.xlu0 %2024 }
 0x2af   : > { %v2027_v35 = vpop.permute.xlu1 %2026  ;;  %v2182_v37 = vmul.f32 %v6099_v30, %v2147_v33  ;;  %6104 = vrsqrt.f32 %v7047_v34  ;;  %v2068_v15 = vadd.f32 %v2025_v49, %v6892_v57  ;;  %v2172_v30 = vand.u32 2147483648, %v2145_v20 }
 0x2b0   : > { %v2163_v1 = vsel %vm2162_vm7, %v2144_v32, %v2161_v31  ;;  %6106 = vrsqrt.f32 %v7049_v25  ;;  %v2069_v16 = vadd.f32 %v2027_v35, %v6896_v58  ;;  %vm2204_vm13 = vcmp.eq.f32.partialorder %v7047_v34, inf }
 0x2b1   : > { %v2166_v41 = vsel %vm2164_vm8, %v2165_v50, %v2163_v1  ;;  %v2184_v42 = vsel %vm2183_vm9, %v2147_v33, %v2182_v37  ;;  %vm2206_vm14 = vcmp.eq.f32.partialorder %v7047_v34, 0.0  ;;  %vm2211_vm15 = vcmp.eq.f32.partialorder %v7049_v25, inf }
 0x2b2   : > { %v5366_v21 = vmul.f32 -1.442695, %v2166_v41  ;;  %v2187_v18 = vsel %vm2185_vm10, %v2186_v4, %v2184_v42  ;;  %v2089_v22 = vpop.permute.xlu0 %2088  ;;  %vm2213_vm0 = vcmp.eq.f32.partialorder %v7049_v25, 0.0 }
 0x2b3   : > { %v2091_v23 = vpop.permute.xlu1 %2090  ;;  %v5369_v47 = vmul.f32 -1.442695, %v2187_v18  ;;  %v2132_v24 = vadd.f32 %v2089_v22, %v2068_v15  ;;  %v6101_v27 = vpop.eup %6100 }
 0x2b4   : > { %v2133_v26 = vadd.f32 %v2091_v23, %v2069_v16  ;;  %6108 = vpow2.f32 %v5366_v21  ;;  %v2168_v57 = vmul.f32 %v6101_v27, %v2145_v20 }
 0x2b5   : > { %v7056_v28 = vmax.f32 %v2132_v24, 1e-08  ;;  %6110 = vpow2.f32 %v5369_v47 }
 0x2b6   : > { %v7058_v29 = vmax.f32 %v2133_v26, 1e-08  ;;  %v2037_v32 = vpop.permute.xlu0 %2036  ;;  %v2170_v31 = vsel %vm2169_vm11, %v2145_v20, %v2168_v57  ;;  %v2207_v20 = vand.u32 2147483648, %v7047_v34 }
 0x2b7   : > { %v2039_v33 = vpop.permute.xlu1 %2038  ;;  %6112 = vrsqrt.f32 %v7056_v28  ;;  %v2173_v49 = vsel %vm2171_vm12, %v2172_v30, %v2170_v31  ;;  %v2074_v35 = vadd.f32 %v2037_v32, %v6914_v63  ;;  %vm2190_vm1 = vcmp.eq.f32.partialorder %v7056_v28, inf }
 0x2b8   : > { %v6103_v58 = vpop.eup %6102  ;;  %6114 = vrsqrt.f32 %v7058_v29  ;;  %v2075_v50 = vadd.f32 %v2039_v33, %v6918_v3  ;;  %v5367_v1 = vmul.f32 -1.442695, %v2173_v49  ;;  %v2214_v3 = vand.u32 2147483648, %v7049_v25 }
 0x2b9   : > { %v6105_v37 = vpop.eup %6104  ;;  %v2322_v41 = vadd.f32 1.0, %v6103_v58  ;;  %vm2192_vm2 = vcmp.eq.f32.partialorder %v7056_v28, 0.0  ;;  %vm2197_vm4 = vcmp.eq.f32.partialorder %v7058_v29, inf  ;;  %vm2199_vm5 = vcmp.eq.f32.partialorder %v7058_v29, 0.0 }
 0x2ba   : > { %v2101_v4 = vpop.permute.xlu0 %2100  ;;  %v6107_v42 = vpop.eup %6106  ;;  %v2203_v16 = vmul.f32 %v6105_v37, %v7047_v34  ;;  %6116 = vpow2.f32 %v5367_v1 }
 0x2bb   : > { %v2103_v15 = vpop.permute.xlu1 %2102  ;;  %v2138_v21 = vadd.f32 %v2101_v4, %v2074_v35  ;;  %v2210_v63 = vmul.f32 %v6107_v42, %v7049_v25  ;;  %6118 = vrcp.f32 %v2322_v41 }
 0x2bc   : > { %v2139_v18 = vadd.f32 %v2103_v15, %v2075_v50  ;;  %v2205_v22 = vsel %vm2204_vm13, %v7047_v34, %v2203_v16  ;;  %v2193_v34 = vand.u32 2147483648, %v7056_v28 }
 0x2bd   : > { %v7072_v23 = vmax.f32 %v2138_v21, 1e-08  ;;  %v2208_v24 = vsel %vm2206_vm14, %v2207_v20, %v2205_v22  ;;  %v2212_v26 = vsel %vm2211_vm15, %v7049_v25, %v2210_v63  ;;  %v2200_v20 = vand.u32 2147483648, %v7058_v29 }
 0x2be   : > { %v7074_v47 = vmax.f32 %v2139_v18, 1e-08  ;;  %v2033_v27 = vpop.permute.xlu0 %2032  ;;  %v6109_v32 = vpop.eup %6108  ;;  %v5372_v33 = vmul.f32 -1.442695, %v2208_v24  ;;  %v2215_v30 = vsel %vm2213_vm0, %v2214_v3, %v2212_v26 }
 0x2bf   : > { %v2035_v57 = vpop.permute.xlu1 %2034  ;;  %6120 = vrsqrt.f32 %v7072_v23  ;;  %v6111_v58 = vpop.eup %6110  ;;  %v5373_v31 = vmul.f32 -1.442695, %v2215_v30  ;;  %v2072_v50 = vadd.f32 %v2033_v27, %v6930_v5  ;;  %v2320_v42 = vadd.f32 1.0, %v6109_v32 }
 0x2c0   : > { %6122 = vrsqrt.f32 %v7074_v47  ;;  %v2073_v37 = vadd.f32 %v2035_v57, %v6934_v2  ;;  %v2323_v41 = vadd.f32 1.0, %v6111_v58  ;;  %vm2232_vm6 = vcmp.eq.f32.partialorder %v7072_v23, inf }
 0x2c1   : > { %v6113_v49 = vpop.eup %6112  ;;  %6124 = vpow2.f32 %v5372_v33  ;;  %vm2234_vm7 = vcmp.eq.f32.partialorder %v7072_v23, 0.0  ;;  %vm2239_vm8 = vcmp.eq.f32.partialorder %v7074_v47, inf  ;;  %vm2241_vm9 = vcmp.eq.f32.partialorder %v7074_v47, 0.0 }
 0x2c2   : > { %v6115_v25 = vpop.eup %6114  ;;  %v2189_v35 = vmul.f32 %v6113_v49, %v7056_v28  ;;  %v2097_v1 = vpop.permute.xlu0 %2096  ;;  %6126 = vpow2.f32 %v5373_v31 }
 0x2c3   : > { %v2099_v4 = vpop.permute.xlu1 %2098  ;;  %v2196_v15 = vmul.f32 %v6115_v25, %v7058_v29  ;;  %v2136_v21 = vadd.f32 %v2097_v1, %v2072_v50  ;;  %6128 = vrcp.f32 %v2323_v41 }
 0x2c4   : > { %v2191_v16 = vsel %vm2190_vm1, %v7056_v28, %v2189_v35  ;;  %v2137_v18 = vadd.f32 %v2099_v4, %v2073_v37  ;;  %v6117_v2 = vpop.eup %6116  ;;  %6130 = vrcp.f32 %v2320_v42 }
 0x2c5   : > { %v2194_v63 = vsel %vm2192_vm2, %v2193_v34, %v2191_v16  ;;  %v2198_v5 = vsel %vm2197_vm4, %v7058_v29, %v2196_v15  ;;  %v7096_v24 = vmax.f32 %v2136_v21, 1e-08  ;;  %v7098_v57 = vpop.eup %6118  ;;  %v2235_v29 = vand.u32 2147483648, %v7072_v23 }
 0x2c6   : > { %v5370_v3 = vmul.f32 -1.442695, %v2194_v63  ;;  %v2201_v22 = vsel %vm2199_vm5, %v2200_v20, %v2198_v5  ;;  %v2045_v26 = vpop.permute.xlu0 %2044  ;;  %v7100_v33 = vmax.f32 %v2137_v18, 1e-08  ;;  %2388 = vrot.lane.b32.xlu0 %v7098_v57, %s6424_s23  ;;  %v2321_v35 = vadd.f32 1.0, %v6117_v2 }
 0x2c7   : > { %v2047_v27 = vpop.permute.xlu1 %2046  ;;  %v5371_v32 = vmul.f32 -1.442695, %v2201_v22  ;;  %v2078_v30 = vadd.f32 %v2045_v26, %v6946_v8  ;;  %vm2218_vm10 = vcmp.eq.f32.partialorder %v7096_v24, inf  ;;  %vm2220_vm11 = vcmp.eq.f32.partialorder %v7096_v24, 0.0 }
 0x2c8   : > { %6132 = vpow2.f32 %v5370_v3  ;;  %v2079_v58 = vadd.f32 %v2047_v27, %v6950_v9  ;;  %v2242_v9 = vand.u32 2147483648, %v7074_v47  ;;  %vm2225_vm12 = vcmp.eq.f32.partialorder %v7100_v33, inf }
 0x2c9   : > { %v6121_v28 = vpop.eup %6120  ;;  %6134 = vpow2.f32 %v5371_v32  ;;  %vm2227_vm13 = vcmp.eq.f32.partialorder %v7100_v33, 0.0 }
 0x2ca   : > { %v6123_v31 = vpop.eup %6122  ;;  %v2231_v49 = vmul.f32 %v6121_v28, %v7072_v23  ;;  %6136 = vrsqrt.f32 %v7096_v24  ;;  %v2109_v34 = vpop.permute.xlu0 %2108  ;;  %2436 = vrot.lane.b32.xlu0 %v7098_v57, %s6425_s14  ;;  %v1304_v28 = vadd.f32 %v7033_v17, %v6756_v6  ;;  %v2221_v6 = vand.u32 2147483648, %v7096_v24 }
 0x2cb   : > { %v2111_v25 = vpop.permute.xlu1 %2110  ;;  %v6125_v50 = vpop.eup %6124  ;;  %v2238_v37 = vmul.f32 %v6123_v31, %v7074_v47  ;;  %6138 = vrsqrt.f32 %v7100_v33  ;;  %v2142_v1 = vadd.f32 %v2109_v34, %v2078_v30  ;;  %v1305_v31 = vadd.f32 %v7035_v19, %v6762_v7 }
 0x2cc   : > { %v2143_v4 = vadd.f32 %v2111_v25, %v2079_v58  ;;  %v2233_v8 = vsel %vm2232_vm6, %v7072_v23, %v2231_v49  ;;  %v2326_v15 = vadd.f32 1.0, %v6125_v50  ;;  %v6127_v41 = vpop.eup %6126  ;;  %6140 = vrcp.f32 %v2321_v35 }
 0x2cd   : > { %v2236_v42 = vsel %vm2234_vm7, %v2235_v29, %v2233_v8  ;;  %v2240_v16 = vsel %vm2239_vm8, %v7074_v47, %v2238_v37  ;;  %v7126_v20 = vmax.f32 %v2142_v1, 1e-08  ;;  %v7130_v3 = vpop.eup %6128  ;;  %v2327_v23 = vadd.f32 1.0, %v6127_v41 }
 0x2ce   : > { %v5376_v21 = vmul.f32 -1.442695, %v2236_v42  ;;  %v2243_v18 = vsel %vm2241_vm9, %v2242_v9, %v2240_v16  ;;  %v7128_v63 = vmax.f32 %v2143_v4, 1e-08  ;;  %v2041_v5 = vpop.permute.xlu0 %2040  ;;  %6142 = vrcp.f32 %v2326_v15  ;;  %2390 = vrot.lane.b32.xlu1 %v7130_v3, %s6424_s23  ;;  %v7135_v47 = vpop.eup %6130 }
 0x2cf   : > { %v2043_v2 = vpop.permute.xlu1 %2042  ;;  %v5377_v22 = vmul.f32 -1.442695, %v2243_v18  ;;  %6144 = vrsqrt.f32 %v7126_v20  ;;  %v2076_v26 = vadd.f32 %v2041_v5, %v6962_v10  ;;  %2384 = vrot.lane.b32.xlu0 %v7135_v47, %s6424_s23  ;;  %v2228_v9 = vand.u32 2147483648, %v7100_v33 }
 0x2d0   : > { %6146 = vpow2.f32 %v5376_v21  ;;  %v2077_v27 = vadd.f32 %v2043_v2, %v6966_v11  ;;  %vm2260_vm14 = vcmp.eq.f32.partialorder %v7126_v20, inf  ;;  %vm2262_vm15 = vcmp.eq.f32.partialorder %v7126_v20, 0.0 }
 0x2d1   : > { %6148 = vpow2.f32 %v5377_v22  ;;  %v2263_v5 = vand.u32 2147483648, %v7126_v20  ;;  %vm2267_vm0 = vcmp.eq.f32.partialorder %v7128_v63, inf  ;;  %vm2269_vm1 = vcmp.eq.f32.partialorder %v7128_v63, 0.0 }
 0x2d2   : > { %v6133_v32 = vpop.eup %6132  ;;  %6150 = vrsqrt.f32 %v7128_v63  ;;  %v2105_v29 = vpop.permute.xlu0 %2104  ;;  %2438 = vrot.lane.b32.xlu1 %v7130_v3, %s6425_s14 }
 0x2d3   : > { %v2107_v30 = vpop.permute.xlu1 %2106  ;;  %v6135_v58 = vpop.eup %6134  ;;  %v2140_v49 = vadd.f32 %v2105_v29, %v2076_v26  ;;  %v2324_v10 = vadd.f32 1.0, %v6133_v32  ;;  %6152 = vrcp.f32 %v2327_v23  ;;  %2432 = vrot.lane.b32.xlu0 %v7135_v47, %s6425_s14 }
 0x2d4   : > { %v2141_v34 = vadd.f32 %v2107_v30, %v2077_v27  ;;  %v6137_v25 = vpop.eup %6136  ;;  %v2325_v1 = vadd.f32 1.0, %v6135_v58 }
 0x2d5   : > { %v6139_v11 = vpop.eup %6138  ;;  %v2217_v17 = vmul.f32 %v6137_v25, %v7096_v24  ;;  %v7152_v35 = vmax.f32 %v2140_v49, 1e-08  ;;  %6154 = vrcp.f32 %v2324_v10 }
 0x2d6   : > { %v7154_v7 = vmax.f32 %v2141_v34, 1e-08  ;;  %v2224_v19 = vmul.f32 %v6139_v11, %v7100_v33  ;;  %v1269_v50 = vpop.permute.xlu0 %1268  ;;  %v7161_v4 = vpop.eup %6140  ;;  %v2270_v11 = vand.u32 2147483648, %v7128_v63 }
 0x2d7   : > { %v1271_v37 = vpop.permute.xlu1 %1270  ;;  %v2219_v8 = vsel %vm2218_vm10, %v7096_v24, %v2217_v17  ;;  %6156 = vrsqrt.f32 %v7152_v35  ;;  %2386 = vrot.lane.b32.xlu1 %v7161_v4, %s6424_s23  ;;  %vm2246_vm2 = vcmp.eq.f32.partialorder %v7152_v35, inf  ;;  %vm2248_vm4 = vcmp.eq.f32.partialorder %v7152_v35, 0.0 }
 0x2d8   : > { %v7169_v15 = vpop.eup %6142  ;;  %v2222_v41 = vsel %vm2220_vm11, %v2221_v6, %v2219_v8  ;;  %v2226_v42 = vsel %vm2225_vm12, %v7100_v33, %v2224_v19  ;;  %6158 = vrsqrt.f32 %v7154_v7  ;;  %v1306_v33 = vadd.f32 %v1269_v50, %v6978_v12 }
 0x2d9   : > { %v6145_v16 = vpop.eup %6144  ;;  %v5374_v21 = vmul.f32 -1.442695, %v2222_v41  ;;  %v2229_v18 = vsel %vm2227_vm13, %v2228_v9, %v2226_v42  ;;  %2396 = vrot.lane.b32.xlu0 %v7169_v15, %s6424_s23  ;;  %6160 = vrcp.f32 %v2325_v1  ;;  %v1307_v49 = vadd.f32 %v1271_v37, %v6982_v13 }
 0x2da   : > { %v6147_v24 = vpop.eup %6146  ;;  %v5375_v2 = vmul.f32 -1.442695, %v2229_v18  ;;  %v2259_v22 = vmul.f32 %v6145_v16, %v7126_v20  ;;  %v1329_v23 = vpop.permute.xlu0 %1328  ;;  %vm2253_vm5 = vcmp.eq.f32.partialorder %v7154_v7, inf  ;;  %vm2255_vm6 = vcmp.eq.f32.partialorder %v7154_v7, 0.0 }
 0x2db   : > { %v1331_v26 = vpop.permute.xlu1 %1330  ;;  %v6149_v27 = vpop.eup %6148  ;;  %6162 = vpow2.f32 %v5374_v21  ;;  %v1368_v32 = vadd.f32 %v1329_v23, %v1304_v28  ;;  %2434 = vrot.lane.b32.xlu1 %v7161_v4, %s6425_s14  ;;  %v2330_v34 = vadd.f32 1.0, %v6147_v24  ;;  %v2249_v24 = vand.u32 2147483648, %v7152_v35 }
 0x2dc   : > { %v1369_v29 = vadd.f32 %v1331_v26, %v1305_v31  ;;  %v6151_v30 = vpop.eup %6150  ;;  %6164 = vpow2.f32 %v5375_v2  ;;  %v2261_v58 = vsel %vm2260_vm14, %v7126_v20, %v2259_v22  ;;  %v2331_v19 = vadd.f32 1.0, %v6149_v27 }
 0x2dd   : > { %v2264_v10 = vsel %vm2262_vm15, %v2263_v5, %v2261_v58  ;;  %v2266_v25 = vmul.f32 %v6151_v30, %v7128_v63  ;;  %v7196_v12 = vmax.f32 %v1368_v32, 1e-08  ;;  %v7200_v31 = vpop.eup %6152  ;;  %2444 = vrot.lane.b32.xlu0 %v7169_v15, %s6425_s14  ;;  %6166 = vrcp.f32 %v2330_v34 }
 0x2de   : > { %v7198_v28 = vmax.f32 %v1369_v29, 1e-08  ;;  %v5380_v6 = vmul.f32 -1.442695, %v2264_v10  ;;  %v1333_v13 = vpop.permute.xlu0 %1332  ;;  %v2256_v26 = vand.u32 2147483648, %v7154_v7 }
 0x2df   : > { %v1335_v17 = vpop.permute.xlu1 %1334  ;;  %v7205_v20 = vpop.eup %6154  ;;  %v2268_v50 = vsel %vm2267_vm0, %v7128_v63, %v2266_v25  ;;  %6168 = vrsqrt.f32 %v7196_v12  ;;  %v1370_v37 = vadd.f32 %v1333_v13, %v1306_v33  ;;  %2398 = vrot.lane.b32.xlu1 %v7200_v31, %s6424_s23  ;;  %vm1450_vm7 = vcmp.eq.f32.partialorder %v7196_v12, inf }
 0x2e0   : > { %v1371_v1 = vadd.f32 %v1335_v17, %v1307_v49  ;;  %6170 = vpow2.f32 %v5380_v6  ;;  %v2271_v8 = vsel %vm2269_vm1, %v2270_v11, %v2268_v50  ;;  %vm1452_vm8 = vcmp.eq.f32.partialorder %v7196_v12, 0.0 }
 0x2e1   : > { %v6157_v9 = vpop.eup %6156  ;;  %v5381_v41 = vmul.f32 -1.442695, %v2271_v8  ;;  %6172 = vrsqrt.f32 %v7198_v28  ;;  %v7216_v42 = vmax.f32 %v1370_v37, 1e-08  ;;  %2392 = vrot.lane.b32.xlu0 %v7205_v20, %s6424_s23  ;;  %v1453_v6 = vand.u32 2147483648, %v7196_v12 }
 0x2e2   : > { %v7218_v16 = vmax.f32 %v1371_v1, 1e-08  ;;  %v6159_v21 = vpop.eup %6158  ;;  %v2245_v18 = vmul.f32 %v6157_v9, %v7152_v35  ;;  %v1273_v63 = vpop.permute.xlu0 %1272  ;;  %6174 = vrcp.f32 %v2331_v19  ;;  %vm1457_vm9 = vcmp.eq.f32.partialorder %v7198_v28, inf }
 0x2e3   : > { %v1275_v5 = vpop.permute.xlu1 %1274  ;;  %6176 = vpow2.f32 %v5381_v41  ;;  %v2252_v2 = vmul.f32 %v6159_v21, %v7154_v7  ;;  %v7227_v22 = vpop.eup %6160  ;;  %2446 = vrot.lane.b32.xlu1 %v7200_v31, %s6425_s14  ;;  %vm1459_vm10 = vcmp.eq.f32.partialorder %v7198_v28, 0.0  ;;  %v1460_v1 = vand.u32 2147483648, %v7198_v28 }
 0x2e4   : > { %v2247_v23 = vsel %vm2246_vm2, %v7152_v35, %v2245_v18  ;;  %6178 = vrsqrt.f32 %v7216_v42  ;;  %v1309_v13 = vadd.f32 %v1275_v5, %v7002_v55  ;;  %vm1464_vm11 = vcmp.eq.f32.partialorder %v7216_v42, inf }
 0x2e5   : > { %v6163_v27 = vpop.eup %6162  ;;  %v2250_v33 = vsel %vm2248_vm4, %v2249_v24, %v2247_v23  ;;  %v2254_v32 = vsel %vm2253_vm5, %v7154_v7, %v2252_v2  ;;  %6180 = vrsqrt.f32 %v7218_v16  ;;  %2440 = vrot.lane.b32.xlu0 %v7205_v20, %s6425_s14  ;;  %v1308_v7 = vadd.f32 %v1273_v63, %v6998_v52 }
 0x2e6   : > { %v6165_v29 = vpop.eup %6164  ;;  %v5378_v30 = vmul.f32 -1.442695, %v2250_v33  ;;  %v2257_v35 = vsel %vm2255_vm6, %v2256_v26, %v2254_v32  ;;  %v1277_v58 = vpop.permute.xlu0 %1276  ;;  %v2328_v34 = vadd.f32 1.0, %v6163_v27  ;;  %vm1466_vm12 = vcmp.eq.f32.partialorder %v7216_v42, 0.0 }
 0x2e7   : > { %v1279_v49 = vpop.permute.xlu1 %1278  ;;  %v5379_v10 = vmul.f32 -1.442695, %v2257_v35  ;;  %v7242_v25 = vpop.eup %6166  ;;  %2394 = vrot.lane.b32.xlu1 %v7227_v22, %s6424_s23  ;;  %v2329_v17 = vadd.f32 1.0, %v6165_v29  ;;  %v1310_v18 = vadd.f32 %v1277_v58, %v7010_v14  ;;  %v1467_v29 = vand.u32 2147483648, %v7216_v42 }
 0x2e8   : > { %6182 = vpow2.f32 %v5378_v30  ;;  %v1311_v63 = vadd.f32 %v1279_v49, %v7014_v0  ;;  %vm1471_vm13 = vcmp.eq.f32.partialorder %v7218_v16, inf  ;;  %vm1473_vm14 = vcmp.eq.f32.partialorder %v7218_v16, 0.0 }
 0x2e9   : > { %v6169_v11 = vpop.eup %6168  ;;  %6184 = vpow2.f32 %v5379_v10  ;;  %2404 = vrot.lane.b32.xlu0 %v7242_v25, %s6424_s23 }
 0x2ea   : > { %v6171_v19 = vpop.eup %6170  ;;  %v1337_v50 = vpop.permute.xlu0 %1336  ;;  %6186 = vrcp.f32 %v2328_v34  ;;  %v1449_v37 = vmul.f32 %v6169_v11, %v7196_v12 }
 0x2eb   : > { %v1339_v52 = vpop.permute.xlu1 %1338  ;;  %v6173_v8 = vpop.eup %6172  ;;  %v1372_v9 = vadd.f32 %v1337_v50, %v1308_v7  ;;  %v2334_v55 = vadd.f32 1.0, %v6171_v19  ;;  %2442 = vrot.lane.b32.xlu1 %v7227_v22, %s6425_s14  ;;  %6188 = vrcp.f32 %v2329_v17 }
 0x2ec   : > { %v1373_v41 = vadd.f32 %v1339_v52, %v1309_v13  ;;  %v7257_v21 = vpop.eup %6174  ;;  %v1451_v5 = vsel %vm1450_vm7, %v7196_v12, %v1449_v37  ;;  %v1456_v24 = vmul.f32 %v6173_v8, %v7198_v28  ;;  %v1474_v13 = vand.u32 2147483648, %v7218_v16 }
 0x2ed   : > { %v6177_v2 = vpop.eup %6176  ;;  %v7267_v23 = vmax.f32 %v1372_v9, 1e-08  ;;  %v1454_v27 = vsel %vm1452_vm8, %v1453_v6, %v1451_v5  ;;  %2452 = vrot.lane.b32.xlu0 %v7242_v25, %s6425_s14  ;;  %6190 = vrcp.f32 %v2334_v55  ;;  %vm1685_vm8 = vcmask 654336  }
 0x2ee   : > { %v7269_v26 = vmax.f32 %v1373_v41, 1e-08  ;;  %v6179_v14 = vpop.eup %6178  ;;  %v1341_v0 = vpop.permute.xlu0 %1340  ;;  %v1458_v32 = vsel %vm1457_vm9, %v7198_v28, %v1456_v24  ;;  %v2335_v30 = vadd.f32 1.0, %v6177_v2  ;;  %vm2480_vm9 = vcmask 64512  }
 0x2ef   : > { %v1343_v33 = vpop.permute.xlu1 %1342  ;;  %v6181_v35 = vpop.eup %6180  ;;  %6192 = vrsqrt.f32 %v7267_v23  ;;  %v1374_v12 = vadd.f32 %v1341_v0, %v1310_v18  ;;  %v1461_v49 = vsel %vm1459_vm10, %v1460_v1, %v1458_v32  ;;  %2406 = vrot.lane.b32.xlu1 %v7257_v21, %s6424_s23  ;;  %v1463_v10 = vmul.f32 %v6179_v14, %v7216_v42 }
 0x2f0   : > { %v1375_v58 = vadd.f32 %v1343_v33, %v1311_v63  ;;  %6194 = vrsqrt.f32 %v7269_v26  ;;  %v1516_v34 = vpack.c.bf16 %v1461_v49, %v1454_v27  ;;  %v1470_v7 = vmul.f32 %v6181_v35, %v7218_v16 }
 0x2f1   : > { %v7287_v6 = vmax.f32 %v1374_v12, 1e-08  ;;  %v1465_v17 = vsel %vm1464_vm11, %v7216_v42, %v1463_v10  ;;  %6196 = vrcp.f32 %v2335_v30  ;;  %vm1478_vm15 = vcmp.eq.f32.partialorder %v7267_v23, inf  ;;  %v998_v10 = vld [vmem:[%s6558_s1 + $0x8] sm:$0xff] }
 0x2f2   : > { %v7289_v11 = vmax.f32 %v1375_v58, 1e-08  ;;  %v6183_v28 = vpop.eup %6182  ;;  %5688 = vmatprep.mubr.msk.bf16.mxu1 %vm1529_vm3, %v1516_v34  ;;  %v1472_v19 = vsel %vm1471_vm13, %v7218_v16, %v1470_v7  ;;  %v1468_v52 = vsel %vm1466_vm12, %v1467_v29, %v1465_v17  ;;  %v1481_v5 = vand.u32 2147483648, %v7267_v23  ;;  %v997_v34 = vld [vmem:[%s6558_s1] sm:$0xff] }
 0x2f3   : > { %v6185_v50 = vpop.eup %6184  ;;  %6198 = vrsqrt.f32 %v7287_v6  ;;  %v1475_v37 = vsel %vm1473_vm14, %v1474_v13, %v1472_v19  ;;  %v2332_v1 = vadd.f32 1.0, %v6183_v28  ;;  %2454 = vrot.lane.b32.xlu1 %v7257_v21, %s6425_s14  ;;  %vm1480_vm0 = vcmp.eq.f32.partialorder %v7267_v23, 0.0 }
 0x2f4   : > { %v7302_v8 = vpop.eup %6186  ;;  %6200 = vrsqrt.f32 %v7289_v11  ;;  %v1517_v9 = vpack.c.bf16 %v1475_v37, %v1468_v52  ;;  %v2333_v41 = vadd.f32 1.0, %v6185_v50  ;;  %vm1485_vm1 = vcmp.eq.f32.partialorder %v7269_v26, inf  ;;  %v999_v52 = vld [vmem:[%s6558_s1 + $0x10] sm:$0xff]  ;;  %v1001_v37 = vld [vmem:[%s6558_s1 + $0x20] sm:$0xff] }
 0x2f5   : > { %2400 = vrot.lane.b32.xlu0 %v7302_v8, %s6424_s23  ;;  %6202 = vrcp.f32 %v2332_v1  ;;  %v7310_v16 = vpop.eup %6188  ;;  %v1488_v14 = vand.u32 2147483648, %v7269_v26  ;;  %vm1487_vm2 = vcmp.eq.f32.partialorder %v7269_v26, 0.0  ;;  %vm1492_vm4 = vcmp.eq.f32.partialorder %v7287_v6, inf  ;;  %v1002_v1 = vld [vmem:[%s6558_s1 + $0x28] sm:$0xff] }
 0x2f6   : > { %5689 = vmatmul.mubr.msk.bf16.gmra.mrb[8].mxu1 %vm1529_vm3, %v1517_v9  ;;  %6204 = vrcp.f32 %v2333_v41  ;;  %v1495_v58 = vand.u32 2147483648, %v7287_v6  ;;  %vm1494_vm5 = vcmp.eq.f32.partialorder %v7287_v6, 0.0  ;;  %vm1499_vm6 = vcmp.eq.f32.partialorder %v7289_v11, inf }
 0x2f7   : > { %v7312_v42 = vpop.eup %6190  ;;  %2402 = vrot.lane.b32.xlu1 %v7310_v16, %s6424_s23  ;;  %v1502_v7 = vand.u32 2147483648, %v7289_v11  ;;  %vm1501_vm7 = vcmp.eq.f32.partialorder %v7289_v11, 0.0  ;;  %v1504_v19 = vpack.c.bf16 %v998_v10, %v997_v34  ;;  %v1506_v41 = vpack.c.bf16 %v1002_v1, %v1001_v37 }
 0x2f8   : > { %vm2497_vm10 = vcmask 130048   ;;  %vm2575_vm11 = vcmask 195584  }
 0x2f9   : > { %v6193_v55 = vpop.eup %6192  ;;  %2448 = vrot.lane.b32.xlu0 %v7302_v8, %s6425_s14 }
 0x2fa   : > { %v6195_v18 = vpop.eup %6194  ;;  %v1477_v63 = vmul.f32 %v6193_v55, %v7267_v23  ;;  %v6067_v55 = vld [vmem:[%s6603_s0 + $0x8] ss:$0 sps:$4 sm:$0xff]  }
 0x2fb   : > { %v1484_v24 = vmul.f32 %v6195_v18, %v7269_v26  ;;  %v7322_v2 = vpop.eup %6196  ;;  %2450 = vrot.lane.b32.xlu1 %v7310_v16, %s6425_s14  ;;  %v1003_v18 = vld [vmem:[%s6558_s1 + $0x30] sm:$0xff] }
 0x2fc   : > { %v1479_v27 = vsel %vm1478_vm15, %v7267_v23, %v1477_v63  ;;  %v1004_v63 = vld [vmem:[%s6558_s1 + $0x38] sm:$0xff] }
 0x2fd   : > { %v6199_v0 = vpop.eup %6198  ;;  %2412 = vrot.lane.b32.xlu0 %v7312_v42, %s6424_s23  ;;  %v1482_v33 = vsel %vm1480_vm0, %v1481_v5, %v1479_v27  ;;  %v1486_v32 = vsel %vm1485_vm1, %v7269_v26, %v1484_v24  ;;  %v1005_v5 = vld [vmem:[%s6558_s1 + $0x40] sm:$0xff]  ;;  %v1006_v24 = vld [vmem:[%s6558_s1 + $0x48] sm:$0xff] }
 0x2fe   : > { %v6201_v29 = vpop.eup %6200  ;;  %v1489_v30 = vsel %vm1487_vm2, %v1488_v14, %v1486_v32  ;;  %v1491_v35 = vmul.f32 %v6199_v0, %v7287_v6  ;;  %v1507_v14 = vpack.c.bf16 %v1004_v63, %v1003_v18  ;;  %v1508_v0 = vpack.c.bf16 %v1006_v24, %v1005_v5  ;;  %v1008_v32 = vld [vmem:[%s6558_s1 + $0x58] sm:$0xff] }
 0x2ff   : > { %v7335_v23 = vpop.eup %6202  ;;  %v1518_v12 = vpack.c.bf16 %v1489_v30, %v1482_v33  ;;  %v1498_v49 = vmul.f32 %v6201_v29, %v7289_v11  ;;  %2414 = vrot.lane.b32.xlu1 %v7322_v2, %s6424_s23  ;;  %v1007_v33 = vld [vmem:[%s6558_s1 + $0x50] sm:$0xff]  ;;  %v1009_v29 = vld [vmem:[%s6558_s1 + $0x60] sm:$0xff]  ;;  %v1010_v30 = vld [vmem:[%s6558_s1 + $0x68] sm:$0xff] }
 0x300   : > { %v1493_v26 = vsel %vm1492_vm4, %v7287_v6, %v1491_v35  ;;  %v7348_v13 = vpop.eup %6204  ;;  %v1510_v35 = vpack.c.bf16 %v1010_v30, %v1009_v29 }
 0x301   : > { %2408 = vrot.lane.b32.xlu0 %v7335_v23, %s6424_s23  ;;  %5692 = vmatprep.mubr.msk.bf16.mxu1 %vm1529_vm3, %v1518_v12  ;;  %v1496_v28 = vsel %vm1494_vm5, %v1495_v58, %v1493_v26  ;;  %v1500_v17 = vsel %vm1499_vm6, %v7289_v11, %v1498_v49  ;;  %v1000_v11 = vld [vmem:[%s6558_s1 + $0x18] sm:$0xff]  ;;  %v1011_v12 = vld [vmem:[%s6558_s1 + $0x70] sm:$0xff] }
 0x302   : > { %v1503_v6 = vsel %vm1501_vm7, %v1502_v7, %v1500_v17  ;;  %v1505_v9 = vpack.c.bf16 %v1000_v11, %v999_v52  ;;  %v1012_v58 = vld [vmem:[%s6558_s1 + $0x78] sm:$0xff] }
 0x303   : > { %v1519_v50 = vpack.c.bf16 %v1503_v6, %v1496_v28  ;;  %2410 = vrot.lane.b32.xlu1 %v7348_v13, %s6424_s23  ;;  %v1511_v49 = vpack.c.bf16 %v1012_v58, %v1011_v12 }
 0x305   : > { %2456 = vrot.lane.b32.xlu0 %v7335_v23, %s6425_s14  ;;  %5693 = vmatmul.mubr.msk.bf16.gmra.mrb[12].mxu1 %vm1529_vm3, %v1519_v50  ;;  %vm2600_vm3 = vcmask 1043456  }
 0x306   : > { %5706 = vmatprep.mubr.msk.bf16.mxu1 %vm1685_vm8, %v1504_v19  ;;  %v2602_v27 = vsel %vm2600_vm3, %v6067_v55, 0 }
 0x307   : > { %2458 = vrot.lane.b32.xlu1 %v7348_v13, %s6425_s14 }
 0x309   : > { %2460 = vrot.lane.b32.xlu0 %v7312_v42, %s6425_s14 }
 0x30b   : > { %2462 = vrot.lane.b32.xlu1 %v7322_v2, %s6425_s14 }
 0x30d   : > { %5707 = vmatmul.mubr.msk.bf16.vlgmr.msra.gmra.mrb[0].mxu1 %vm1685_vm8, %v1505_v9 }
 0x30e   : > { %5710 = vmatprep.mubr.msk.bf16.mxu1 %vm1685_vm8, %v1506_v41  ;;  %5747 = vmatpush3.bf16.msra.mxu1 %v7042_v62  ;;  %v1509_v62 = vpack.c.bf16 %v1008_v32, %v1007_v33 }
 0x30f   : > { %5973 = vmatprep.subr.msk.bf16.mxu1 %vm2600_vm3, %v6067_v55 }
 0x312   : > { %5749 = vmatpush3.bf16.msra.mxu1 %v2602_v27 }
 0x315   : > { %5711 = vmatmul.mubr.msk.bf16.gmra.mrb[4].mxu1 %vm1685_vm8, %v1507_v14 }
 0x316   : > { %5714 = vmatprep.mubr.msk.bf16.mxu1 %vm1685_vm8, %v1508_v0 }
 0x31d   : > { %5715 = vmatmul.mubr.msk.bf16.gmra.mrb[8].mxu1 %vm1685_vm8, %v1509_v62 }
 0x31e   : > { %5718 = vmatprep.mubr.msk.bf16.mxu1 %vm1685_vm8, %v1510_v35 }
 0x325   : > { %5719 = vmatmul.mubr.msk.bf16.gmra.mrb[12].mxu1 %vm1685_vm8, %v1511_v49 }
 0x338   : > { %v2389_v34 = vpop.permute.xlu0 %2388 }
 0x339   : > { %v2483_v7 = vsel %vm2480_vm9, %v7098_v57, %v2389_v34 }
 0x33c   : > { %v2437_v10 = vpop.permute.xlu0 %2436 }
 0x33d   : > { %v2500_v17 = vsel %vm2497_vm10, %v2483_v7, %v2437_v10 }
 0x33e   : > { %v2516_v52 = vmul.f32 %v6816_v36, %v2500_v17 }
 0x340   : > { %v2391_v26 = vpop.permute.xlu1 %2390 }
 0x341   : > { %v2385_v28 = vpop.permute.xlu0 %2384  ;;  %v2484_v6 = vsel %vm2480_vm9, %v7130_v3, %v2391_v26 }
 0x342   : > { %v2481_v41 = vsel %vm2480_vm9, %v7135_v47, %v2385_v28 }
 0x344   : > { %v2439_v19 = vpop.permute.xlu1 %2438 }
 0x345   : > { %v2501_v50 = vsel %vm2497_vm10, %v2484_v6, %v2439_v19  ;;  %v2433_v37 = vpop.permute.xlu0 %2432 }
 0x346   : > { %v2517_v11 = vmul.f32 %v6824_v39, %v2501_v50  ;;  %v2498_v55 = vsel %vm2497_vm10, %v2481_v41, %v2433_v37 }
 0x347   : > { %v2514_v5 = vmul.f32 %v2498_v55, %v6822_v38 }
 0x348   : > { %v2559_v1 = vpack.c.bf16 %v2517_v11, %v2516_v52 }
 0x349   : > { %v2387_v9 = vpop.permute.xlu1 %2386 }
 0x34a   : > { %v2482_v18 = vsel %vm2480_vm9, %v7161_v4, %v2387_v9 }
 0x34b   : > { %v2397_v57 = vpop.permute.xlu0 %2396 }
 0x34c   : > { %v2487_v47 = vsel %vm2480_vm9, %v7169_v15, %v2397_v57 }
 0x34d   : > { %v2435_v3 = vpop.permute.xlu1 %2434 }
 0x34e   : > { %v2499_v63 = vsel %vm2497_vm10, %v2482_v18, %v2435_v3 }
 0x34f   : > { %v2515_v36 = vmul.f32 %v2499_v63, %v6830_v40  ;;  %v2445_v39 = vpop.permute.xlu0 %2444 }
 0x350   : > { %v2504_v0 = vsel %vm2497_vm10, %v2487_v47, %v2445_v39 }
 0x351   : > { %v2558_v24 = vpack.c.bf16 %v2515_v36, %v2514_v5  ;;  %v2399_v27 = vpop.permute.xlu1 %2398  ;;  %v2520_v33 = vmul.f32 %v6844_v43, %v2504_v0 }
 0x352   : > { %v2488_v4 = vsel %vm2480_vm9, %v7200_v31, %v2399_v27 }
 0x353   : > { %5750 = vmatprep.mubr.msk.bf16.mxu1 %vm2575_vm11, %v2558_v24  ;;  %v2393_v14 = vpop.permute.xlu0 %2392 }
 0x354   : > { %5751 = vmatmul.mubr.msk.bf16.vlgmr.msra.gmra.mrb[16].mxu1 %vm2575_vm11, %v2559_v1  ;;  %v2485_v62 = vsel %vm2480_vm9, %v7205_v20, %v2393_v14 }
 0x355   : > { %v2447_v38 = vpop.permute.xlu1 %2446 }
 0x356   : > { %v2505_v40 = vsel %vm2497_vm10, %v2488_v4, %v2447_v38  ;;  %v6069_v4 = vld [vmem:[%s6626_s9 + $0x8] ss:$0 sps:$4 sm:$0xff]  }
 0x357   : > { %v2521_v32 = vmul.f32 %v6848_v45, %v2505_v40  ;;  %v2441_v29 = vpop.permute.xlu0 %2440 }
 0x358   : > { %v2502_v12 = vsel %vm2497_vm10, %v2485_v62, %v2441_v29 }
 0x359   : > { %v2561_v30 = vpack.c.bf16 %v2521_v32, %v2520_v33  ;;  %v2395_v15 = vpop.permute.xlu1 %2394  ;;  %v2518_v34 = vmul.f32 %v2502_v12, %v6846_v44 }
 0x35a   : > { %v2486_v58 = vsel %vm2480_vm9, %v7227_v22, %v2395_v15 }
 0x35b   : > { %v2405_v35 = vpop.permute.xlu0 %2404 }
 0x35c   : > { %v2491_v7 = vsel %vm2480_vm9, %v7242_v25, %v2405_v35 }
 0x35d   : > { %v2443_v31 = vpop.permute.xlu1 %2442 }
 0x35e   : > { %v2503_v49 = vsel %vm2497_vm10, %v2486_v58, %v2443_v31 }
 0x35f   : > { %v2519_v43 = vmul.f32 %v2503_v49, %v6854_v46  ;;  %v2453_v45 = vpop.permute.xlu0 %2452 }
 0x360   : > { %v2508_v20 = vsel %vm2497_vm10, %v2491_v7, %v2453_v45 }
 0x361   : > { %v2560_v10 = vpack.c.bf16 %v2519_v43, %v2518_v34  ;;  %v2407_v26 = vpop.permute.xlu1 %2406  ;;  %v2524_v46 = vmul.f32 %v6864_v48, %v2508_v20 }
 0x362   : > { %v2492_v22 = vsel %vm2480_vm9, %v7257_v21, %v2407_v26 }
 0x363   : > { %5754 = vmatprep.mubr.msk.bf16.mxu1 %vm2575_vm11, %v2560_v10 }
 0x364   : > { %5755 = vmatmul.mubr.msk.bf16.gmra.mrb[20].mxu1 %vm2575_vm11, %v2561_v30 }
 0x365   : > { %v2455_v28 = vpop.permute.xlu1 %2454 }
 0x366   : > { %v2509_v44 = vsel %vm2497_vm10, %v2492_v22, %v2455_v28 }
 0x367   : > { %v2401_v17 = vpop.permute.xlu0 %2400  ;;  %v2525_v6 = vmul.f32 %v6876_v53, %v2509_v44 }
 0x368   : > { %v2489_v52 = vsel %vm2480_vm9, %v7302_v8, %v2401_v17 }
 0x369   : > { %v2563_v19 = vpack.c.bf16 %v2525_v6, %v2524_v46  ;;  %v2403_v50 = vpop.permute.xlu1 %2402 }
 0x36a   : > { %v2490_v37 = vsel %vm2480_vm9, %v7310_v16, %v2403_v50 }
 0x36b   : > { %v2449_v25 = vpop.permute.xlu0 %2448 }
 0x36c   : > { %v2506_v11 = vsel %vm2497_vm10, %v2489_v52, %v2449_v25 }
 0x36d   : > { %v2451_v21 = vpop.permute.xlu1 %2450  ;;  %v2522_v41 = vmul.f32 %v2506_v11, %v6874_v51 }
 0x36e   : > { %v2507_v9 = vsel %vm2497_vm10, %v2490_v37, %v2451_v21 }
 0x36f   : > { %v2413_v1 = vpop.permute.xlu0 %2412  ;;  %v2523_v48 = vmul.f32 %v2507_v9, %v6882_v54 }
 0x370   : > { %v2495_v5 = vsel %vm2480_vm9, %v7312_v42, %v2413_v1  ;;  %v6068_v42 = vld [vmem:[%s6626_s9] sm:$0xff]  }
 0x371   : > { %v2562_v53 = vpack.c.bf16 %v2523_v48, %v2522_v41  ;;  %v2415_v57 = vpop.permute.xlu1 %2414  ;;  %5804 = vmatprep.subr.bf16.mxu1 %v6068_v42 }
 0x372   : > { %v2496_v27 = vsel %vm2480_vm9, %v7322_v2, %v2415_v57  ;;  %5805 = vmatpush3.bf16.msra.mxu1 %v6068_v42 }
 0x373   : > { %v2409_v55 = vpop.permute.xlu0 %2408  ;;  %5758 = vmatprep.mubr.msk.bf16.mxu1 %vm2575_vm11, %v2562_v53  ;;  %5975 = vmatprep.subr.msk.bf16.mxu1 %vm2600_vm3, %v6069_v4 }
 0x374   : > { %5759 = vmatmul.mubr.msk.bf16.gmra.mrb[24].mxu1 %vm2575_vm11, %v2563_v19  ;;  %v2493_v18 = vsel %vm2480_vm9, %v7335_v23, %v2409_v55 }
 0x375   : > { %v2411_v8 = vpop.permute.xlu1 %2410 }
 0x376   : > { %v2494_v51 = vsel %vm2480_vm9, %v7348_v13, %v2411_v8 }
 0x377   : > { %v2457_v16 = vpop.permute.xlu0 %2456 }
 0x378   : > { %v2510_v3 = vsel %vm2497_vm10, %v2493_v18, %v2457_v16 }
 0x379   : > { %v2526_v54 = vmul.f32 %v2510_v3, %v6898_v59  ;;  %v2459_v63 = vpop.permute.xlu1 %2458 }
 0x37a   : > { %v2511_v36 = vsel %vm2497_vm10, %v2494_v51, %v2459_v63 }
 0x37b   : > { %v2461_v39 = vpop.permute.xlu0 %2460  ;;  %v2527_v24 = vmul.f32 %v2511_v36, %v6906_v61  ;;  %v3327_v61 = vsel %vm2600_vm3, %v6069_v4, 0 }
 0x37c   : > { %v2512_v23 = vsel %vm2497_vm10, %v2495_v5, %v2461_v39  ;;  %5807 = vmatpush3.bf16.msra.mxu1 %v3327_v61 }
 0x37d   : > { %v2564_v47 = vpack.c.bf16 %v2527_v24, %v2526_v54  ;;  %v2528_v13 = vmul.f32 %v6888_v56, %v2512_v23  ;;  %v2463_v14 = vpop.permute.xlu1 %2462  ;;  %v5353_v56 = vld [vmem:[%s8731_s8] ss:$0 sm:$0xff] }
 0x37e   : > { %v2513_v59 = vsel %vm2497_vm10, %v2496_v27, %v2463_v14 }
 0x37f   : > { %v2529_v0 = vmul.f32 %v6900_v60, %v2513_v59  ;;  %5762 = vmatprep.mubr.msk.bf16.mxu1 %vm2575_vm11, %v2564_v47 }
 0x381   : > { %v2565_v38 = vpack.c.bf16 %v2529_v0, %v2528_v13 }
 0x383   : > { %5763 = vmatmul.mubr.msk.bf16.gmra.mrb[28].mxu1 %vm2575_vm11, %v2565_v38 }
 0x3e0   : > { %v5708_v60 = vpop.f32.mrb[0].mxu1 }
 0x3e1   : > { %v1815_v2 = vadd.f32 %v5708_v60, %v5353_v56  ;;  %v1744_v40 = vpop.f32.mrb[1].mxu1 }
 0x3e2   : > { %v1813_v33 = vadd.f32 %v5353_v56, %v1744_v40  ;;  %v5709_v32 = vpop.f32.mrb[2].mxu1 }
 0x3e3   : > { %v1816_v29 = vadd.f32 %v5709_v32, %v5353_v56  ;;  %v1747_v30 = vpop.f32.mrb[3].mxu1  ;;  %v2532_v62 = vmax.f32 %v1815_v2, 0.0 }
 0x3e4   : > { %v1814_v15 = vadd.f32 %v5353_v56, %v1747_v30  ;;  %v2530_v12 = vmax.f32 %v1813_v33, 0.0 }
 0x3e5   : > { %v2533_v35 = vmax.f32 %v1816_v29, 0.0 }
 0x3e6   : > { %v2531_v58 = vmax.f32 %v1814_v15, 0.0 }
 0x3e7   : > { %v7473_v31 = vpack.c.bf16 %v2533_v35, %v2532_v62 }
 0x3e8   : > { %v7475_v49 = vpack.c.bf16 %v2531_v58, %v2530_v12  ;;  %v5712_v34 = vpop.f32.mrb[4].mxu1 }
 0x3e9   : > { %8732 = vst [vmem:[#allocation11_spill] sm:$0xff] %v7473_v31  ;;  %v1819_v43 = vadd.f32 %v5712_v34, %v5353_v56  ;;  %v1760_v45 = vpop.f32.mrb[5].mxu1 }
 0x3ea   : > { %8733 = vst [vmem:[#allocation12_spill] sm:$0xff] %v7475_v49  ;;  %v1817_v10 = vadd.f32 %v5353_v56, %v1760_v45  ;;  %v5713_v26 = vpop.f32.mrb[6].mxu1 }
 0x3eb   : > { %v1820_v7 = vadd.f32 %v5713_v26, %v5353_v56  ;;  %v1763_v20 = vpop.f32.mrb[7].mxu1  ;;  %v2536_v28 = vmax.f32 %v1819_v43, 0.0 }
 0x3ec   : > { %v1818_v22 = vadd.f32 %v5353_v56, %v1763_v20  ;;  %v2534_v44 = vmax.f32 %v1817_v10, 0.0 }
 0x3ed   : > { %v2537_v17 = vmax.f32 %v1820_v7, 0.0 }
 0x3ee   : > { %v2535_v46 = vmax.f32 %v1818_v22, 0.0 }
 0x3ef   : > { %v7477_v6 = vpack.c.bf16 %v2537_v17, %v2536_v28 }
 0x3f0   : > { %v7479_v19 = vpack.c.bf16 %v2535_v46, %v2534_v44  ;;  %v5716_v50 = vpop.f32.mrb[8].mxu1 }
 0x3f1   : > { %8734 = vst [vmem:[#allocation13_spill] sm:$0xff] %v7477_v6  ;;  %v1823_v25 = vadd.f32 %v5716_v50, %v5353_v56  ;;  %v1776_v52 = vpop.f32.mrb[9].mxu1 }
 0x3f2   : > { %8735 = vst [vmem:[#allocation14_spill] sm:$0xff] %v7479_v19  ;;  %v1821_v11 = vadd.f32 %v5353_v56, %v1776_v52  ;;  %v5717_v37 = vpop.f32.mrb[10].mxu1 }
 0x3f3   : > { %v1824_v21 = vadd.f32 %v5717_v37, %v5353_v56  ;;  %v1779_v1 = vpop.f32.mrb[11].mxu1  ;;  %v2540_v41 = vmax.f32 %v1823_v25, 0.0 }
 0x3f4   : > { %v1822_v9 = vadd.f32 %v5353_v56, %v1779_v1  ;;  %v2538_v53 = vmax.f32 %v1821_v11, 0.0 }
 0x3f5   : > { %v2541_v48 = vmax.f32 %v1824_v21, 0.0 }
 0x3f6   : > { %v2539_v57 = vmax.f32 %v1822_v9, 0.0 }
 0x3f7   : > { %v7481_v55 = vpack.c.bf16 %v2541_v48, %v2540_v41 }
 0x3f8   : > { %v7483_v8 = vpack.c.bf16 %v2539_v57, %v2538_v53  ;;  %v5720_v18 = vpop.f32.mrb[12].mxu1 }
 0x3f9   : > { %8736 = vst [vmem:[#allocation15_spill] sm:$0xff] %v7481_v55  ;;  %v1827_v16 = vadd.f32 %v5720_v18, %v5353_v56  ;;  %v1792_v3 = vpop.f32.mrb[13].mxu1 }
 0x3fa   : > { %8737 = vst [vmem:[#allocation16_spill] sm:$0xff] %v7483_v8  ;;  %v1825_v51 = vadd.f32 %v5353_v56, %v1792_v3  ;;  %v5721_v54 = vpop.f32.mrb[14].mxu1 }
 0x3fb   : > { %v1828_v63 = vadd.f32 %v5721_v54, %v5353_v56  ;;  %v1795_v5 = vpop.f32.mrb[15].mxu1  ;;  %v2544_v39 = vmax.f32 %v1827_v16, 0.0 }
 0x3fc   : > { %v1826_v36 = vadd.f32 %v5353_v56, %v1795_v5  ;;  %v2542_v23 = vmax.f32 %v1825_v51, 0.0 }
 0x3fd   : > { %v2545_v24 = vmax.f32 %v1828_v63, 0.0 }
 0x3fe   : > { %v2543_v27 = vmax.f32 %v1826_v36, 0.0 }
 0x3ff   : > { %v7485_v47 = vpack.c.bf16 %v2545_v24, %v2544_v39 }
 0x400   : > { %v7487_v13 = vpack.c.bf16 %v2543_v27, %v2542_v23 }
 0x401   : > { %8738 = vst [vmem:[#allocation17_spill] sm:$0xff] %v7485_v47 }
 0x402   : > { %8739 = vst [vmem:[#allocation18_spill] sm:$0xff] %v7487_v13 }
 0x427   : > { %v7489_v14 = vpop.f32.mrb[16].mxu1 }
 0x428   : > { %v7491_v59 = vpop.f32.mrb[17].mxu1 }
 0x429   : > { %v7493_v0 = vpop.f32.mrb[18].mxu1 }
 0x42a   : > { %v3286_v42 = vpack.c.bf16 %v7493_v0, %v7489_v14  ;;  %v7497_v4 = vpop.f32.mrb[19].mxu1 }
 0x42b   : > { %v3285_v38 = vpack.c.bf16 %v7497_v4, %v7491_v59 }
 0x42d   : > { %5808 = vmatprep.mubr.msk.bf16.mxu1 %vm2575_vm11, %v3285_v38 }
 0x42e   : > { %5809 = vmatmul.mubr.msk.bf16.vlgmr.msra.gmra.mrb[32].mxu1 %vm2575_vm11, %v3286_v42 }
 0x437   : > { %v7503_v61 = vpop.f32.mrb[20].mxu1 }
 0x438   : > { %v7505_v56 = vpop.f32.mrb[21].mxu1 }
 0x439   : > { %v7507_v60 = vpop.f32.mrb[22].mxu1 }
 0x43a   : > { %v3288_v2 = vpack.c.bf16 %v7507_v60, %v7503_v61  ;;  %v7511_v40 = vpop.f32.mrb[23].mxu1 }
 0x43b   : > { %v3287_v33 = vpack.c.bf16 %v7511_v40, %v7505_v56 }
 0x43d   : > { %5812 = vmatprep.mubr.msk.bf16.mxu1 %vm2575_vm11, %v3287_v33 }
 0x43e   : > { %5813 = vmatmul.mubr.msk.bf16.gmra.mrb[36].mxu1 %vm2575_vm11, %v3288_v2 }
 0x447   : > { %v7517_v32 = vpop.f32.mrb[24].mxu1 }
 0x448   : > { %v7519_v29 = vpop.f32.mrb[25].mxu1 }
 0x449   : > { %v7521_v30 = vpop.f32.mrb[26].mxu1 }
 0x44a   : > { %v3290_v15 = vpack.c.bf16 %v7521_v30, %v7517_v32  ;;  %v7525_v62 = vpop.f32.mrb[27].mxu1 }
 0x44b   : > { %v3289_v35 = vpack.c.bf16 %v7525_v62, %v7519_v29 }
 0x44d   : > { %5816 = vmatprep.mubr.msk.bf16.mxu1 %vm2575_vm11, %v3289_v35 }
 0x44e   : > { %5817 = vmatmul.mubr.msk.bf16.gmra.mrb[40].mxu1 %vm2575_vm11, %v3290_v15 }
 0x456   : > { %v7531_v12 = vpop.f32.mrb[28].mxu1 }
 0x457   : > { %v7533_v58 = vpop.f32.mrb[29].mxu1 }
 0x458   : > { %v7535_v34 = vpop.f32.mrb[30].mxu1 }
 0x459   : > { %v3292_v43 = vpack.c.bf16 %v7535_v34, %v7531_v12  ;;  %v7539_v45 = vpop.f32.mrb[31].mxu1 }
 0x45a   : > { %v3291_v10 = vpack.c.bf16 %v7539_v45, %v7533_v58 }
 0x45c   : > { %5820 = vmatprep.mubr.msk.bf16.mxu1 %vm2575_vm11, %v3291_v10 }
 0x45d   : > { %5821 = vmatmul.mubr.msk.bf16.gmra.mrb[44].mxu1 %vm2575_vm11, %v3292_v43 }
 0x501   : > { %v7545_v26 = vpop.f32.mrb[32].mxu1 }
 0x502   : > { %v7549_v7 = vmul.f32 %v7545_v26, %v7545_v26  ;;  %v7551_v20 = vpop.f32.mrb[33].mxu1 }
 0x503   : > { %v7553_v22 = vpop.f32.mrb[34].mxu1  ;;  %v7569_v44 = vmul.f32 %v7551_v20, %v7551_v20 }
 0x504   : > { %v7557_v28 = vmul.f32 %v7553_v22, %v7553_v22  ;;  %3462 = vrot.lane.b32.xlu0 %v7549_v7, %s6423_s21  ;;  %v7561_v17 = vpop.f32.mrb[35].mxu1 }
 0x505   : > { %v7575_v46 = vmul.f32 %v7561_v17, %v7561_v17 }
 0x506   : > { %3464 = vrot.lane.b32.xlu1 %v7557_v28, %s6423_s21 }
 0x508   : > { %3526 = vrot.lane.b32.xlu0 %v7549_v7, %s6422_s3 }
 0x50a   : > { %3528 = vrot.lane.b32.xlu1 %v7557_v28, %s6422_s3 }
 0x50c   : > { %3458 = vrot.lane.b32.xlu0 %v7569_v44, %s6423_s21 }
 0x50e   : > { %3460 = vrot.lane.b32.xlu1 %v7575_v46, %s6423_s21 }
 0x510   : > { %3522 = vrot.lane.b32.xlu0 %v7569_v44, %s6422_s3 }
 0x511   : > { %v7583_v50 = vpop.f32.mrb[36].mxu1 }
 0x512   : > { %v7587_v25 = vmul.f32 %v7583_v50, %v7583_v50  ;;  %3524 = vrot.lane.b32.xlu1 %v7575_v46, %s6422_s3  ;;  %v7591_v52 = vpop.f32.mrb[37].mxu1 }
 0x513   : > { %v7593_v11 = vpop.f32.mrb[38].mxu1  ;;  %v7609_v1 = vmul.f32 %v7591_v52, %v7591_v52 }
 0x514   : > { %v7597_v37 = vmul.f32 %v7593_v11, %v7593_v11  ;;  %3470 = vrot.lane.b32.xlu0 %v7587_v25, %s6423_s21  ;;  %v7601_v21 = vpop.f32.mrb[39].mxu1 }
 0x515   : > { %v7615_v9 = vmul.f32 %v7601_v21, %v7601_v21 }
 0x516   : > { %3472 = vrot.lane.b32.xlu1 %v7597_v37, %s6423_s21 }
 0x518   : > { %3534 = vrot.lane.b32.xlu0 %v7587_v25, %s6422_s3 }
 0x51a   : > { %3536 = vrot.lane.b32.xlu1 %v7597_v37, %s6422_s3 }
 0x51c   : > { %3466 = vrot.lane.b32.xlu0 %v7609_v1, %s6423_s21 }
 0x51e   : > { %3468 = vrot.lane.b32.xlu1 %v7615_v9, %s6423_s21 }
 0x520   : > { %3530 = vrot.lane.b32.xlu0 %v7609_v1, %s6422_s3 }
 0x521   : > { %v7623_v41 = vpop.f32.mrb[40].mxu1 }
 0x522   : > { %v7627_v48 = vmul.f32 %v7623_v41, %v7623_v41  ;;  %3532 = vrot.lane.b32.xlu1 %v7615_v9, %s6422_s3  ;;  %v7631_v53 = vpop.f32.mrb[41].mxu1 }
 0x523   : > { %v7633_v57 = vpop.f32.mrb[42].mxu1  ;;  %v7649_v3 = vmul.f32 %v7631_v53, %v7631_v53 }
 0x524   : > { %v7637_v18 = vmul.f32 %v7633_v57, %v7633_v57  ;;  %3478 = vrot.lane.b32.xlu0 %v7627_v48, %s6423_s21  ;;  %v7641_v16 = vpop.f32.mrb[43].mxu1 }
 0x525   : > { %v7655_v51 = vmul.f32 %v7641_v16, %v7641_v16 }
 0x526   : > { %3480 = vrot.lane.b32.xlu1 %v7637_v18, %s6423_s21 }
 0x528   : > { %3542 = vrot.lane.b32.xlu0 %v7627_v48, %s6422_s3 }
 0x52a   : > { %3544 = vrot.lane.b32.xlu1 %v7637_v18, %s6422_s3 }
 0x52c   : > { %3474 = vrot.lane.b32.xlu0 %v7649_v3, %s6423_s21 }
 0x52e   : > { %3476 = vrot.lane.b32.xlu1 %v7655_v51, %s6423_s21 }
 0x530   : > { %3538 = vrot.lane.b32.xlu0 %v7649_v3, %s6422_s3  ;;  %v7663_v54 = vpop.f32.mrb[44].mxu1 }
 0x531   : > { %v7667_v63 = vmul.f32 %v7663_v54, %v7663_v54  ;;  %v7669_v5 = vpop.f32.mrb[45].mxu1 }
 0x532   : > { %8740 = vst [vmem:[#allocation19_spill] sm:$0xff] %v7669_v5  ;;  %3540 = vrot.lane.b32.xlu1 %v7655_v51, %s6422_s3  ;;  %v7673_v36 = vpop.f32.mrb[46].mxu1  ;;  %v7685_v23 = vmul.f32 %v7669_v5, %v7669_v5 }
 0x533   : > { %v7677_v39 = vmul.f32 %v7673_v36, %v7673_v36  ;;  %v7679_v24 = vpop.f32.mrb[47].mxu1 }
 0x534   : > { %8741 = vst [vmem:[#allocation20_spill] sm:$0xff] %v7679_v24  ;;  %3486 = vrot.lane.b32.xlu0 %v7667_v63, %s6423_s21  ;;  %v7691_v27 = vmul.f32 %v7679_v24, %v7679_v24 }
 0x536   : > { %3488 = vrot.lane.b32.xlu1 %v7677_v39, %s6423_s21 }
 0x538   : > { %3482 = vrot.lane.b32.xlu0 %v7685_v23, %s6423_s21 }
 0x53a   : > { %3484 = vrot.lane.b32.xlu1 %v7691_v27, %s6423_s21 }
 0x53c   : > { %3546 = vrot.lane.b32.xlu0 %v7685_v23, %s6422_s3 }
 0x53e   : > { %3548 = vrot.lane.b32.xlu1 %v7691_v27, %s6422_s3 }
 0x540   : > { %3550 = vrot.lane.b32.xlu0 %v7667_v63, %s6422_s3 }
 0x542   : > { %3552 = vrot.lane.b32.xlu1 %v7677_v39, %s6422_s3 }
 0x576   : > { %v3463_v42 = vpop.permute.xlu0 %3462 }
 0x577   : > { %v3508_v2 = vadd.f32 %v3463_v42, %v7549_v7 }
 0x578   : > { %v3465_v38 = vpop.permute.xlu1 %3464 }
 0x579   : > { %v3509_v15 = vadd.f32 %v3465_v38, %v7557_v28 }
 0x57a   : > { %v3527_v33 = vpop.permute.xlu0 %3526 }
 0x57b   : > { %v3572_v35 = vadd.f32 %v3527_v33, %v3508_v2 }
 0x57c   : > { %v3529_v43 = vpop.permute.xlu1 %3528 }
 0x57d   : > { %v3588_v10 = vmax.f32 %v3572_v35, 1e-08  ;;  %v3573_v47 = vadd.f32 %v3529_v43, %v3509_v15 }
 0x57e   : > { %v3459_v13 = vpop.permute.xlu0 %3458 }
 0x57f   : > { %6206 = vrsqrt.f32 %v3588_v10  ;;  %v3589_v55 = vmax.f32 %v3573_v47, 1e-08  ;;  %v3506_v6 = vadd.f32 %v3459_v13, %v7569_v44  ;;  %vm3618_vm12 = vcmp.eq.f32.partialorder %v3588_v10, inf }
 0x580   : > { %v3461_v8 = vpop.permute.xlu1 %3460  ;;  %v3621_v13 = vand.u32 2147483648, %v3588_v10  ;;  %vm3620_vm13 = vcmp.eq.f32.partialorder %v3588_v10, 0.0 }
 0x581   : > { %6208 = vrsqrt.f32 %v3589_v55  ;;  %v3507_v31 = vadd.f32 %v3461_v8, %v7575_v46  ;;  %vm3625_vm14 = vcmp.eq.f32.partialorder %v3589_v55, inf  ;;  %vm3627_vm15 = vcmp.eq.f32.partialorder %v3589_v55, 0.0 }
 0x582   : > { %v3523_v19 = vpop.permute.xlu0 %3522 }
 0x583   : > { %v3570_v49 = vadd.f32 %v3523_v19, %v3506_v6 }
 0x584   : > { %v3525_v24 = vpop.permute.xlu1 %3524 }
 0x585   : > { %v3586_v7 = vmax.f32 %v3570_v49, 1e-08  ;;  %v3571_v42 = vadd.f32 %v3525_v24, %v3507_v31 }
 0x586   : > { %v3471_v5 = vpop.permute.xlu0 %3470 }
 0x587   : > { %6210 = vrsqrt.f32 %v3586_v7  ;;  %v3587_v28 = vmax.f32 %v3571_v42, 1e-08  ;;  %v3512_v33 = vadd.f32 %v3471_v5, %v7587_v25  ;;  %v3628_v25 = vand.u32 2147483648, %v3589_v55 }
 0x588   : > { %v3473_v38 = vpop.permute.xlu1 %3472  ;;  %vm3604_vm0 = vcmp.eq.f32.partialorder %v3586_v7, inf  ;;  %vm3606_vm1 = vcmp.eq.f32.partialorder %v3586_v7, 0.0 }
 0x589   : > { %v6207_v2 = vpop.eup %6206  ;;  %6212 = vrsqrt.f32 %v3587_v28  ;;  %v3513_v44 = vadd.f32 %v3473_v38, %v7597_v37  ;;  %vm3611_vm2 = vcmp.eq.f32.partialorder %v3587_v28, inf  ;;  %vm3613_vm4 = vcmp.eq.f32.partialorder %v3587_v28, 0.0 }
 0x58a   : > { %v3617_v15 = vmul.f32 %v6207_v2, %v3588_v10  ;;  %v3535_v47 = vpop.permute.xlu0 %3534 }
 0x58b   : > { %v3576_v35 = vadd.f32 %v3535_v47, %v3512_v33  ;;  %v6209_v8 = vpop.eup %6208 }
 0x58c   : > { %v3619_v6 = vsel %vm3618_vm12, %v3588_v10, %v3617_v15  ;;  %v3537_v49 = vpop.permute.xlu1 %3536  ;;  %v3624_v19 = vmul.f32 %v6209_v8, %v3589_v55 }
 0x58d   : > { %v3622_v31 = vsel %vm3620_vm13, %v3621_v13, %v3619_v6  ;;  %v7711_v46 = vmax.f32 %v3576_v35, 1e-08  ;;  %v3577_v24 = vadd.f32 %v3537_v49, %v3513_v44  ;;  %v3607_v44 = vand.u32 2147483648, %v3586_v7 }
 0x58e   : > { %v5423_v43 = vmul.f32 -1.442695, %v3622_v31  ;;  %v3467_v5 = vpop.permute.xlu0 %3466  ;;  %v3626_v42 = vsel %vm3625_vm14, %v3589_v55, %v3624_v19 }
 0x58f   : > { %6214 = vrsqrt.f32 %v7711_v46  ;;  %v3629_v37 = vsel %vm3627_vm15, %v3628_v25, %v3626_v42  ;;  %v7714_v38 = vmax.f32 %v3577_v24, 1e-08  ;;  %v3510_v15 = vadd.f32 %v3467_v5, %v7609_v1 }
 0x590   : > { %6216 = vpow2.f32 %v5423_v43  ;;  %v3469_v2 = vpop.permute.xlu1 %3468  ;;  %v5424_v33 = vmul.f32 -1.442695, %v3629_v37  ;;  %v3614_v25 = vand.u32 2147483648, %v3587_v28  ;;  %vm3646_vm5 = vcmp.eq.f32.partialorder %v7711_v46, inf }
 0x591   : > { %v6211_v10 = vpop.eup %6210  ;;  %6218 = vrsqrt.f32 %v7714_v38  ;;  %v3511_v55 = vadd.f32 %v3469_v2, %v7615_v9  ;;  %vm3648_vm6 = vcmp.eq.f32.partialorder %v7711_v46, 0.0  ;;  %vm3653_vm7 = vcmp.eq.f32.partialorder %v7714_v38, inf }
 0x592   : > { %v3603_v47 = vmul.f32 %v6211_v10, %v3586_v7  ;;  %v3531_v13 = vpop.permute.xlu0 %3530  ;;  %6220 = vpow2.f32 %v5424_v33  ;;  %vm3655_vm8 = vcmp.eq.f32.partialorder %v7714_v38, 0.0 }
 0x593   : > { %v3574_v35 = vadd.f32 %v3531_v13, %v3510_v15  ;;  %v6213_v8 = vpop.eup %6212  ;;  %v6070_v15 = vld [vmem:[%s6632_s7] sm:$0xff]  }
 0x594   : > { %v3605_v6 = vsel %vm3604_vm0, %v3586_v7, %v3603_v47  ;;  %v3533_v49 = vpop.permute.xlu1 %3532  ;;  %v3610_v19 = vmul.f32 %v6213_v8, %v3587_v28  ;;  %5824 = vmatprep.subr.bf16.mxu1 %v6070_v15 }
 0x595   : > { %v3608_v31 = vsel %vm3606_vm1, %v3607_v44, %v3605_v6  ;;  %v7719_v24 = vmax.f32 %v3574_v35, 1e-08  ;;  %v3575_v1 = vadd.f32 %v3533_v49, %v3511_v55  ;;  %v3649_v55 = vand.u32 2147483648, %v7711_v46  ;;  %5825 = vmatpush3.bf16.msra.mxu1 %v6070_v15 }
 0x596   : > { %v5421_v43 = vmul.f32 -1.442695, %v3608_v31  ;;  %v3479_v5 = vpop.permute.xlu0 %3478  ;;  %v3612_v42 = vsel %vm3611_vm2, %v3587_v28, %v3610_v19 }
 0x597   : > { %6222 = vrsqrt.f32 %v7719_v24  ;;  %v3615_v9 = vsel %vm3613_vm4, %v3614_v25, %v3612_v42  ;;  %v7722_v37 = vmax.f32 %v3575_v1, 1e-08  ;;  %v3516_v33 = vadd.f32 %v3479_v5, %v7627_v48 }
 0x598   : > { %6224 = vpow2.f32 %v5421_v43  ;;  %v3481_v7 = vpop.permute.xlu1 %3480  ;;  %v5422_v10 = vmul.f32 -1.442695, %v3615_v9  ;;  %v3656_v42 = vand.u32 2147483648, %v7714_v38  ;;  %vm3632_vm12 = vcmp.eq.f32.partialorder %v7719_v24, inf }
 0x599   : > { %v6215_v2 = vpop.eup %6214  ;;  %6226 = vrsqrt.f32 %v7722_v37  ;;  %v3517_v48 = vadd.f32 %v3481_v7, %v7637_v18  ;;  %vm3634_vm13 = vcmp.eq.f32.partialorder %v7719_v24, 0.0  ;;  %vm3639_vm14 = vcmp.eq.f32.partialorder %v7722_v37, inf }
 0x59a   : > { %v6217_v47 = vpop.eup %6216  ;;  %v3645_v13 = vmul.f32 %v6215_v2, %v7711_v46  ;;  %v3543_v28 = vpop.permute.xlu0 %3542  ;;  %6228 = vpow2.f32 %v5422_v10  ;;  %vm3641_vm15 = vcmp.eq.f32.partialorder %v7722_v37, 0.0 }
 0x59b   : > { %v3764_v44 = vadd.f32 1.0, %v6217_v47  ;;  %v3580_v35 = vadd.f32 %v3543_v28, %v3516_v33  ;;  %v6219_v8 = vpop.eup %6218 }
 0x59c   : > { %v3647_v6 = vsel %vm3646_vm5, %v7711_v46, %v3645_v13  ;;  %v3545_v49 = vpop.permute.xlu1 %3544  ;;  %v6221_v31 = vpop.eup %6220  ;;  %v3652_v1 = vmul.f32 %v6219_v8, %v7714_v38 }
 0x59d   : > { %6230 = vrcp.f32 %v3764_v44  ;;  %v3650_v19 = vsel %vm3648_vm6, %v3649_v55, %v3647_v6  ;;  %v7735_v43 = vmax.f32 %v3580_v35, 1e-08  ;;  %v3765_v25 = vadd.f32 1.0, %v6221_v31 }
 0x59e   : > { %v5427_v5 = vmul.f32 -1.442695, %v3650_v19  ;;  %v3581_v9 = vadd.f32 %v3545_v49, %v3517_v48  ;;  %v3475_v2 = vpop.permute.xlu0 %3474  ;;  %v3654_v46 = vsel %vm3653_vm7, %v7714_v38, %v3652_v1  ;;  %v3635_v55 = vand.u32 2147483648, %v7719_v24 }
 0x59f   : > { %6232 = vrsqrt.f32 %v7735_v43  ;;  %v3657_v18 = vsel %vm3655_vm8, %v3656_v42, %v3654_v46  ;;  %v3514_v47 = vadd.f32 %v3475_v2, %v7649_v3  ;;  %v3642_v42 = vand.u32 2147483648, %v7722_v37 }
 0x5a0   : > { %6234 = vrcp.f32 %v3765_v25  ;;  %v7741_v7 = vmax.f32 %v3581_v9, 1e-08  ;;  %v3477_v10 = vpop.permute.xlu1 %3476  ;;  %v5428_v15 = vmul.f32 -1.442695, %v3657_v18  ;;  %vm3674_vm0 = vcmp.eq.f32.partialorder %v7735_v43, inf }
 0x5a1   : > { %v6223_v33 = vpop.eup %6222  ;;  %6236 = vpow2.f32 %v5427_v5  ;;  %v3515_v3 = vadd.f32 %v3477_v10, %v7655_v51  ;;  %vm3676_vm1 = vcmp.eq.f32.partialorder %v7735_v43, 0.0 }
 0x5a2   : > { %v6225_v13 = vpop.eup %6224  ;;  %v3631_v28 = vmul.f32 %v6223_v33, %v7719_v24  ;;  %6238 = vrsqrt.f32 %v7741_v7  ;;  %v3539_v38 = vpop.permute.xlu0 %3538  ;;  %vm3681_vm2 = vcmp.eq.f32.partialorder %v7741_v7, inf  ;;  %vm3683_vm4 = vcmp.eq.f32.partialorder %v7741_v7, 0.0 }
 0x5a3   : > { %v3762_v44 = vadd.f32 1.0, %v6225_v13  ;;  %6240 = vpow2.f32 %v5428_v15  ;;  %v3578_v35 = vadd.f32 %v3539_v38, %v3514_v47  ;;  %v6227_v8 = vpop.eup %6226  ;;  %v6071_v47 = vld [vmem:[%s6632_s7 + $0x8] ss:$0 sps:$4 sm:$0xff]   ;;  %s8742_s7 = sld [smem:[#allocation10_spill]] }
 0x5a4   : > { %v3633_v6 = vsel %vm3632_vm12, %v7719_v24, %v3631_v28  ;;  %v3541_v48 = vpop.permute.xlu1 %3540  ;;  %v6229_v49 = vpop.eup %6228  ;;  %v3638_v19 = vmul.f32 %v6227_v8, %v7722_v37  ;;  %5976 = vmatprep.subr.msk.bf16.mxu1 %vm2600_vm3, %v6071_v47 }
 0x5a5   : > { %6242 = vrcp.f32 %v3762_v44  ;;  %v3636_v31 = vsel %vm3634_vm13, %v3635_v55, %v3633_v6  ;;  %v7753_v1 = vmax.f32 %v3578_v35, 1e-08  ;;  %v3763_v25 = vadd.f32 1.0, %v6229_v49 }
 0x5a6   : > { %v5425_v5 = vmul.f32 -1.442695, %v3636_v31  ;;  %v3579_v9 = vadd.f32 %v3541_v48, %v3515_v3  ;;  %v7756_v2 = vpop.permute.xlu0 %3486  ;;  %v3640_v51 = vsel %vm3639_vm14, %v7722_v37, %v3638_v19  ;;  %v3677_v44 = vand.u32 2147483648, %v7735_v43 }
 0x5a7   : > { %v7758_v24 = vpop.eup %6230  ;;  %6244 = vrsqrt.f32 %v7753_v1  ;;  %v3643_v46 = vsel %vm3641_vm15, %v3642_v42, %v3640_v51  ;;  %v4040_v55 = vsel %vm2600_vm3, %v6071_v47, 0  ;;  %v3684_v42 = vand.u32 2147483648, %v7741_v7 }
 0x5a8   : > { %6246 = vrcp.f32 %v3763_v25  ;;  %v7763_v18 = vmax.f32 %v3579_v9, 1e-08  ;;  %3830 = vrot.lane.b32.xlu0 %v7758_v24, %s6424_s23  ;;  %v3489_v10 = vpop.permute.xlu1 %3488  ;;  %v5426_v15 = vmul.f32 -1.442695, %v3643_v46  ;;  %5827 = vmatpush3.bf16.msra.mxu1 %v4040_v55  ;;  %vm3660_vm5 = vcmp.eq.f32.partialorder %v7753_v1, inf }
 0x5a9   : > { %v6233_v33 = vpop.eup %6232  ;;  %6248 = vpow2.f32 %v5425_v5  ;;  %vm3662_vm6 = vcmp.eq.f32.partialorder %v7753_v1, 0.0 }
 0x5aa   : > { %v7768_v13 = vpop.eup %6234  ;;  %v3673_v28 = vmul.f32 %v6233_v33, %v7735_v43  ;;  %6250 = vrsqrt.f32 %v7763_v18  ;;  %v3483_v37 = vpop.permute.xlu0 %3482  ;;  %vm3667_vm7 = vcmp.eq.f32.partialorder %v7763_v18, inf  ;;  %vm3669_vm8 = vcmp.eq.f32.partialorder %v7763_v18, 0.0 }
 0x5ab   : > { %v6237_v38 = vpop.eup %6236  ;;  %6252 = vpow2.f32 %v5426_v15  ;;  %3832 = vrot.lane.b32.xlu1 %v7768_v13, %s6424_s23  ;;  %v3518_v19 = vadd.f32 %v3483_v37, %v7685_v23 }
 0x5ac   : > { %v6239_v35 = vpop.eup %6238  ;;  %v3768_v8 = vadd.f32 1.0, %v6237_v38  ;;  %v3675_v6 = vsel %vm3674_vm0, %v7735_v43, %v3673_v28  ;;  %3878 = vrot.lane.b32.xlu0 %v7758_v24, %s6425_s14  ;;  %v3485_v3 = vpop.permute.xlu1 %3484 }
 0x5ad   : > { %v6241_v48 = vpop.eup %6240  ;;  %v3678_v49 = vsel %vm3676_vm1, %v3677_v44, %v3675_v6  ;;  %v3680_v31 = vmul.f32 %v6239_v35, %v7741_v7  ;;  %v3519_v46 = vadd.f32 %v3485_v3, %v7691_v27  ;;  %v3521_v6 = vadd.f32 %v3489_v10, %v7677_v39 }
 0x5ae   : > { %6254 = vrcp.f32 %v3768_v8  ;;  %v3769_v25 = vadd.f32 1.0, %v6241_v48  ;;  %v5431_v5 = vmul.f32 -1.442695, %v3678_v49  ;;  %v3547_v9 = vpop.permute.xlu0 %3546  ;;  %v3520_v8 = vadd.f32 %v7756_v2, %v7667_v63 }
 0x5af   : > { %v7786_v43 = vpop.eup %6242  ;;  %v3682_v51 = vsel %vm3681_vm2, %v7741_v7, %v3680_v31  ;;  %v3582_v33 = vadd.f32 %v3547_v9, %v3518_v19  ;;  %3880 = vrot.lane.b32.xlu1 %v7768_v13, %s6425_s14  ;;  %v3663_v7 = vand.u32 2147483648, %v7753_v1  ;;  %v3670_v9 = vand.u32 2147483648, %v7763_v18 }
 0x5b0   : > { %6256 = vrcp.f32 %v3769_v25  ;;  %v3685_v23 = vsel %vm3683_vm4, %v3684_v42, %v3682_v51  ;;  %3826 = vrot.lane.b32.xlu0 %v7786_v43, %s6424_s23  ;;  %v3549_v15 = vpop.permute.xlu1 %3548 }
 0x5b1   : > { %v6245_v47 = vpop.eup %6244  ;;  %6258 = vpow2.f32 %v5431_v5  ;;  %v5432_v28 = vmul.f32 -1.442695, %v3685_v23  ;;  %v7795_v37 = vmax.f32 %v3582_v33, 1e-08  ;;  %v3583_v38 = vadd.f32 %v3549_v15, %v3519_v46 }
 0x5b2   : > { %v7797_v44 = vpop.eup %6246  ;;  %v3659_v27 = vmul.f32 %v6245_v47, %v7753_v1  ;;  %v3551_v55 = vpop.permute.xlu0 %3550 }
 0x5b3   : > { %v6249_v35 = vpop.eup %6248  ;;  %6260 = vpow2.f32 %v5432_v28  ;;  %3828 = vrot.lane.b32.xlu1 %v7797_v44, %s6424_s23  ;;  %v7811_v31 = vmax.f32 %v3583_v38, 1e-08  ;;  %v3584_v2 = vadd.f32 %v3551_v55, %v3520_v8  ;;  %vm3688_vm12 = vcmp.eq.f32.partialorder %v7795_v37, inf }
 0x5b4   : > { %v6251_v3 = vpop.eup %6250  ;;  %v3766_v48 = vadd.f32 1.0, %v6249_v35  ;;  %v3661_v49 = vsel %vm3660_vm5, %v7753_v1, %v3659_v27  ;;  %6262 = vrsqrt.f32 %v7795_v37  ;;  %3874 = vrot.lane.b32.xlu0 %v7786_v43, %s6425_s14  ;;  %v3553_v19 = vpop.permute.xlu1 %3552  ;;  %vm3690_vm13 = vcmp.eq.f32.partialorder %v7795_v37, 0.0 }
 0x5b5   : > { %v6253_v25 = vpop.eup %6252  ;;  %v3664_v63 = vsel %vm3662_vm6, %v3663_v7, %v3661_v49  ;;  %v3666_v39 = vmul.f32 %v6251_v3, %v7763_v18  ;;  %v3585_v10 = vadd.f32 %v3553_v19, %v3521_v6  ;;  %v3600_v33 = vmax.f32 %v3584_v2, 1e-08 }
 0x5b6   : > { %6264 = vrcp.f32 %v3766_v48  ;;  %v3767_v5 = vadd.f32 1.0, %v6253_v25  ;;  %v5429_v42 = vmul.f32 -1.442695, %v3664_v63  ;;  %v3691_v25 = vand.u32 2147483648, %v7795_v37 }
 0x5b7   : > { %v3668_v51 = vsel %vm3667_vm7, %v7763_v18, %v3666_v39  ;;  %6266 = vrsqrt.f32 %v7811_v31  ;;  %3876 = vrot.lane.b32.xlu1 %v7797_v44, %s6425_s14  ;;  %v3601_v23 = vmax.f32 %v3585_v10, 1e-08  ;;  %vm3695_vm14 = vcmp.eq.f32.partialorder %v7811_v31, inf }
 0x5b8   : > { %v7826_v1 = vpop.eup %6254  ;;  %6268 = vrcp.f32 %v3767_v5  ;;  %v3671_v46 = vsel %vm3669_vm8, %v3670_v9, %v3668_v51  ;;  %v3698_v2 = vand.u32 2147483648, %v7811_v31  ;;  %vm3702_vm15 = vcmp.eq.f32.partialorder %v3600_v33, inf }
 0x5b9   : > { %6270 = vpow2.f32 %v5429_v42  ;;  %v5430_v15 = vmul.f32 -1.442695, %v3671_v46  ;;  %3838 = vrot.lane.b32.xlu0 %v7826_v1, %s6424_s23  ;;  %vm3704_vm0 = vcmp.eq.f32.partialorder %v3600_v33, 0.0  ;;  %v3705_v9 = vand.u32 2147483648, %v3600_v33 }
 0x5ba   : > { %v7830_v47 = vpop.eup %6256  ;;  %6272 = vrsqrt.f32 %v3600_v33  ;;  %vm3709_vm1 = vcmp.eq.f32.partialorder %v3601_v23, inf  ;;  %vm3697_vm2 = vcmp.eq.f32.partialorder %v7811_v31, 0.0  ;;  %vm3711_vm4 = vcmp.eq.f32.partialorder %v3601_v23, 0.0 }
 0x5bb   : > { %v6259_v18 = vpop.eup %6258  ;;  %6274 = vpow2.f32 %v5430_v15  ;;  %3840 = vrot.lane.b32.xlu1 %v7830_v47, %s6424_s23 }
 0x5bc   : > { %v3772_v28 = vadd.f32 1.0, %v6259_v18  ;;  %6276 = vrsqrt.f32 %v3601_v23 }
 0x5bd   : > { %v6261_v38 = vpop.eup %6260  ;;  %3886 = vrot.lane.b32.xlu0 %v7826_v1, %s6425_s14 }
 0x5be   : > { %v6263_v27 = vpop.eup %6262  ;;  %6278 = vrcp.f32 %v3772_v28  ;;  %v3773_v7 = vadd.f32 1.0, %v6261_v38 }
 0x5bf   : > { %3888 = vrot.lane.b32.xlu1 %v7830_v47, %s6425_s14  ;;  %v3687_v8 = vmul.f32 %v6263_v27, %v7795_v37  ;;  %v3712_v27 = vand.u32 2147483648, %v3601_v23 }
 0x5c0   : > { %v7838_v55 = vpop.eup %6264  ;;  %6280 = vrcp.f32 %v3773_v7 }
 0x5c1   : > { %v6267_v35 = vpop.eup %6266  ;;  %3834 = vrot.lane.b32.xlu0 %v7838_v55, %s6424_s23  ;;  %v3689_v39 = vsel %vm3688_vm12, %v7795_v37, %v3687_v8 }
 0x5c2   : > { %v7843_v6 = vpop.eup %6268  ;;  %v3694_v48 = vmul.f32 %v6267_v35, %v7811_v31  ;;  %v3692_v28 = vsel %vm3690_vm13, %v3691_v25, %v3689_v39 }
 0x5c3   : > { %v6271_v3 = vpop.eup %6270  ;;  %3836 = vrot.lane.b32.xlu1 %v7843_v6, %s6424_s23 }
 0x5c4   : > { %v6273_v49 = vpop.eup %6272  ;;  %v3770_v19 = vadd.f32 1.0, %v6271_v3  ;;  %v3696_v51 = vsel %vm3695_vm14, %v7811_v31, %v3694_v48  ;;  %v5433_v48 = vmul.f32 -1.442695, %v3692_v28  ;;  %v7910_v28 = vmul.f32 %v7491_v59, %v7491_v59 }
 0x5c5   : > { %v6275_v63 = vpop.eup %6274  ;;  %v3701_v10 = vmul.f32 %v6273_v49, %v3600_v33  ;;  %3882 = vrot.lane.b32.xlu0 %v7838_v55, %s6425_s14  ;;  %v3699_v8 = vsel %vm3697_vm2, %v3698_v2, %v3696_v51  ;;  %v7928_v59 = vmul.f32 %v7493_v0, %v7493_v0  ;;  %v7948_v0 = vmul.f32 %v7511_v40, %v7511_v40 }
 0x5c6   : > { %v6277_v5 = vpop.eup %6276  ;;  %6282 = vrcp.f32 %v3770_v19  ;;  %v3771_v42 = vadd.f32 1.0, %v6275_v63  ;;  %v5434_v37 = vmul.f32 -1.442695, %v3699_v8  ;;  %v7989_v40 = vmul.f32 %v7517_v32, %v7517_v32 }
 0x5c7   : > { %v3703_v46 = vsel %vm3702_vm15, %v3600_v33, %v3701_v10  ;;  %v3708_v15 = vmul.f32 %v6277_v5, %v3601_v23  ;;  %3884 = vrot.lane.b32.xlu1 %v7843_v6, %s6425_s14 }
 0x5c8   : > { %v7859_v18 = vpop.eup %6278  ;;  %6284 = vrcp.f32 %v3771_v42  ;;  %v3706_v38 = vsel %vm3704_vm0, %v3705_v9, %v3703_v46 }
 0x5c9   : > { %v5435_v7 = vmul.f32 -1.442695, %v3706_v38  ;;  %v3710_v35 = vsel %vm3709_vm1, %v3601_v23, %v3708_v15  ;;  %3846 = vrot.lane.b32.xlu0 %v7859_v18, %s6424_s23  ;;  %v7916_v38 = vmul.f32 %v7497_v4, %v7497_v4  ;;  %v7954_v4 = vmul.f32 %v7503_v61, %v7503_v61 }
 0x5ca   : > { %v7866_v33 = vpop.eup %6280  ;;  %v3713_v3 = vsel %vm3711_vm4, %v3712_v27, %v3710_v35  ;;  %v7922_v27 = vmul.f32 %v7489_v14, %v7489_v14  ;;  %v7942_v14 = vmul.f32 %v7505_v56, %v7505_v56  ;;  %v7963_v35 = vmul.f32 %v7507_v60, %v7507_v60 }
 0x5cb   : > { %6286 = vpow2.f32 %v5435_v7  ;;  %v5436_v49 = vmul.f32 -1.442695, %v3713_v3  ;;  %3848 = vrot.lane.b32.xlu1 %v7866_v33, %s6424_s23  ;;  %v2553_v7 = vld [vmem:[%s6614_s29] sm:$0xf]  ;;  %v7977_v61 = vmul.f32 %v7519_v29, %v7519_v29  ;;  %v7983_v60 = vmul.f32 %v7525_v62, %v7525_v62  ;;  %s8753_s29 = sld [smem:[#allocation33_spill]] }
 0x5cc   : > { %5974 = vmatprep.subr.msk.bf16.mxu0 %vm2600_vm3, %v2553_v7  ;;  %v3030_v56 = vsel %vm2600_vm3, %v2553_v7, 0  ;;  %v7995_v29 = vmul.f32 %v7521_v30, %v7521_v30 }
 0x5cd   : > { %6288 = vpow2.f32 %v5436_v49  ;;  %3894 = vrot.lane.b32.xlu0 %v7859_v18, %s6425_s14  ;;  %5767 = vmatpush3.bf16.msra.mxu0 %v3030_v56 }
 0x5ce   : > { %6290 = vpow2.f32 %v5433_v48  ;;  %v8012_v48 = vmul.f32 %v7533_v58, %v7533_v58 }
 0x5cf   : > { %3896 = vrot.lane.b32.xlu1 %v7866_v33, %s6425_s14  ;;  %6292 = vpow2.f32 %v5434_v37 }
 0x5d0   : > { %v7874_v31 = vpop.eup %6282 }
 0x5d1   : > { %3842 = vrot.lane.b32.xlu0 %v7874_v31, %s6424_s23  ;;  %s8754_s4 = scalar_lea.vmem %s8753_s29, %s8784_s18  ;;  %s8755_s18 = sld [smem:[#allocation9_spill]] }
 0x5d2   : > { %v7878_v23 = vpop.eup %6284 }
 0x5d3   : > { %3844 = vrot.lane.b32.xlu1 %v7878_v23, %s6424_s23 }
 0x5d5   : > { %v6287_v19 = vpop.eup %6286  ;;  %3890 = vrot.lane.b32.xlu0 %v7874_v31, %s6425_s14 }
 0x5d6   : > { %v3776_v25 = vadd.f32 1.0, %v6287_v19 }
 0x5d7   : > { %v6289_v63 = vpop.eup %6288  ;;  %3892 = vrot.lane.b32.xlu1 %v7878_v23, %s6425_s14 }
 0x5d8   : > { %6294 = vrcp.f32 %v3776_v25  ;;  %v3777_v39 = vadd.f32 1.0, %v6289_v63  ;;  %v6291_v2 = vpop.eup %6290 }
 0x5d9   : > { %v6293_v10 = vpop.eup %6292  ;;  %v3774_v5 = vadd.f32 1.0, %v6291_v2 }
 0x5da   : > { %6296 = vrcp.f32 %v3777_v39  ;;  %v3775_v42 = vadd.f32 1.0, %v6293_v10 }
 0x5db   : > { %6298 = vrcp.f32 %v3774_v5 }
 0x5dc   : > { %6300 = vrcp.f32 %v3775_v42 }
 0x5e2   : > { %v7886_v9 = vpop.eup %6294 }
 0x5e3   : > { %3854 = vrot.lane.b32.xlu0 %v7886_v9, %s6424_s23 }
 0x5e4   : > { %v7890_v51 = vpop.eup %6296 }
 0x5e5   : > { %3856 = vrot.lane.b32.xlu1 %v7890_v51, %s6424_s23  ;;  %v7898_v46 = vpop.eup %6298 }
 0x5e6   : > { %v7902_v15 = vpop.eup %6300 }
 0x5e7   : > { %3902 = vrot.lane.b32.xlu0 %v7886_v9, %s6425_s14 }
 0x5e9   : > { %3904 = vrot.lane.b32.xlu1 %v7890_v51, %s6425_s14 }
 0x5eb   : > { %3850 = vrot.lane.b32.xlu0 %v7898_v46, %s6424_s23 }
 0x5ed   : > { %3852 = vrot.lane.b32.xlu1 %v7902_v15, %s6424_s23 }
 0x5ef   : > { %3898 = vrot.lane.b32.xlu0 %v7898_v46, %s6425_s14 }
 0x5f1   : > { %3900 = vrot.lane.b32.xlu1 %v7902_v15, %s6425_s14 }
 0x5f3   : > { %2733 = vrot.lane.b32.xlu0 %v7910_v28, %s6423_s21 }
 0x5f5   : > { %2735 = vrot.lane.b32.xlu1 %v7916_v38, %s6423_s21 }
 0x5f7   : > { %2737 = vrot.lane.b32.xlu0 %v7922_v27, %s6423_s21 }
 0x5f9   : > { %2739 = vrot.lane.b32.xlu1 %v7928_v59, %s6423_s21 }
 0x5fb   : > { %2797 = vrot.lane.b32.xlu0 %v7910_v28, %s6422_s3 }
 0x5fd   : > { %2799 = vrot.lane.b32.xlu1 %v7916_v38, %s6422_s3 }
 0x5ff   : > { %2801 = vrot.lane.b32.xlu0 %v7922_v27, %s6422_s3 }
 0x601   : > { %2803 = vrot.lane.b32.xlu1 %v7928_v59, %s6422_s3 }
 0x603   : > { %2741 = vrot.lane.b32.xlu0 %v7942_v14, %s6423_s21 }
 0x605   : > { %2743 = vrot.lane.b32.xlu1 %v7948_v0, %s6423_s21 }
 0x607   : > { %2745 = vrot.lane.b32.xlu0 %v7954_v4, %s6423_s21 }
 0x609   : > { %2747 = vrot.lane.b32.xlu1 %v7963_v35, %s6423_s21 }
 0x60b   : > { %2805 = vrot.lane.b32.xlu0 %v7942_v14, %s6422_s3 }
 0x60d   : > { %2807 = vrot.lane.b32.xlu1 %v7948_v0, %s6422_s3 }
 0x60f   : > { %2809 = vrot.lane.b32.xlu0 %v7954_v4, %s6422_s3 }
 0x611   : > { %2811 = vrot.lane.b32.xlu1 %v7963_v35, %s6422_s3 }
 0x613   : > { %2749 = vrot.lane.b32.xlu0 %v7977_v61, %s6423_s21 }
 0x615   : > { %2751 = vrot.lane.b32.xlu1 %v7983_v60, %s6423_s21 }
 0x617   : > { %2753 = vrot.lane.b32.xlu0 %v7989_v40, %s6423_s21 }
 0x619   : > { %2755 = vrot.lane.b32.xlu1 %v7995_v29, %s6423_s21 }
 0x61a   : > { %v3831_v62 = vpop.permute.xlu0 %3830 }
 0x61b   : > { %2813 = vrot.lane.b32.xlu0 %v7977_v61, %s6422_s3  ;;  %v3924_v3 = vsel %vm2480_vm9, %v7758_v24, %v3831_v62  ;;  %v8021_v24 = vmul.f32 %v7539_v45, %v7539_v45  ;;  %v8035_v45 = vmul.f32 %v7535_v34, %v7535_v34 }
 0x61d   : > { %2815 = vrot.lane.b32.xlu1 %v7983_v60, %s6422_s3  ;;  %v3833_v32 = vpop.permute.xlu1 %3832 }
 0x61e   : > { %v3879_v8 = vpop.permute.xlu0 %3878  ;;  %v3925_v49 = vsel %vm2480_vm9, %v7768_v13, %v3833_v32  ;;  %v8029_v13 = vmul.f32 %v7531_v12, %v7531_v12 }
 0x61f   : > { %2817 = vrot.lane.b32.xlu0 %v7989_v40, %s6422_s3  ;;  %v3940_v30 = vsel %vm2497_vm10, %v3924_v3, %v3879_v8 }
 0x620   : > { %v3956_v63 = vmul.f32 %v7545_v26, %v3940_v30 }
 0x621   : > { %2819 = vrot.lane.b32.xlu1 %v7995_v29, %s6422_s3  ;;  %v3881_v37 = vpop.permute.xlu1 %3880 }
 0x622   : > { %v3941_v19 = vsel %vm2497_vm10, %v3925_v49, %v3881_v37  ;;  %v3827_v25 = vpop.permute.xlu0 %3826 }
 0x623   : > { %2757 = vrot.lane.b32.xlu0 %v8012_v48, %s6423_s21  ;;  %v3957_v58 = vmul.f32 %v7553_v22, %v3941_v19  ;;  %v3922_v26 = vsel %vm2480_vm9, %v7786_v43, %v3827_v25 }
 0x625   : > { %v3999_v39 = vpack.c.bf16 %v3957_v58, %v3956_v63  ;;  %2759 = vrot.lane.b32.xlu1 %v8021_v24, %s6423_s21  ;;  %v3829_v2 = vpop.permute.xlu1 %3828 }
 0x626   : > { %v3875_v10 = vpop.permute.xlu0 %3874  ;;  %v3923_v12 = vsel %vm2480_vm9, %v7797_v44, %v3829_v2  ;;  %v8073_v2 = vld [vmem:[%s8742_s7] sm:$0xff]  }
 0x627   : > { %2761 = vrot.lane.b32.xlu0 %v8029_v13, %s6423_s21  ;;  %v3938_v22 = vsel %vm2497_vm10, %v3922_v26, %v3875_v10  ;;  %5784 = vmatprep.subr.bf16.mxu0 %v8073_v2 }
 0x628   : > { %v3954_v34 = vmul.f32 %v3938_v22, %v7551_v20 }
 0x629   : > { %2763 = vrot.lane.b32.xlu1 %v8035_v45, %s6423_s21  ;;  %v3877_v5 = vpop.permute.xlu1 %3876 }
 0x62a   : > { %v3939_v42 = vsel %vm2497_vm10, %v3923_v12, %v3877_v5 }
 0x62b   : > { %2821 = vrot.lane.b32.xlu0 %v8012_v48, %s6422_s3  ;;  %v3955_v43 = vmul.f32 %v3939_v42, %v7561_v17  ;;  %v3839_v7 = vpop.permute.xlu0 %3838 }
 0x62c   : > { %v3928_v44 = vsel %vm2480_vm9, %v7826_v1, %v3839_v7 }
 0x62d   : > { %v3998_v56 = vpack.c.bf16 %v3955_v43, %v3954_v34  ;;  %2823 = vrot.lane.b32.xlu1 %v8021_v24, %s6422_s3  ;;  %v3841_v62 = vpop.permute.xlu1 %3840 }
 0x62e   : > { %v3929_v17 = vsel %vm2480_vm9, %v7830_v47, %v3841_v62 }
 0x62f   : > { %2825 = vrot.lane.b32.xlu0 %v8029_v13, %s6422_s3  ;;  %v3887_v32 = vpop.permute.xlu0 %3886  ;;  %5828 = vmatprep.mubr.msk.bf16.mxu1 %vm2575_vm11, %v3998_v56 }
 0x630   : > { %v3944_v20 = vsel %vm2497_vm10, %v3928_v44, %v3887_v32  ;;  %5829 = vmatmul.mubr.msk.bf16.vlgmr.msra.gmra.mrb[48].mxu1 %vm2575_vm11, %v3999_v39 }
 0x631   : > { %2827 = vrot.lane.b32.xlu1 %v8035_v45, %s6422_s3  ;;  %v3889_v8 = vpop.permute.xlu1 %3888  ;;  %v3960_v3 = vmul.f32 %v7583_v50, %v3944_v20 }
 0x632   : > { %v3945_v1 = vsel %vm2497_vm10, %v3929_v17, %v3889_v8 }
 0x633   : > { %v3961_v30 = vmul.f32 %v7593_v11, %v3945_v1  ;;  %v3835_v49 = vpop.permute.xlu0 %3834 }
 0x634   : > { %v3926_v25 = vsel %vm2480_vm9, %v7838_v55, %v3835_v49  ;;  %v6074_v49 = vld [vmem:[%s6653_s19] sm:$0xff]  }
 0x635   : > { %v4001_v37 = vpack.c.bf16 %v3961_v30, %v3960_v3  ;;  %v3837_v19 = vpop.permute.xlu1 %3836  ;;  %5882 = vmatprep.subr.bf16.mxu1 %v6074_v49 }
 0x636   : > { %v3927_v47 = vsel %vm2480_vm9, %v7843_v6, %v3837_v19  ;;  %5883 = vmatpush3.bf16.msra.mxu1 %v6074_v49 }
 0x637   : > { %v3883_v63 = vpop.permute.xlu0 %3882 }
 0x638   : > { %v3942_v58 = vsel %vm2497_vm10, %v3926_v25, %v3883_v63 }
 0x639   : > { %v3885_v39 = vpop.permute.xlu1 %3884  ;;  %v3958_v50 = vmul.f32 %v3942_v58, %v7591_v52 }
 0x63a   : > { %v3943_v10 = vsel %vm2497_vm10, %v3927_v47, %v3885_v39 }
 0x63b   : > { %v3959_v11 = vmul.f32 %v3943_v10, %v7601_v21  ;;  %v3847_v26 = vpop.permute.xlu0 %3846 }
 0x63c   : > { %v3932_v12 = vsel %vm2480_vm9, %v7859_v18, %v3847_v26  ;;  %v8743_v26 = vld [vmem:[#allocation19_spill] sm:$0xff] }
 0x63d   : > { %v4000_v22 = vpack.c.bf16 %v3959_v11, %v3958_v50  ;;  %v3849_v55 = vpop.permute.xlu1 %3848 }
 0x63e   : > { %v3933_v52 = vsel %vm2480_vm9, %v7866_v33, %v3849_v55 }
 0x63f   : > { %v3895_v5 = vpop.permute.xlu0 %3894  ;;  %5832 = vmatprep.mubr.msk.bf16.mxu1 %vm2575_vm11, %v4000_v22 }
 0x640   : > { %v3948_v6 = vsel %vm2497_vm10, %v3932_v12, %v3895_v5  ;;  %5833 = vmatmul.mubr.msk.bf16.gmra.mrb[52].mxu1 %vm2575_vm11, %v4001_v37 }
 0x641   : > { %v3897_v42 = vpop.permute.xlu1 %3896  ;;  %v3964_v34 = vmul.f32 %v7623_v41, %v3948_v6 }
 0x642   : > { %v3949_v21 = vsel %vm2497_vm10, %v3933_v52, %v3897_v42 }
 0x643   : > { %v3965_v43 = vmul.f32 %v7633_v57, %v3949_v21  ;;  %v3843_v7 = vpop.permute.xlu0 %3842 }
 0x644   : > { %v3930_v62 = vsel %vm2480_vm9, %v7874_v31, %v3843_v7 }
 0x645   : > { %v4003_v56 = vpack.c.bf16 %v3965_v43, %v3964_v34  ;;  %v3845_v18 = vpop.permute.xlu1 %3844 }
 0x646   : > { %v3931_v33 = vsel %vm2480_vm9, %v7878_v23, %v3845_v18 }
 0x647   : > { %v3891_v44 = vpop.permute.xlu0 %3890 }
 0x648   : > { %v3946_v32 = vsel %vm2497_vm10, %v3930_v62, %v3891_v44 }
 0x649   : > { %v3893_v20 = vpop.permute.xlu1 %3892  ;;  %v3962_v41 = vmul.f32 %v3946_v32, %v7631_v53 }
 0x64a   : > { %v3947_v17 = vsel %vm2497_vm10, %v3931_v33, %v3893_v20 }
 0x64b   : > { %v3963_v57 = vmul.f32 %v3947_v17, %v7641_v16 }
 0x64d   : > { %v4002_v8 = vpack.c.bf16 %v3963_v57, %v3962_v41 }
 0x64f   : > { %5836 = vmatprep.mubr.msk.bf16.mxu1 %vm2575_vm11, %v4002_v8 }
 0x650   : > { %5837 = vmatmul.mubr.msk.bf16.gmra.mrb[56].mxu1 %vm2575_vm11, %v4003_v56 }
 0x655   : > { %v3855_v1 = vpop.permute.xlu0 %3854 }
 0x656   : > { %v3936_v3 = vsel %vm2480_vm9, %v7886_v9, %v3855_v1 }
 0x657   : > { %v3857_v31 = vpop.permute.xlu1 %3856 }
 0x658   : > { %v3937_v37 = vsel %vm2480_vm9, %v7890_v51, %v3857_v31 }
 0x659   : > { %v3903_v30 = vpop.permute.xlu0 %3902 }
 0x65a   : > { %v3952_v23 = vsel %vm2497_vm10, %v3936_v3, %v3903_v30 }
 0x65b   : > { %v3905_v53 = vpop.permute.xlu1 %3904  ;;  %v3968_v19 = vmul.f32 %v7663_v54, %v3952_v23  ;;  %v8744_v54 = vld [vmem:[#allocation20_spill] sm:$0xff] }
 0x65c   : > { %v3953_v16 = vsel %vm2497_vm10, %v3937_v37, %v3905_v53 }
 0x65d   : > { %v3969_v25 = vmul.f32 %v7673_v36, %v3953_v16  ;;  %v3851_v63 = vpop.permute.xlu0 %3850 }
 0x65e   : > { %v3934_v9 = vsel %vm2480_vm9, %v7898_v46, %v3851_v63 }
 0x65f   : > { %v4005_v58 = vpack.c.bf16 %v3969_v25, %v3968_v19  ;;  %v3853_v47 = vpop.permute.xlu1 %3852 }
 0x660   : > { %v3935_v51 = vsel %vm2480_vm9, %v7902_v15, %v3853_v47 }
 0x661   : > { %v3899_v39 = vpop.permute.xlu0 %3898 }
 0x662   : > { %v3950_v10 = vsel %vm2497_vm10, %v3934_v9, %v3899_v39 }
 0x663   : > { %v3901_v50 = vpop.permute.xlu1 %3900  ;;  %v3966_v22 = vmul.f32 %v3950_v10, %v8743_v26 }
 0x664   : > { %v3951_v11 = vsel %vm2497_vm10, %v3935_v51, %v3901_v50 }
 0x665   : > { %v3967_v55 = vmul.f32 %v3951_v11, %v8744_v54  ;;  %v2734_v36 = vpop.permute.xlu0 %2733 }
 0x666   : > { %v2781_v52 = vadd.f32 %v2734_v36, %v7910_v28 }
 0x667   : > { %v4004_v12 = vpack.c.bf16 %v3967_v55, %v3966_v22  ;;  %v2736_v5 = vpop.permute.xlu1 %2735 }
 0x668   : > { %v2782_v15 = vadd.f32 %v2736_v5, %v7916_v38 }
 0x669   : > { %v2738_v6 = vpop.permute.xlu0 %2737  ;;  %5840 = vmatprep.mubr.msk.bf16.mxu1 %vm2575_vm11, %v4004_v12 }
 0x66a   : > { %5841 = vmatmul.mubr.msk.bf16.gmra.mrb[60].mxu1 %vm2575_vm11, %v4005_v58  ;;  %v2783_v43 = vadd.f32 %v2738_v6, %v7922_v27 }
 0x66b   : > { %v2740_v46 = vpop.permute.xlu1 %2739 }
 0x66c   : > { %v2784_v62 = vadd.f32 %v2740_v46, %v7928_v59 }
 0x66d   : > { %v2798_v42 = vpop.permute.xlu0 %2797 }
 0x66e   : > { %v2845_v21 = vadd.f32 %v2798_v42, %v2781_v52  ;;  %v6075_v42 = vld [vmem:[%s6653_s19 + $0x8] ss:$0 sps:$4 sm:$0xff]  }
 0x66f   : > { %v2800_v34 = vpop.permute.xlu1 %2799  ;;  %5978 = vmatprep.subr.msk.bf16.mxu1 %vm2600_vm3, %v6075_v42 }
 0x670   : > { %v2861_v7 = vmax.f32 %v2845_v21, 1e-08  ;;  %v2846_v56 = vadd.f32 %v2800_v34, %v2782_v15 }
 0x671   : > { %v2802_v18 = vpop.permute.xlu0 %2801 }
 0x672   : > { %6302 = vrsqrt.f32 %v2861_v7  ;;  %v2862_v44 = vmax.f32 %v2846_v56, 1e-08  ;;  %v2847_v32 = vadd.f32 %v2802_v18, %v2783_v43  ;;  %vm2879_vm10 = vcmp.eq.f32.partialorder %v2861_v7, inf }
 0x673   : > { %v2804_v33 = vpop.permute.xlu1 %2803  ;;  %vm2881_vm5 = vcmp.eq.f32.partialorder %v2861_v7, 0.0  ;;  %v2882_v23 = vand.u32 2147483648, %v2861_v7  ;;  %v4764_v18 = vsel %vm2600_vm3, %v6075_v42, 0 }
 0x674   : > { %6304 = vrsqrt.f32 %v2862_v44  ;;  %v2863_v20 = vmax.f32 %v2847_v32, 1e-08  ;;  %v2848_v17 = vadd.f32 %v2804_v33, %v2784_v62  ;;  %vm2886_vm6 = vcmp.eq.f32.partialorder %v2862_v44, inf  ;;  %5885 = vmatpush3.bf16.msra.mxu1 %v4764_v18 }
 0x675   : > { %v2742_v28 = vpop.permute.xlu0 %2741  ;;  %vm2888_vm7 = vcmp.eq.f32.partialorder %v2862_v44, 0.0  ;;  %v2889_v19 = vand.u32 2147483648, %v2862_v44 }
 0x676   : > { %6306 = vrsqrt.f32 %v2863_v20  ;;  %v2864_v41 = vmax.f32 %v2848_v17, 1e-08  ;;  %v2785_v1 = vadd.f32 %v2742_v28, %v7942_v14  ;;  %vm2893_vm8 = vcmp.eq.f32.partialorder %v2863_v20, inf }
 0x677   : > { %v2744_v38 = vpop.permute.xlu1 %2743  ;;  %vm2895_vm12 = vcmp.eq.f32.partialorder %v2863_v20, 0.0  ;;  %v2896_v12 = vand.u32 2147483648, %v2863_v20 }
 0x678   : > { %6308 = vrsqrt.f32 %v2864_v41  ;;  %v2786_v30 = vadd.f32 %v2744_v38, %v7948_v0  ;;  %vm2900_vm13 = vcmp.eq.f32.partialorder %v2864_v41, inf  ;;  %v2903_v5 = vand.u32 2147483648, %v2864_v41 }
 0x679   : > { %v2746_v57 = vpop.permute.xlu0 %2745  ;;  %vm2902_vm14 = vcmp.eq.f32.partialorder %v2864_v41, 0.0 }
 0x67a   : > { %v2787_v63 = vadd.f32 %v2746_v57, %v7954_v4 }
 0x67b   : > { %v2748_v8 = vpop.permute.xlu1 %2747 }
 0x67c   : > { %v6303_v27 = vpop.eup %6302  ;;  %v2788_v9 = vadd.f32 %v2748_v8, %v7963_v35 }
 0x67d   : > { %v2806_v31 = vpop.permute.xlu0 %2805  ;;  %v2878_v3 = vmul.f32 %v6303_v27, %v2861_v7 }
 0x67e   : > { %v6305_v59 = vpop.eup %6304  ;;  %v2849_v49 = vadd.f32 %v2806_v31, %v2785_v1 }
 0x67f   : > { %v2808_v37 = vpop.permute.xlu1 %2807  ;;  %v2880_v53 = vsel %vm2879_vm10, %v2861_v7, %v2878_v3  ;;  %v2885_v16 = vmul.f32 %v6305_v59, %v2862_v44  ;;  %v6073_v7 = vld [vmem:[%s8742_s7 + $0x8] sm:$0xff]  }
 0x680   : > { %v6307_v25 = vpop.eup %6306  ;;  %v8125_v14 = vmax.f32 %v2849_v49, 1e-08  ;;  %v2850_v58 = vadd.f32 %v2808_v37, %v2786_v30  ;;  %v2883_v0 = vsel %vm2881_vm5, %v2882_v23, %v2880_v53 }
 0x681   : > { %v2892_v47 = vmul.f32 %v6307_v25, %v2863_v20  ;;  %v2810_v39 = vpop.permute.xlu0 %2809  ;;  %v2887_v10 = vsel %vm2886_vm6, %v2862_v44, %v2885_v16 }
 0x682   : > { %6310 = vrsqrt.f32 %v8125_v14  ;;  %v8130_v51 = vmax.f32 %v2850_v58, 1e-08  ;;  %v2851_v50 = vadd.f32 %v2810_v39, %v2787_v63  ;;  %v2890_v11 = vsel %vm2888_vm7, %v2889_v19, %v2887_v10  ;;  %v6309_v26 = vpop.eup %6308 }
 0x683   : > { %v2894_v22 = vsel %vm2893_vm8, %v2863_v20, %v2892_v47  ;;  %v2812_v54 = vpop.permute.xlu1 %2811  ;;  %v2997_v4 = vpack.c.bf16 %v2890_v11, %v2883_v0  ;;  %v2899_v55 = vmul.f32 %v6309_v26, %v2864_v41  ;;  %vm2907_vm15 = vcmp.eq.f32.partialorder %v8125_v14, inf }
 0x684   : > { %6312 = vrsqrt.f32 %v8130_v51  ;;  %v8133_v36 = vmax.f32 %v2851_v50, 1e-08  ;;  %v2852_v35 = vadd.f32 %v2812_v54, %v2788_v9  ;;  %v2897_v21 = vsel %vm2895_vm12, %v2896_v12, %v2894_v22 }
 0x685   : > { %v2750_v6 = vpop.permute.xlu0 %2749  ;;  %5768 = vmatprep.mubr.msk.bf16.mxu0 %vm2480_vm9, %v2997_v4  ;;  %v2901_v46 = vsel %vm2900_vm13, %v2864_v41, %v2899_v55  ;;  %vm2909_vm0 = vcmp.eq.f32.partialorder %v8125_v14, 0.0  ;;  %v2910_v17 = vand.u32 2147483648, %v8125_v14  ;;  %vm2914_vm1 = vcmp.eq.f32.partialorder %v8130_v51, inf }
 0x686   : > { %6314 = vrsqrt.f32 %v8133_v36  ;;  %v8137_v52 = vmax.f32 %v2852_v35, 1e-08  ;;  %v2904_v34 = vsel %vm2902_vm14, %v2903_v5, %v2901_v46  ;;  %v2789_v32 = vadd.f32 %v2750_v6, %v7977_v61 }
 0x687   : > { %v2752_v15 = vpop.permute.xlu1 %2751  ;;  %v2998_v43 = vpack.c.bf16 %v2904_v34, %v2897_v21  ;;  %vm2916_vm2 = vcmp.eq.f32.partialorder %v8130_v51, 0.0  ;;  %v2917_v8 = vand.u32 2147483648, %v8130_v51  ;;  %vm2921_vm4 = vcmp.eq.f32.partialorder %v8133_v36, inf }
 0x688   : > { %6316 = vrsqrt.f32 %v8137_v52  ;;  %v2790_v41 = vadd.f32 %v2752_v15, %v7983_v60  ;;  %v2924_v3 = vand.u32 2147483648, %v8133_v36  ;;  %vm2928_vm10 = vcmp.eq.f32.partialorder %v8137_v52, inf }
 0x689   : > { %v2754_v56 = vpop.permute.xlu0 %2753  ;;  %5769 = vmatmul.mubr.msk.bf16.vlgmr.msra.gmra.mrb[32].mxu0 %vm2480_vm9, %v2998_v43  ;;  %v2931_v9 = vand.u32 2147483648, %v8137_v52  ;;  %vm2923_vm5 = vcmp.eq.f32.partialorder %v8133_v36, 0.0  ;;  %vm2930_vm6 = vcmp.eq.f32.partialorder %v8137_v52, 0.0 }
 0x68a   : > { %5785 = vmatpush3.bf16.msra.mxu0 %v8073_v2  ;;  %v2791_v1 = vadd.f32 %v2754_v56, %v7989_v40 }
 0x68b   : > { %v2756_v62 = vpop.permute.xlu1 %2755  ;;  %5786 = vmatprep.subr.bf16.mxu0 %v6073_v7 }
 0x68c   : > { %v6311_v44 = vpop.eup %6310  ;;  %v2792_v59 = vadd.f32 %v2756_v62, %v7995_v29 }
 0x68d   : > { %v2814_v33 = vpop.permute.xlu0 %2813  ;;  %v2906_v20 = vmul.f32 %v6311_v44, %v8125_v14 }
 0x68e   : > { %v6313_v28 = vpop.eup %6312  ;;  %v2853_v38 = vadd.f32 %v2814_v33, %v2789_v32  ;;  %5787 = vmatpush3.bf16.msra.mxu0 %v6073_v7 }
 0x68f   : > { %v2816_v2 = vpop.permute.xlu1 %2815  ;;  %v2908_v61 = vsel %vm2907_vm15, %v8125_v14, %v2906_v20  ;;  %v2913_v57 = vmul.f32 %v6313_v28, %v8130_v51 }
 0x690   : > { %v6315_v27 = vpop.eup %6314  ;;  %v8159_v31 = vmax.f32 %v2853_v38, 1e-08  ;;  %v2854_v60 = vadd.f32 %v2816_v2, %v2790_v41  ;;  %v2911_v49 = vsel %vm2909_vm0, %v2910_v17, %v2908_v61 }
 0x691   : > { %v2818_v30 = vpop.permute.xlu0 %2817  ;;  %v2915_v23 = vsel %vm2914_vm1, %v8130_v51, %v2913_v57  ;;  %v2920_v37 = vmul.f32 %v6315_v27, %v8133_v36 }
 0x692   : > { %v6317_v53 = vpop.eup %6316  ;;  %6318 = vrsqrt.f32 %v8159_v31  ;;  %v2870_v40 = vmax.f32 %v2854_v60, 1e-08  ;;  %v2855_v16 = vadd.f32 %v2818_v30, %v2791_v1  ;;  %v2918_v19 = vsel %vm2916_vm2, %v2917_v8, %v2915_v23 }
 0x693   : > { %v2820_v25 = vpop.permute.xlu1 %2819  ;;  %v2999_v29 = vpack.c.bf16 %v2918_v19, %v2911_v49  ;;  %v2922_v63 = vsel %vm2921_vm4, %v8133_v36, %v2920_v37  ;;  %v2927_v14 = vmul.f32 %v6317_v53, %v8137_v52  ;;  %vm2935_vm7 = vcmp.eq.f32.partialorder %v8159_v31, inf }
 0x694   : > { %6320 = vrsqrt.f32 %v2870_v40  ;;  %v8177_v58 = vmax.f32 %v2855_v16, 1e-08  ;;  %v2856_v47 = vadd.f32 %v2820_v25, %v2792_v59  ;;  %v2925_v51 = vsel %vm2923_vm5, %v2924_v3, %v2922_v63 }
 0x695   : > { %v2758_v39 = vpop.permute.xlu0 %2757  ;;  %5772 = vmatprep.mubr.msk.bf16.mxu0 %vm2480_vm9, %v2999_v29  ;;  %v2929_v0 = vsel %vm2928_vm10, %v8137_v52, %v2927_v14  ;;  %vm2937_vm8 = vcmp.eq.f32.partialorder %v8159_v31, 0.0  ;;  %v2938_v12 = vand.u32 2147483648, %v8159_v31  ;;  %vm2942_vm12 = vcmp.eq.f32.partialorder %v2870_v40, inf }
 0x696   : > { %6322 = vrsqrt.f32 %v8177_v58  ;;  %v2872_v10 = vmax.f32 %v2856_v47, 1e-08  ;;  %v2932_v50 = vsel %vm2930_vm6, %v2931_v9, %v2929_v0  ;;  %v2793_v55 = vadd.f32 %v2758_v39, %v8012_v48 }
 0x697   : > { %v2760_v11 = vpop.permute.xlu1 %2759  ;;  %v3000_v26 = vpack.c.bf16 %v2932_v50, %v2925_v51  ;;  %vm2944_vm13 = vcmp.eq.f32.partialorder %v2870_v40, 0.0  ;;  %v2945_v48 = vand.u32 2147483648, %v2870_v40  ;;  %vm2949_vm14 = vcmp.eq.f32.partialorder %v8177_v58, inf }
 0x698   : > { %6324 = vrsqrt.f32 %v2872_v10  ;;  %v2794_v6 = vadd.f32 %v2760_v11, %v8021_v24  ;;  %v2952_v56 = vand.u32 2147483648, %v8177_v58  ;;  %vm2956_vm15 = vcmp.eq.f32.partialorder %v2872_v10, inf  ;;  %v8745_v11 = vld [vmem:[#allocation12_spill] sm:$0xff] }
 0x699   : > { %v2762_v22 = vpop.permute.xlu0 %2761  ;;  %5773 = vmatmul.mubr.msk.bf16.gmra.mrb[36].mxu0 %vm2480_vm9, %v3000_v26  ;;  %v2959_v57 = vand.u32 2147483648, %v2872_v10  ;;  %vm2951_vm0 = vcmp.eq.f32.partialorder %v8177_v58, 0.0  ;;  %vm2958_vm1 = vcmp.eq.f32.partialorder %v2872_v10, 0.0  ;;  %v8746_v26 = vld [vmem:[#allocation11_spill] sm:$0xff] }
 0x69a   : > { %v2795_v34 = vadd.f32 %v2762_v22, %v8029_v13  ;;  %v8747_v22 = vld [vmem:[#allocation14_spill] sm:$0xff] }
 0x69b   : > { %v2764_v54 = vpop.permute.xlu1 %2763 }
 0x69c   : > { %v6319_v4 = vpop.eup %6318  ;;  %v2796_v18 = vadd.f32 %v2764_v54, %v8035_v45  ;;  %v8748_v54 = vld [vmem:[#allocation13_spill] sm:$0xff] }
 0x69d   : > { %v2822_v36 = vpop.permute.xlu0 %2821  ;;  %v2934_v35 = vmul.f32 %v6319_v4, %v8159_v31  ;;  %v8749_v4 = vld [vmem:[#allocation16_spill] sm:$0xff] }
 0x69e   : > { %v6321_v5 = vpop.eup %6320  ;;  %v2857_v46 = vadd.f32 %v2822_v36, %v2793_v55  ;;  %v8750_v55 = vld [vmem:[#allocation15_spill] sm:$0xff]  ;;  %v8751_v36 = vld [vmem:[#allocation18_spill] sm:$0xff] }
 0x69f   : > { %v2824_v52 = vpop.permute.xlu1 %2823  ;;  %v2936_v42 = vsel %vm2935_vm7, %v8159_v31, %v2934_v35  ;;  %v2941_v15 = vmul.f32 %v6321_v5, %v2870_v40  ;;  %v8752_v35 = vld [vmem:[#allocation17_spill] sm:$0xff] }
 0x6a0   : > { %v6323_v21 = vpop.eup %6322  ;;  %v2873_v43 = vmax.f32 %v2857_v46, 1e-08  ;;  %v2858_v7 = vadd.f32 %v2824_v52, %v2794_v6  ;;  %v2939_v62 = vsel %vm2937_vm8, %v2938_v12, %v2936_v42 }
 0x6a1   : > { %v2826_v24 = vpop.permute.xlu0 %2825  ;;  %v2943_v44 = vsel %vm2942_vm12, %v2870_v40, %v2941_v15  ;;  %v2948_v32 = vmul.f32 %v6323_v21, %v8177_v58 }
 0x6a2   : > { %v6325_v33 = vpop.eup %6324  ;;  %6326 = vrsqrt.f32 %v2873_v43  ;;  %v2874_v20 = vmax.f32 %v2858_v7, 1e-08  ;;  %v2859_v17 = vadd.f32 %v2826_v24, %v2795_v34  ;;  %v2946_v28 = vsel %vm2944_vm13, %v2945_v48, %v2943_v44 }
 0x6a3   : > { %v2828_v13 = vpop.permute.xlu1 %2827  ;;  %v3001_v41 = vpack.c.bf16 %v2946_v28, %v2939_v62  ;;  %v2950_v38 = vsel %vm2949_vm14, %v8177_v58, %v2948_v32  ;;  %v2955_v45 = vmul.f32 %v6325_v33, %v2872_v10  ;;  %vm2963_vm2 = vcmp.eq.f32.partialorder %v2873_v43, inf }
 0x6a4   : > { %6328 = vrsqrt.f32 %v2874_v20  ;;  %v2875_v2 = vmax.f32 %v2859_v17, 1e-08  ;;  %v2860_v61 = vadd.f32 %v2828_v13, %v2796_v18  ;;  %v2953_v1 = vsel %vm2951_vm0, %v2952_v56, %v2950_v38 }
 0x6a5   : > { %5776 = vmatprep.mubr.msk.bf16.mxu0 %vm2480_vm9, %v3001_v41  ;;  %v2957_v8 = vsel %vm2956_vm15, %v2872_v10, %v2955_v45  ;;  %v2966_v53 = vand.u32 2147483648, %v2873_v43  ;;  %vm2970_vm4 = vcmp.eq.f32.partialorder %v2874_v20, inf  ;;  %v2973_v40 = vand.u32 2147483648, %v2874_v20 }
 0x6a6   : > { %6330 = vrsqrt.f32 %v2875_v2  ;;  %v2876_v27 = vmax.f32 %v2860_v61, 1e-08  ;;  %v2960_v31 = vsel %vm2958_vm1, %v2959_v57, %v2957_v8  ;;  %vm2965_vm10 = vcmp.eq.f32.partialorder %v2873_v43, 0.0 }
 0x6a7   : > { %v3002_v60 = vpack.c.bf16 %v2960_v31, %v2953_v1  ;;  %vm2972_vm5 = vcmp.eq.f32.partialorder %v2874_v20, 0.0  ;;  %vm2977_vm6 = vcmp.eq.f32.partialorder %v2875_v2, inf  ;;  %v2980_v9 = vand.u32 2147483648, %v2875_v2 }
 0x6a8   : > { %6332 = vrsqrt.f32 %v2876_v27  ;;  %vm2984_vm7 = vcmp.eq.f32.partialorder %v2876_v27, inf  ;;  %v2987_v39 = vand.u32 2147483648, %v2876_v27  ;;  %vm2979_vm8 = vcmp.eq.f32.partialorder %v2875_v2, 0.0 }
 0x6a9   : > { %5777 = vmatmul.mubr.msk.bf16.gmra.mrb[40].mxu0 %vm2480_vm9, %v3002_v60  ;;  %vm2986_vm12 = vcmp.eq.f32.partialorder %v2876_v27, 0.0  ;;  %vm3141_vm13 = vcmask 261120  }
 0x6ac   : > { %v6327_v3 = vpop.eup %6326 }
 0x6ad   : > { %v2962_v59 = vmul.f32 %v6327_v3, %v2873_v43 }
 0x6ae   : > { %v6329_v30 = vpop.eup %6328 }
 0x6af   : > { %v2964_v49 = vsel %vm2963_vm2, %v2873_v43, %v2962_v59  ;;  %v2969_v23 = vmul.f32 %v6329_v30, %v2874_v20 }
 0x6b0   : > { %v6331_v37 = vpop.eup %6330  ;;  %v2967_v29 = vsel %vm2965_vm10, %v2966_v53, %v2964_v49 }
 0x6b1   : > { %v2971_v16 = vsel %vm2970_vm4, %v2874_v20, %v2969_v23  ;;  %v2976_v19 = vmul.f32 %v6331_v37, %v2875_v2  ;;  %v3993_v20 = vld [vmem:[%s6644_s15] sm:$0xf]  ;;  %s8756_s15 = sld [smem:[#allocation22_spill]] }
 0x6b2   : > { %v6333_v25 = vpop.eup %6332  ;;  %v2974_v63 = vsel %vm2972_vm5, %v2973_v40, %v2971_v16  ;;  %5977 = vmatprep.subr.msk.bf16.mxu0 %vm2600_vm3, %v3993_v20  ;;  %v4468_v28 = vsel %vm2600_vm3, %v3993_v20, 0  ;;  %v8318_v40 = vld [vmem:[%s6637_s12] sm:$0xff]  }
 0x6b3   : > { %v3003_v14 = vpack.c.bf16 %v2974_v63, %v2967_v29  ;;  %v2978_v58 = vsel %vm2977_vm6, %v2875_v2, %v2976_v19  ;;  %v2983_v47 = vmul.f32 %v6333_v25, %v2876_v27 }
 0x6b4   : > { %v2981_v10 = vsel %vm2979_vm8, %v2980_v9, %v2978_v58 }
 0x6b5   : > { %5780 = vmatprep.mubr.msk.bf16.mxu0 %vm2480_vm9, %v3003_v14  ;;  %v2985_v0 = vsel %vm2984_vm7, %v2876_v27, %v2983_v47 }
 0x6b6   : > { %v2988_v51 = vsel %vm2986_vm12, %v2987_v39, %v2985_v0 }
 0x6b7   : > { %v3004_v50 = vpack.c.bf16 %v2988_v51, %v2981_v10  ;;  %s8757_s10 = scalar_lea.vmem %s8756_s15, %s8755_s18 }
 0x6b9   : > { %5781 = vmatmul.mubr.msk.bf16.gmra.mrb[44].mxu0 %vm2480_vm9, %v3004_v50 }
 0x6ba   : > { %5788 = vmatprep.mubr.msk.bf16.mxu0 %vm3141_vm13, %v8745_v11 }
 0x6c1   : > { %5789 = vmatmul.mubr.msk.bf16.vlgmr.msra.gmra.mrb[32].mxu0 %vm3141_vm13, %v8746_v26 }
 0x6c2   : > { %5792 = vmatprep.mubr.msk.bf16.mxu0 %vm3141_vm13, %v8747_v22  ;;  %5845 = vmatpush3.bf16.msra.mxu0 %v4468_v28 }
 0x6c3   : > { %5862 = vmatprep.subr.bf16.mxu0 %v8318_v40 }
 0x6c9   : > { %5793 = vmatmul.mubr.msk.bf16.gmra.mrb[36].mxu0 %vm3141_vm13, %v8748_v54 }
 0x6ca   : > { %5796 = vmatprep.mubr.msk.bf16.mxu0 %vm3141_vm13, %v8749_v4 }
 0x6d1   : > { %5797 = vmatmul.mubr.msk.bf16.gmra.mrb[40].mxu0 %vm3141_vm13, %v8750_v55 }
 0x6d2   : > { %5800 = vmatprep.mubr.msk.bf16.mxu0 %vm3141_vm13, %v8751_v36 }
 0x6d9   : > { %5801 = vmatmul.mubr.msk.bf16.gmra.mrb[44].mxu0 %vm3141_vm13, %v8752_v35 }
 0x703   : > { %v5830_v12 = vpop.f32.mrb[48].mxu1 }
 0x704   : > { %v8225_v5 = vmul.f32 %v5830_v12, %v5830_v12  ;;  %v4076_v6 = vpop.f32.mrb[49].mxu1 }
 0x705   : > { %v5831_v46 = vpop.f32.mrb[50].mxu1  ;;  %v8237_v21 = vmul.f32 %v4076_v6, %v4076_v6 }
 0x706   : > { %v8227_v52 = vmul.f32 %v5831_v46, %v5831_v46  ;;  %v4723_v42 = vpack.c.bf16 %v5831_v46, %v5830_v12  ;;  %4175 = vrot.lane.b32.xlu0 %v8225_v5, %s6423_s21  ;;  %v4079_v15 = vpop.f32.mrb[51].mxu1 }
 0x707   : > { %v4722_v48 = vpack.c.bf16 %v4079_v15, %v4076_v6  ;;  %v8241_v34 = vmul.f32 %v4079_v15, %v4079_v15 }
 0x708   : > { %4177 = vrot.lane.b32.xlu1 %v8227_v52, %s6423_s21 }
 0x709   : > { %5886 = vmatprep.mubr.msk.bf16.mxu1 %vm2575_vm11, %v4722_v48 }
 0x70a   : > { %4239 = vrot.lane.b32.xlu0 %v8225_v5, %s6422_s3  ;;  %5887 = vmatmul.mubr.msk.bf16.vlgmr.msra.gmra.mrb[64].mxu1 %vm2575_vm11, %v4723_v42 }
 0x70c   : > { %4241 = vrot.lane.b32.xlu1 %v8227_v52, %s6422_s3 }
 0x70e   : > { %4171 = vrot.lane.b32.xlu0 %v8237_v21, %s6423_s21 }
 0x710   : > { %4173 = vrot.lane.b32.xlu1 %v8241_v34, %s6423_s21 }
 0x712   : > { %4235 = vrot.lane.b32.xlu0 %v8237_v21, %s6422_s3 }
 0x713   : > { %v5834_v43 = vpop.f32.mrb[52].mxu1 }
 0x714   : > { %v8249_v7 = vmul.f32 %v5834_v43, %v5834_v43  ;;  %v4092_v56 = vpop.f32.mrb[53].mxu1  ;;  %4237 = vrot.lane.b32.xlu1 %v8241_v34, %s6422_s3 }
 0x715   : > { %v5835_v18 = vpop.f32.mrb[54].mxu1  ;;  %v8263_v33 = vmul.f32 %v4092_v56, %v4092_v56 }
 0x716   : > { %v8253_v24 = vmul.f32 %v5835_v18, %v5835_v18  ;;  %v4725_v62 = vpack.c.bf16 %v5835_v18, %v5834_v43  ;;  %4183 = vrot.lane.b32.xlu0 %v8249_v7, %s6423_s21  ;;  %v4095_v44 = vpop.f32.mrb[55].mxu1 }
 0x717   : > { %v4724_v32 = vpack.c.bf16 %v4095_v44, %v4092_v56  ;;  %v8269_v17 = vmul.f32 %v4095_v44, %v4095_v44 }
 0x718   : > { %4185 = vrot.lane.b32.xlu1 %v8253_v24, %s6423_s21 }
 0x719   : > { %5890 = vmatprep.mubr.msk.bf16.mxu1 %vm2575_vm11, %v4724_v32 }
 0x71a   : > { %4247 = vrot.lane.b32.xlu0 %v8249_v7, %s6422_s3  ;;  %5891 = vmatmul.mubr.msk.bf16.gmra.mrb[68].mxu1 %vm2575_vm11, %v4725_v62 }
 0x71c   : > { %4249 = vrot.lane.b32.xlu1 %v8253_v24, %s6422_s3 }
 0x71e   : > { %4179 = vrot.lane.b32.xlu0 %v8263_v33, %s6423_s21 }
 0x720   : > { %4181 = vrot.lane.b32.xlu1 %v8269_v17, %s6423_s21 }
 0x722   : > { %4243 = vrot.lane.b32.xlu0 %v8263_v33, %s6422_s3 }
 0x723   : > { %v5838_v13 = vpop.f32.mrb[56].mxu1 }
 0x724   : > { %v8278_v41 = vmul.f32 %v5838_v13, %v5838_v13  ;;  %v4108_v38 = vpop.f32.mrb[57].mxu1  ;;  %4245 = vrot.lane.b32.xlu1 %v8269_v17, %s6422_s3 }
 0x725   : > { %v5839_v45 = vpop.f32.mrb[58].mxu1  ;;  %v8292_v27 = vmul.f32 %v4108_v38, %v4108_v38 }
 0x726   : > { %v8282_v2 = vmul.f32 %v5839_v45, %v5839_v45  ;;  %v4727_v61 = vpack.c.bf16 %v5839_v45, %v5838_v13  ;;  %4191 = vrot.lane.b32.xlu0 %v8278_v41, %s6423_s21  ;;  %v4111_v57 = vpop.f32.mrb[59].mxu1 }
 0x727   : > { %v4726_v8 = vpack.c.bf16 %v4111_v57, %v4108_v38  ;;  %v8296_v1 = vmul.f32 %v4111_v57, %v4111_v57 }
 0x728   : > { %4193 = vrot.lane.b32.xlu1 %v8282_v2, %s6423_s21 }
 0x729   : > { %5894 = vmatprep.mubr.msk.bf16.mxu1 %vm2575_vm11, %v4726_v8 }
 0x72a   : > { %4255 = vrot.lane.b32.xlu0 %v8278_v41, %s6422_s3  ;;  %5895 = vmatmul.mubr.msk.bf16.gmra.mrb[72].mxu1 %vm2575_vm11, %v4727_v61 }
 0x72c   : > { %4257 = vrot.lane.b32.xlu1 %v8282_v2, %s6422_s3 }
 0x72e   : > { %4187 = vrot.lane.b32.xlu0 %v8292_v27, %s6423_s21 }
 0x730   : > { %4189 = vrot.lane.b32.xlu1 %v8296_v1, %s6423_s21 }
 0x732   : > { %4251 = vrot.lane.b32.xlu0 %v8292_v27, %s6422_s3 }
 0x734   : > { %4253 = vrot.lane.b32.xlu1 %v8296_v1, %s6422_s3 }
 0x73d   : > { %v5842_v31 = vpop.f32.mrb[60].mxu1 }
 0x73e   : > { %v8306_v60 = vmul.f32 %v5842_v31, %v5842_v31  ;;  %v4124_v3 = vpop.f32.mrb[61].mxu1 }
 0x73f   : > { %v5843_v59 = vpop.f32.mrb[62].mxu1  ;;  %v8312_v53 = vmul.f32 %v4124_v3, %v4124_v3 }
 0x740   : > { %v8308_v30 = vmul.f32 %v5843_v59, %v5843_v59  ;;  %v4729_v49 = vpack.c.bf16 %v5843_v59, %v5842_v31  ;;  %4199 = vrot.lane.b32.xlu0 %v8306_v60, %s6423_s21  ;;  %v4127_v23 = vpop.f32.mrb[63].mxu1 }
 0x741   : > { %v4728_v37 = vpack.c.bf16 %v4127_v23, %v4124_v3  ;;  %v8320_v16 = vmul.f32 %v4127_v23, %v4127_v23 }
 0x742   : > { %4201 = vrot.lane.b32.xlu1 %v8308_v30, %s6423_s21 }
 0x743   : > { %5898 = vmatprep.mubr.msk.bf16.mxu1 %vm2575_vm11, %v4728_v37 }
 0x744   : > { %4195 = vrot.lane.b32.xlu0 %v8312_v53, %s6423_s21  ;;  %5899 = vmatmul.mubr.msk.bf16.gmra.mrb[76].mxu1 %vm2575_vm11, %v4729_v49 }
 0x746   : > { %4197 = vrot.lane.b32.xlu1 %v8320_v16, %s6423_s21 }
 0x748   : > { %4259 = vrot.lane.b32.xlu0 %v8312_v53, %s6422_s3 }
 0x74a   : > { %4261 = vrot.lane.b32.xlu1 %v8320_v16, %s6422_s3 }
 0x74c   : > { %4263 = vrot.lane.b32.xlu0 %v8306_v60, %s6422_s3 }
 0x74e   : > { %4265 = vrot.lane.b32.xlu1 %v8308_v30, %s6422_s3 }
 0x778   : > { %v4176_v19 = vpop.permute.xlu0 %4175 }
 0x779   : > { %v4221_v63 = vadd.f32 %v4176_v19, %v8225_v5 }
 0x77a   : > { %v4178_v25 = vpop.permute.xlu1 %4177 }
 0x77b   : > { %v4222_v14 = vadd.f32 %v4178_v25, %v8227_v52 }
 0x77c   : > { %v4240_v29 = vpop.permute.xlu0 %4239 }
 0x77d   : > { %v4285_v47 = vadd.f32 %v4240_v29, %v4221_v63 }
 0x77e   : > { %v4242_v58 = vpop.permute.xlu1 %4241 }
 0x77f   : > { %v4286_v9 = vadd.f32 %v4242_v58, %v4222_v14  ;;  %v8340_v51 = vmax.f32 %v4285_v47, 1e-08 }
 0x780   : > { %v4172_v39 = vpop.permute.xlu0 %4171 }
 0x781   : > { %v8338_v0 = vmax.f32 %v4286_v9, 1e-08  ;;  %v4219_v50 = vadd.f32 %v4172_v39, %v8237_v21  ;;  %vm4331_vm3 = vcmp.eq.f32.partialorder %v8340_v51, inf  ;;  %v4334_v56 = vand.u32 2147483648, %v8340_v51 }
 0x782   : > { %v4174_v10 = vpop.permute.xlu1 %4173  ;;  %vm4333_vm11 = vcmp.eq.f32.partialorder %v8340_v51, 0.0 }
 0x783   : > { %6334 = vrsqrt.f32 %v8338_v0  ;;  %v4220_v26 = vadd.f32 %v4174_v10, %v8241_v34  ;;  %vm4338_vm14 = vcmp.eq.f32.partialorder %v8338_v0, inf  ;;  %vm4340_vm15 = vcmp.eq.f32.partialorder %v8338_v0, 0.0 }
 0x784   : > { %v4236_v11 = vpop.permute.xlu0 %4235  ;;  %6336 = vrsqrt.f32 %v8340_v51 }
 0x785   : > { %v4283_v22 = vadd.f32 %v4236_v11, %v4219_v50 }
 0x786   : > { %v4238_v54 = vpop.permute.xlu1 %4237 }
 0x787   : > { %v8346_v4 = vmax.f32 %v4283_v22, 1e-08  ;;  %v4284_v55 = vadd.f32 %v4238_v54, %v4220_v26 }
 0x788   : > { %v4184_v36 = vpop.permute.xlu0 %4183 }
 0x789   : > { %6338 = vrsqrt.f32 %v8346_v4  ;;  %v8349_v35 = vmax.f32 %v4284_v55, 1e-08  ;;  %v4225_v5 = vadd.f32 %v4184_v36, %v8249_v7  ;;  %v4341_v7 = vand.u32 2147483648, %v8338_v0 }
 0x78a   : > { %v4186_v12 = vpop.permute.xlu1 %4185  ;;  %vm4317_vm0 = vcmp.eq.f32.partialorder %v8346_v4, inf  ;;  %vm4319_vm1 = vcmp.eq.f32.partialorder %v8346_v4, 0.0  ;;  %v4320_v28 = vand.u32 2147483648, %v8346_v4 }
 0x78b   : > { %6340 = vrsqrt.f32 %v8349_v35  ;;  %v4226_v46 = vadd.f32 %v4186_v12, %v8253_v24  ;;  %v8370_v24 = vld [vmem:[%s8754_s4] ss:$0 sm:$0xff]  ;;  %vm4324_vm2 = vcmp.eq.f32.partialorder %v8349_v35, inf  ;;  %vm4326_vm4 = vcmp.eq.f32.partialorder %v8349_v35, 0.0 }
 0x78c   : > { %v4248_v6 = vpop.permute.xlu0 %4247  ;;  %v4327_v25 = vand.u32 2147483648, %v8349_v35 }
 0x78d   : > { %v4289_v52 = vadd.f32 %v4248_v6, %v4225_v5  ;;  %v6335_v42 = vpop.eup %6334 }
 0x78e   : > { %v4250_v15 = vpop.permute.xlu1 %4249  ;;  %v6337_v43 = vpop.eup %6336  ;;  %v4337_v18 = vmul.f32 %v6335_v42, %v8338_v0 }
 0x78f   : > { %v4290_v48 = vadd.f32 %v4250_v15, %v4226_v46  ;;  %v8354_v21 = vmax.f32 %v4289_v52, 1e-08  ;;  %v4330_v13 = vmul.f32 %v6337_v43, %v8340_v51 }
 0x790   : > { %v4180_v34 = vpop.permute.xlu0 %4179  ;;  %v4339_v8 = vsel %vm4338_vm14, %v8338_v0, %v4337_v18 }
 0x791   : > { %v8359_v62 = vmax.f32 %v4290_v48, 1e-08  ;;  %v4223_v20 = vadd.f32 %v4180_v34, %v8263_v33  ;;  %v4332_v47 = vsel %vm4331_vm3, %v8340_v51, %v4330_v13  ;;  %v4342_v50 = vsel %vm4340_vm15, %v4341_v7, %v4339_v8 }
 0x792   : > { %v4182_v44 = vpop.permute.xlu1 %4181  ;;  %v4335_v46 = vsel %vm4333_vm11, %v4334_v56, %v4332_v47  ;;  %vm4359_vm10 = vcmp.eq.f32.partialorder %v8354_v21, inf  ;;  %v4362_v51 = vand.u32 2147483648, %v8354_v21  ;;  %vm4361_vm12 = vcmp.eq.f32.partialorder %v8354_v21, 0.0 }
 0x793   : > { %v6339_v32 = vpop.eup %6338  ;;  %6342 = vrsqrt.f32 %v8359_v62  ;;  %v4224_v31 = vadd.f32 %v4182_v44, %v8269_v17  ;;  %v4436_v34 = vpack.c.bf16 %v4342_v50, %v4335_v46  ;;  %vm4366_vm5 = vcmp.eq.f32.partialorder %v8359_v62, inf }
 0x794   : > { %6344 = vrsqrt.f32 %v8354_v21  ;;  %v5790_v38 = vpop.f32.mrb[32].mxu0  ;;  %v4244_v45 = vpop.permute.xlu0 %4243  ;;  %v4316_v61 = vmul.f32 %v6339_v32, %v8346_v4  ;;  %vm4368_vm6 = vcmp.eq.f32.partialorder %v8359_v62, 0.0 }
 0x795   : > { %v6341_v57 = vpop.eup %6340  ;;  %v3271_v33 = vadd.f32 %v5790_v38, %v8370_v24  ;;  %v3200_v3 = vpop.f32.mrb[33].mxu0  ;;  %v4287_v59 = vadd.f32 %v4244_v45, %v4223_v20  ;;  %v4369_v38 = vand.u32 2147483648, %v8359_v62 }
 0x796   : > { %v3269_v49 = vadd.f32 %v8370_v24, %v3200_v3  ;;  %v5791_v23 = vpop.f32.mrb[34].mxu0  ;;  %v4246_v37 = vpop.permute.xlu1 %4245  ;;  %v4323_v19 = vmul.f32 %v6341_v57, %v8349_v35  ;;  %v4318_v17 = vsel %vm4317_vm0, %v8346_v4, %v4316_v61  ;;  %v6077_v4 = vld [vmem:[%s6637_s12 + $0x8] sm:$0xff]   ;;  %s6426_s12 = smov 32  }
 0x797   : > { %v8390_v29 = vmax.f32 %v4287_v59, 1e-08  ;;  %v3272_v63 = vadd.f32 %v5791_v23, %v8370_v24  ;;  %v3203_v14 = vpop.f32.mrb[35].mxu0  ;;  %v4288_v58 = vadd.f32 %v4246_v37, %v4224_v31  ;;  %v3972_v11 = vmax.f32 %v3271_v33, 0.0 }
 0x798   : > { %v3270_v9 = vadd.f32 %v8370_v24, %v3203_v14  ;;  %v4192_v39 = vpop.permute.xlu0 %4191  ;;  %v4325_v10 = vsel %vm4324_vm2, %v8349_v35, %v4323_v19  ;;  %v3970_v54 = vmax.f32 %v3269_v49, 0.0  ;;  %v4321_v12 = vsel %vm4319_vm1, %v4320_v28, %v4318_v17 }
 0x799   : > { %6346 = vrsqrt.f32 %v8390_v29  ;;  %v3973_v26 = vmax.f32 %v3272_v63, 0.0  ;;  %v8406_v22 = vmax.f32 %v4288_v58, 1e-08  ;;  %v4328_v5 = vsel %vm4326_vm4, %v4327_v25, %v4325_v10 }
 0x79a   : > { %v3971_v55 = vmax.f32 %v3270_v9, 0.0  ;;  %v4194_v36 = vpop.permute.xlu1 %4193  ;;  %v4435_v0 = vpack.c.bf16 %v4328_v5, %v4321_v12  ;;  %v4229_v42 = vadd.f32 %v4192_v39, %v8278_v41  ;;  %vm4345_vm7 = vcmp.eq.f32.partialorder %v8390_v29, inf }
 0x79b   : > { %v8412_v6 = vpack.c.bf16 %v3973_v26, %v3972_v11  ;;  %6348 = vrsqrt.f32 %v8406_v22  ;;  %v4230_v18 = vadd.f32 %v4194_v36, %v8282_v2  ;;  %vm4347_vm8 = vcmp.eq.f32.partialorder %v8390_v29, 0.0 }
 0x79c   : > { %v8417_v52 = vpack.c.bf16 %v3971_v55, %v3970_v54  ;;  %v5794_v15 = vpop.f32.mrb[36].mxu0  ;;  %v4256_v48 = vpop.permute.xlu0 %4255  ;;  %5846 = vmatprep.mubr.msk.bf16.mxu0 %vm2480_vm9, %v4435_v0  ;;  %v4348_v57 = vand.u32 2147483648, %v8390_v29  ;;  %vm4352_vm3 = vcmp.eq.f32.partialorder %v8406_v22, inf  ;;  %vm4354_vm11 = vcmp.eq.f32.partialorder %v8406_v22, 0.0 }
 0x79d   : > { %v6343_v43 = vpop.eup %6342  ;;  %v3275_v35 = vadd.f32 %v5794_v15, %v8370_v24  ;;  %v3216_v7 = vpop.f32.mrb[37].mxu0  ;;  %v4293_v41 = vadd.f32 %v4256_v48, %v4229_v42  ;;  %5847 = vmatmul.mubr.msk.bf16.vlgmr.msra.gmra.mrb[48].mxu0 %vm2480_vm9, %v4436_v34  ;;  %v4355_v14 = vand.u32 2147483648, %v8406_v22 }
 0x79e   : > { %v6345_v56 = vpop.eup %6344  ;;  %v3273_v44 = vadd.f32 %v8370_v24, %v3216_v7  ;;  %v5795_v32 = vpop.f32.mrb[38].mxu0  ;;  %5863 = vmatpush3.bf16.msra.mxu0 %v8318_v40  ;;  %v4365_v8 = vmul.f32 %v6343_v43, %v8359_v62 }
 0x79f   : > { %v4258_v20 = vpop.permute.xlu1 %4257  ;;  %v3276_v2 = vadd.f32 %v5795_v32, %v8370_v24  ;;  %v3219_v28 = vpop.f32.mrb[39].mxu0  ;;  %5864 = vmatprep.subr.bf16.mxu0 %v6077_v4  ;;  %v3976_v33 = vmax.f32 %v3275_v35, 0.0  ;;  %v4358_v59 = vmul.f32 %v6345_v56, %v8354_v21  ;;  %v8442_v40 = vmax.f32 %v4293_v41, 1e-08 }
 0x7a0   : > { %v4294_v13 = vadd.f32 %v4258_v20, %v4230_v18  ;;  %v3274_v45 = vadd.f32 %v8370_v24, %v3219_v28  ;;  %v4188_v61 = vpop.permute.xlu0 %4187  ;;  %v3974_v49 = vmax.f32 %v3273_v44, 0.0  ;;  %v4367_v39 = vsel %vm4366_vm5, %v8359_v62, %v4365_v8 }
 0x7a1   : > { %v3977_v31 = vmax.f32 %v3276_v2, 0.0  ;;  %v4227_v63 = vadd.f32 %v4188_v61, %v8292_v27  ;;  %v4360_v54 = vsel %vm4359_vm10, %v8354_v21, %v4358_v59  ;;  %v4370_v48 = vsel %vm4368_vm6, %v4369_v38, %v4367_v39 }
 0x7a2   : > { %v8438_v3 = vmax.f32 %v4294_v13, 1e-08  ;;  %v3975_v23 = vmax.f32 %v3274_v45, 0.0  ;;  %5865 = vmatpush3.bf16.msra.mxu0 %v6077_v4  ;;  %vm4387_vm0 = vcmp.eq.f32.partialorder %v8442_v40, inf  ;;  %v4390_v39 = vand.u32 2147483648, %v8442_v40 }
 0x7a3   : > { %v4190_v37 = vpop.permute.xlu1 %4189  ;;  %v6347_v19 = vpop.eup %6346  ;;  %v8445_v25 = vpack.c.bf16 %v3977_v31, %v3976_v33  ;;  %vm4389_vm5 = vcmp.eq.f32.partialorder %v8442_v40, 0.0 }
 0x7a4   : > { %v8450_v58 = vpack.c.bf16 %v3975_v23, %v3974_v49  ;;  %6350 = vrsqrt.f32 %v8438_v3  ;;  %v5798_v17 = vpop.f32.mrb[40].mxu0  ;;  %v4252_v47 = vpop.permute.xlu0 %4251  ;;  %v4344_v9 = vmul.f32 %v6347_v19, %v8390_v29  ;;  %v4228_v50 = vadd.f32 %v4190_v37, %v8296_v1 }
 0x7a5   : > { %v6349_v10 = vpop.eup %6348  ;;  %v3279_v27 = vadd.f32 %v5798_v17, %v8370_v24  ;;  %v3232_v11 = vpop.f32.mrb[41].mxu0  ;;  %v4291_v26 = vadd.f32 %v4252_v47, %v4227_v63  ;;  %6352 = vrsqrt.f32 %v8442_v40  ;;  %vm4394_vm14 = vcmp.eq.f32.partialorder %v8438_v3, inf }
 0x7a6   : > { %v3277_v55 = vadd.f32 %v8370_v24, %v3232_v11  ;;  %v5799_v36 = vpop.f32.mrb[42].mxu0  ;;  %v4346_v5 = vsel %vm4345_vm7, %v8390_v29, %v4344_v9  ;;  %v4351_v0 = vmul.f32 %v6349_v10, %v8406_v22  ;;  %v4363_v29 = vsel %vm4361_vm12, %v4362_v51, %v4360_v54 }
 0x7a7   : > { %v4254_v12 = vpop.permute.xlu1 %4253  ;;  %v8468_v46 = vmax.f32 %v4291_v26, 1e-08  ;;  %v3280_v1 = vadd.f32 %v5799_v36, %v8370_v24  ;;  %v3235_v42 = vpop.f32.mrb[43].mxu0  ;;  %v3980_v34 = vmax.f32 %v3279_v27, 0.0  ;;  %v4349_v43 = vsel %vm4347_vm8, %v4348_v57, %v4346_v5 }
 0x7a8   : > { %v4292_v15 = vadd.f32 %v4254_v12, %v4228_v50  ;;  %v3278_v4 = vadd.f32 %v8370_v24, %v3235_v42  ;;  %v4353_v35 = vsel %vm4352_vm3, %v8406_v22, %v4351_v0  ;;  %v3978_v44 = vmax.f32 %v3277_v55, 0.0 }
 0x7a9   : > { %6354 = vrsqrt.f32 %v8468_v46  ;;  %v3981_v18 = vmax.f32 %v3280_v1, 0.0  ;;  %v4356_v56 = vsel %vm4354_vm11, %v4355_v14, %v4353_v35  ;;  %v4438_v20 = vpack.c.bf16 %v4370_v48, %v4363_v29 }
 0x7aa   : > { %v4308_v7 = vmax.f32 %v4292_v15, 1e-08  ;;  %v3979_v62 = vmax.f32 %v3278_v4, 0.0  ;;  %v4437_v41 = vpack.c.bf16 %v4356_v56, %v4349_v43  ;;  %vm4373_vm15 = vcmp.eq.f32.partialorder %v8468_v46, inf }
 0x7ab   : > { %v8486_v32 = vpack.c.bf16 %v3981_v18, %v3980_v34  ;;  %vm4396_vm1 = vcmp.eq.f32.partialorder %v8438_v3, 0.0  ;;  %v4397_v26 = vand.u32 2147483648, %v8438_v3  ;;  %v4376_v54 = vand.u32 2147483648, %v8468_v46 }
 0x7ac   : > { %6356 = vrsqrt.f32 %v4308_v7  ;;  %v8488_v2 = vpack.c.bf16 %v3979_v62, %v3978_v44  ;;  %v5802_v28 = vpop.f32.mrb[44].mxu0  ;;  %5850 = vmatprep.mubr.msk.bf16.mxu0 %vm2480_vm9, %v4437_v41  ;;  %vm4380_vm2 = vcmp.eq.f32.partialorder %v4308_v7, inf  ;;  %v4383_v55 = vand.u32 2147483648, %v4308_v7 }
 0x7ad   : > { %v3283_v22 = vadd.f32 %v5802_v28, %v8370_v24  ;;  %v3248_v13 = vpop.f32.mrb[45].mxu0  ;;  %5851 = vmatmul.mubr.msk.bf16.gmra.mrb[52].mxu0 %vm2480_vm9, %v4438_v20  ;;  %vm4375_vm4 = vcmp.eq.f32.partialorder %v8468_v46, 0.0  ;;  %vm4382_vm10 = vcmp.eq.f32.partialorder %v4308_v7, 0.0 }
 0x7ae   : > { %v6351_v38 = vpop.eup %6350  ;;  %v3281_v45 = vadd.f32 %v8370_v24, %v3248_v13  ;;  %v5803_v61 = vpop.f32.mrb[46].mxu0 }
 0x7af   : > { %v3284_v21 = vadd.f32 %v5803_v61, %v8370_v24  ;;  %v3251_v51 = vpop.f32.mrb[47].mxu0  ;;  %v6353_v57 = vpop.eup %6352  ;;  %v3984_v33 = vmax.f32 %v3283_v22, 0.0  ;;  %v4393_v59 = vmul.f32 %v6351_v38, %v8438_v3 }
 0x7b0   : > { %v3282_v8 = vadd.f32 %v8370_v24, %v3251_v51  ;;  %v3982_v49 = vmax.f32 %v3281_v45, 0.0  ;;  %v4386_v14 = vmul.f32 %v6353_v57, %v8442_v40 }
 0x7b1   : > { %v3985_v31 = vmax.f32 %v3284_v21, 0.0  ;;  %v4395_v10 = vsel %vm4394_vm14, %v8438_v3, %v4393_v59 }
 0x7b2   : > { %v3983_v23 = vmax.f32 %v3282_v8, 0.0  ;;  %v4200_v37 = vpop.permute.xlu0 %4199  ;;  %v4388_v36 = vsel %vm4387_vm0, %v8442_v40, %v4386_v14  ;;  %v4398_v0 = vsel %vm4396_vm1, %v4397_v26, %v4395_v10 }
 0x7b3   : > { %v6355_v19 = vpop.eup %6354  ;;  %v8497_v63 = vpack.c.bf16 %v3985_v31, %v3984_v33  ;;  %v4391_v34 = vsel %vm4389_vm5, %v4390_v39, %v4388_v36  ;;  %vm4943_vm5 = vcmask 457728  }
 0x7b4   : > { %v8500_v17 = vpack.c.bf16 %v3983_v23, %v3982_v49  ;;  %v4202_v47 = vpop.permute.xlu1 %4201  ;;  %v4372_v9 = vmul.f32 %v6355_v19, %v8468_v46  ;;  %v4440_v35 = vpack.c.bf16 %v4398_v0, %v4391_v34  ;;  %v5476_v34 = vld [vmem:[%s8757_s10] ss:$0 sm:$0xff] }
 0x7b5   : > { %v4234_v44 = vadd.f32 %v4202_v47, %v8308_v30 }
 0x7b6   : > { %v6357_v24 = vpop.eup %6356  ;;  %v4196_v27 = vpop.permute.xlu0 %4195  ;;  %v4374_v50 = vsel %vm4373_vm15, %v8468_v46, %v4372_v9  ;;  %v4233_v46 = vadd.f32 %v4200_v37, %v8306_v60 }
 0x7b7   : > { %v4379_v11 = vmul.f32 %v6357_v24, %v4308_v7  ;;  %v4231_v1 = vadd.f32 %v4196_v27, %v8312_v53  ;;  %v4377_v42 = vsel %vm4375_vm4, %v4376_v54, %v4374_v50 }
 0x7b8   : > { %v4198_v12 = vpop.permute.xlu1 %4197 }
 0x7b9   : > { %v4381_v5 = vsel %vm4380_vm2, %v4308_v7, %v4379_v11  ;;  %v4232_v4 = vadd.f32 %v4198_v12, %v8320_v16 }
 0x7ba   : > { %v4384_v15 = vsel %vm4382_vm10, %v4383_v55, %v4381_v5  ;;  %v4260_v48 = vpop.permute.xlu0 %4259 }
 0x7bb   : > { %v4439_v3 = vpack.c.bf16 %v4384_v15, %v4377_v42  ;;  %v4295_v43 = vadd.f32 %v4260_v48, %v4231_v1 }
 0x7bc   : > { %v4262_v18 = vpop.permute.xlu1 %4261 }
 0x7bd   : > { %5854 = vmatprep.mubr.msk.bf16.mxu0 %vm2480_vm9, %v4439_v3  ;;  %v4311_v7 = vmax.f32 %v4295_v43, 1e-08  ;;  %v4296_v56 = vadd.f32 %v4262_v18, %v4232_v4  ;;  %v6427_v18 = vmov 1.0|1.0  }
 0x7be   : > { %5855 = vmatmul.mubr.msk.bf16.gmra.mrb[56].mxu0 %vm2480_vm9, %v4440_v35  ;;  %v4264_v53 = vpop.permute.xlu0 %4263 }
 0x7bf   : > { %6358 = vrsqrt.f32 %v4311_v7  ;;  %v4312_v40 = vmax.f32 %v4296_v56, 1e-08  ;;  %v4297_v62 = vadd.f32 %v4264_v53, %v4233_v46  ;;  %vm4401_vm6 = vcmp.eq.f32.partialorder %v4311_v7, inf }
 0x7c0   : > { %v4266_v41 = vpop.permute.xlu1 %4265  ;;  %v4404_v61 = vand.u32 2147483648, %v4311_v7  ;;  %vm4403_vm8 = vcmp.eq.f32.partialorder %v4311_v7, 0.0 }
 0x7c1   : > { %6360 = vrsqrt.f32 %v4312_v40  ;;  %v4313_v16 = vmax.f32 %v4297_v62, 1e-08  ;;  %v4298_v29 = vadd.f32 %v4266_v41, %v4234_v44  ;;  %vm4408_vm7 = vcmp.eq.f32.partialorder %v4312_v40, inf }
 0x7c2   : > { %v4411_v30 = vand.u32 2147483648, %v4312_v40  ;;  %vm4410_vm12 = vcmp.eq.f32.partialorder %v4312_v40, 0.0 }
 0x7c3   : > { %6362 = vrsqrt.f32 %v4313_v16  ;;  %v4314_v20 = vmax.f32 %v4298_v29, 1e-08  ;;  %vm4415_vm3 = vcmp.eq.f32.partialorder %v4313_v16, inf  ;;  %v4418_v23 = vand.u32 2147483648, %v4313_v16 }
 0x7c4   : > { %vm4417_vm14 = vcmp.eq.f32.partialorder %v4313_v16, 0.0 }
 0x7c5   : > { %6364 = vrsqrt.f32 %v4314_v20  ;;  %vm4422_vm11 = vcmp.eq.f32.partialorder %v4314_v20, inf  ;;  %v4425_v37 = vand.u32 2147483648, %v4314_v20  ;;  %vm4424_vm15 = vcmp.eq.f32.partialorder %v4314_v20, 0.0 }
 0x7c9   : > { %v6359_v28 = vpop.eup %6358 }
 0x7ca   : > { %v4400_v22 = vmul.f32 %v6359_v28, %v4311_v7 }
 0x7cb   : > { %v6361_v60 = vpop.eup %6360 }
 0x7cc   : > { %v4402_v13 = vsel %vm4401_vm6, %v4311_v7, %v4400_v22  ;;  %v4407_v38 = vmul.f32 %v6361_v60, %v4312_v40  ;;  %v8562_v7 = vld [vmem:[%s979_s27] ss:$0 sm:$0xff]  ;;  %vm8572_vm6 = vmpackc.low %vm4943_vm5, %vm4943_vm5  ;;  %s5059_s27 = sshll.u32 %s6428_s28, 4  ;;  %s5060_s27 = int_to_ptr.vmem [resolvable:$true] %s5059_s27 }
 0x7cd   : > { %v6363_v45 = vpop.eup %6362  ;;  %v4405_v8 = vsel %vm4403_vm8, %v4404_v61, %v4402_v13  ;;  %s6378_s26 = scalar_lea.vmem %s5060_s27, 512  ;;  %p6385_p2 = scmp.lt.s32.totalorder %s5060_s27, %s5060_s27 }
 0x7ce   : > { %v4409_v21 = vsel %vm4408_vm7, %v4312_v40, %v4407_v38  ;;  %v4414_v51 = vmul.f32 %v6363_v45, %v4313_v16  ;;  %p6379_p13 = scmp.ne.s32.totalorder %s5060_s27, %s6378_s26  ;;  %p6386_p3 = scmp.lt.s32.totalorder %s6378_s26, %s6378_s26 }
 0x7cf   : > { %v6365_v57 = vpop.eup %6364  ;;  %v4412_v33 = vsel %vm4410_vm12, %v4411_v30, %v4409_v21 }
 0x7d0   : > { %v4441_v31 = vpack.c.bf16 %v4412_v33, %v4405_v8  ;;  %v4416_v59 = vsel %vm4415_vm3, %v4313_v16, %v4414_v51  ;;  %v4421_v49 = vmul.f32 %v6365_v57, %v4314_v20  ;;  %p6380_p0 = pnand %p6379_p13, %p5989_p12  ;;  %p6387_p4 = por %p6386_p3, %p6385_p2 }
 0x7d1   : > { %v4419_v14 = vsel %vm4417_vm14, %v4418_v23, %v4416_v59 }
 0x7d2   : > { %5858 = vmatprep.mubr.msk.bf16.mxu0 %vm2480_vm9, %v4441_v31  ;;  %v4423_v19 = vsel %vm4422_vm11, %v4314_v20, %v4421_v49  ;;  %p6381_p1 = pneg %p6380_p0 }
 0x7d3   : > { %v4426_v47 = vsel %vm4424_vm15, %v4425_v37, %v4423_v19 }
 0x7d4   : > { %v4442_v9 = vpack.c.bf16 %v4426_v47, %v4419_v14  ;;  %p6388_p5 = pnand %p6387_p4, %p6381_p1 }
 0x7d6   : > { %5859 = vmatmul.mubr.msk.bf16.gmra.mrb[60].mxu0 %vm2480_vm9, %v4442_v9 }
 0x7d7   : > { %5866 = vmatprep.mubr.msk.bf16.mxu0 %vm3141_vm13, %v8417_v52 }
 0x7dd   : > { %v5888_v24 = vpop.f32.mrb[64].mxu1 }
 0x7de   : > { %5867 = vmatmul.mubr.msk.bf16.vlgmr.msra.gmra.mrb[48].mxu0 %vm3141_vm13, %v8412_v6  ;;  %v4800_v39 = vpop.f32.mrb[65].mxu1 }
 0x7df   : > { %5870 = vmatprep.mubr.msk.bf16.mxu0 %vm3141_vm13, %v8450_v58  ;;  %v5889_v10 = vpop.f32.mrb[66].mxu1 }
 0x7e0   : > { %v6016_v27 = vpack.i.bf16 %v5889_v10, %v5888_v24  ;;  %v4803_v50 = vpop.f32.mrb[67].mxu1 }
 0x7e1   : > { %v6011_v11 = vpack.i.bf16 %v4803_v50, %v4800_v39 }
 0x7e2   : > { %6017 = vrot.lane.b32.xlu1 %v6016_v27, %s6426_s12 }
 0x7e3   : > { %6012 = vrot.lane.b32.xlu0 %v6011_v11, %s6426_s12 }
 0x7e6   : > { %5871 = vmatmul.mubr.msk.bf16.gmra.mrb[52].mxu0 %vm3141_vm13, %v8445_v25 }
 0x7e7   : > { %5874 = vmatprep.mubr.msk.bf16.mxu0 %vm3141_vm13, %v8488_v2 }
 0x7ed   : > { %v5892_v6 = vpop.f32.mrb[68].mxu1 }
 0x7ee   : > { %5875 = vmatmul.mubr.msk.bf16.gmra.mrb[56].mxu0 %vm3141_vm13, %v8486_v32  ;;  %v4816_v52 = vpop.f32.mrb[69].mxu1 }
 0x7ef   : > { %5878 = vmatprep.mubr.msk.bf16.mxu0 %vm3141_vm13, %v8500_v17  ;;  %v5893_v58 = vpop.f32.mrb[70].mxu1 }
 0x7f0   : > { %v6026_v26 = vpack.i.bf16 %v5893_v58, %v5892_v6  ;;  %v4819_v54 = vpop.f32.mrb[71].mxu1 }
 0x7f1   : > { %v6021_v55 = vpack.i.bf16 %v4819_v54, %v4816_v52 }
 0x7f2   : > { %6027 = vrot.lane.b32.xlu1 %v6026_v26, %s6426_s12 }
 0x7f3   : > { %6022 = vrot.lane.b32.xlu0 %v6021_v55, %s6426_s12 }
 0x7f6   : > { %5879 = vmatmul.mubr.msk.bf16.gmra.mrb[60].mxu0 %vm3141_vm13, %v8497_v63  ;;  %v4968_v63 = vlaneseq }
 0x7f8   : > { %v4969_v3 = vshrl.u32 %v4968_v63, 7 }
 0x7fa   : > { %v4970_v4 = vadd.s32 8, %v4969_v3  ;;  %vm4978_vm9 = vcmp.eq.s32.totalorder %v4969_v3, %v5476_v34  ;;  %v4971_v43 = vadd.s32 16, %v4969_v3  ;;  %v4972_v35 = vadd.s32 24, %v4969_v3 }
 0x7fc   : > { %vm4979_vm0 = vcmp.eq.s32.totalorder %v4970_v4, %v5476_v34  ;;  %vm4980_vm1 = vcmp.eq.s32.totalorder %v4971_v43, %v5476_v34  ;;  %vm4981_vm2 = vcmp.eq.s32.totalorder %v4972_v35, %v5476_v34 }
 0x7fd   : > { %v5896_v25 = vpop.f32.mrb[72].mxu1  ;;  %vm5505_vm4 = vmpackc.low %vm4979_vm0, %vm4978_vm9 }
 0x7fe   : > { %v4832_v2 = vpop.f32.mrb[73].mxu1  ;;  %5918 = vmatprep.mubr.msk.bf16.mxu1 %vm5505_vm4, %v6427_v18  ;;  %vm8553_vm10 = vmpackc.low %vm4981_vm2, %vm4980_vm1 }
 0x7ff   : > { %v5897_v36 = vpop.f32.mrb[74].mxu1 }
 0x800   : > { %v6036_v32 = vpack.i.bf16 %v5897_v36, %v5896_v25  ;;  %v4835_v12 = vpop.f32.mrb[75].mxu1 }
 0x801   : > { %v6031_v5 = vpack.i.bf16 %v4835_v12, %v4832_v2 }
 0x802   : > { %6037 = vrot.lane.b32.xlu1 %v6036_v32, %s6426_s12 }
 0x803   : > { %6032 = vrot.lane.b32.xlu0 %v6031_v5, %s6426_s12 }
 0x817   : > { %v5900_v17 = vpop.f32.mrb[76].mxu1 }
 0x818   : > { %v4848_v0 = vpop.f32.mrb[77].mxu1 }
 0x819   : > { %v5901_v1 = vpop.f32.mrb[78].mxu1 }
 0x81a   : > { %v6046_v42 = vpack.i.bf16 %v5901_v1, %v5900_v17  ;;  %v4851_v15 = vpop.f32.mrb[79].mxu1 }
 0x81b   : > { %v6041_v48 = vpack.i.bf16 %v4851_v15, %v4848_v0 }
 0x81c   : > { %6047 = vrot.lane.b32.xlu1 %v6046_v42, %s6426_s12 }
 0x81d   : > { %6042 = vrot.lane.b32.xlu0 %v6041_v48, %s6426_s12 }
 0x854   : > { %v6018_v56 = vpop.permute.xlu1 %6017 }
 0x855   : > { %v6013_v44 = vpop.permute.xlu0 %6012  ;;  %v6020_v29 = vunpack.i.h.bf16 %v6018_v56  ;;  %v6019_v20 = vunpack.i.l.bf16 %v6018_v56 }
 0x856   : > { %v6015_v60 = vunpack.i.h.bf16 %v6013_v44  ;;  %v6014_v13 = vunpack.i.l.bf16 %v6013_v44 }
 0x864   : > { %v6028_v33 = vpop.permute.xlu1 %6027 }
 0x865   : > { %v6023_v59 = vpop.permute.xlu0 %6022  ;;  %v6030_v14 = vunpack.i.h.bf16 %v6028_v33  ;;  %v6029_v47 = vunpack.i.l.bf16 %v6028_v33  ;;  %v4992_v33 = vld [vmem:[#allocation4] sm:$0xff] }
 0x866   : > { %v6025_v39 = vunpack.i.h.bf16 %v6023_v59  ;;  %v6024_v10 = vunpack.i.l.bf16 %v6023_v59  ;;  %v4995_v59 = vld [vmem:[#allocation4 + $0x18] sm:$0xff] }
 0x874   : > { %v6038_v54 = vpop.permute.xlu1 %6037 }
 0x875   : > { %v6033_v25 = vpop.permute.xlu0 %6032  ;;  %v6040_v5 = vunpack.i.h.bf16 %v6038_v54  ;;  %v6039_v17 = vunpack.i.l.bf16 %v6038_v54 }
 0x876   : > { %v6035_v42 = vunpack.i.h.bf16 %v6033_v25  ;;  %v6034_v15 = vunpack.i.l.bf16 %v6033_v25 }
 0x88e   : > { %v6048_v56 = vpop.permute.xlu1 %6047 }
 0x88f   : > { %v6043_v44 = vpop.permute.xlu0 %6042 }
 0x8b1   : > { %v5868_v53 = vpop.f32.mrb[48].mxu0 }
 0x8b2   : > { %v4708_v40 = vadd.f32 %v5868_v53, %v8562_v7  ;;  %v4637_v62 = vpop.f32.mrb[49].mxu0 }
 0x8b3   : > { %v4706_v41 = vadd.f32 %v8562_v7, %v4637_v62  ;;  %v5869_v16 = vpop.f32.mrb[50].mxu0 }
 0x8b4   : > { %v4709_v28 = vadd.f32 %v5869_v16, %v8562_v7  ;;  %v4640_v22 = vpop.f32.mrb[51].mxu0  ;;  %v4929_v45 = vsel %vm3141_vm13, %v4708_v40, %v6019_v20  ;;  %v6049_v20 = vunpack.i.l.bf16 %v6048_v56 }
 0x8b5   : > { %v4707_v38 = vadd.f32 %v8562_v7, %v4640_v22  ;;  %v4927_v30 = vsel %vm3141_vm13, %v4706_v41, %v6014_v13  ;;  %v6044_v13 = vunpack.i.l.bf16 %v6043_v44 }
 0x8b6   : > { %v4930_v61 = vsel %vm3141_vm13, %v4709_v28, %v6020_v29  ;;  %v6050_v29 = vunpack.i.h.bf16 %v6048_v56 }
 0x8b7   : > { %v5485_v21 = vpack.c.bf16 %v4930_v61, %v4929_v45  ;;  %v4928_v51 = vsel %vm3141_vm13, %v4707_v38, %v6015_v60  ;;  %v6045_v60 = vunpack.i.h.bf16 %v6043_v44 }
 0x8b8   : > { %v5482_v8 = vpack.c.bf16 %v4928_v51, %v4927_v30 }
 0x8b9   : > { %v5872_v31 = vpop.f32.mrb[52].mxu0 }
 0x8ba   : > { %v4712_v49 = vadd.f32 %v5872_v31, %v8562_v7  ;;  %v4653_v23 = vpop.f32.mrb[53].mxu0  ;;  %5902 = vmatprep.subr.msk.bf16.mxu1 %vm8572_vm6, %v5482_v8 }
 0x8bb   : > { %v4710_v37 = vadd.f32 %v8562_v7, %v4653_v23  ;;  %v5873_v19 = vpop.f32.mrb[54].mxu0  ;;  %5903 = vmatpush3.bf16.msk.msra.mxu1 %vm8572_vm6, %v5482_v8 }
 0x8bc   : > { %v4713_v9 = vadd.f32 %v5873_v19, %v8562_v7  ;;  %v4656_v24 = vpop.f32.mrb[55].mxu0  ;;  %5904 = vmatprep.subr.msk.bf16.mxu1 %vm8572_vm6, %v5485_v21  ;;  %v4933_v50 = vsel %vm3141_vm13, %v4712_v49, %v6029_v47 }
 0x8bd   : > { %v4711_v27 = vadd.f32 %v8562_v7, %v4656_v24  ;;  %v4931_v6 = vsel %vm3141_vm13, %v4710_v37, %v6024_v10  ;;  %v4993_v37 = vld [vmem:[#allocation4 + $0x8] sm:$0xff] }
 0x8be   : > { %v4934_v11 = vsel %vm3141_vm13, %v4713_v9, %v6030_v14 }
 0x8bf   : > { %v5491_v52 = vpack.c.bf16 %v4934_v11, %v4933_v50  ;;  %v4932_v58 = vsel %vm3141_vm13, %v4711_v27, %v6025_v39  ;;  %5905 = vmatpush3.bf16.msk.msra.mxu1 %vm8572_vm6, %v5485_v21 }
 0x8c0   : > { %v5488_v26 = vpack.c.bf16 %v4932_v58, %v4931_v6 }
 0x8c1   : > { %v5876_v55 = vpop.f32.mrb[56].mxu0 }
 0x8c2   : > { %v4716_v2 = vadd.f32 %v5876_v55, %v8562_v7  ;;  %v4669_v36 = vpop.f32.mrb[57].mxu0  ;;  %5906 = vmatprep.subr.msk.bf16.mxu1 %vm8572_vm6, %v5488_v26 }
 0x8c3   : > { %v4714_v32 = vadd.f32 %v8562_v7, %v4669_v36  ;;  %v5877_v12 = vpop.f32.mrb[58].mxu0  ;;  %5907 = vmatpush3.bf16.msk.msra.mxu1 %vm8572_vm6, %v5488_v26 }
 0x8c4   : > { %v4717_v0 = vadd.f32 %v5877_v12, %v8562_v7  ;;  %v4672_v1 = vpop.f32.mrb[59].mxu0  ;;  %5908 = vmatprep.subr.msk.bf16.mxu1 %vm8572_vm6, %v5491_v52  ;;  %v4937_v63 = vsel %vm3141_vm13, %v4716_v2, %v6039_v17 }
 0x8c5   : > { %v4715_v48 = vadd.f32 %v8562_v7, %v4672_v1  ;;  %v4935_v34 = vsel %vm3141_vm13, %v4714_v32, %v6034_v15 }
 0x8c6   : > { %v4938_v3 = vsel %vm3141_vm13, %v4717_v0, %v6040_v5 }
 0x8c7   : > { %v5497_v4 = vpack.c.bf16 %v4938_v3, %v4937_v63  ;;  %v4936_v43 = vsel %vm3141_vm13, %v4715_v48, %v6035_v42  ;;  %5909 = vmatpush3.bf16.msk.msra.mxu1 %vm8572_vm6, %v5491_v52 }
 0x8c8   : > { %v5494_v35 = vpack.c.bf16 %v4936_v43, %v4935_v34 }
 0x8c9   : > { %v5880_v53 = vpop.f32.mrb[60].mxu0 }
 0x8ca   : > { %v4720_v40 = vadd.f32 %v5880_v53, %v8562_v7  ;;  %v4685_v62 = vpop.f32.mrb[61].mxu0  ;;  %5910 = vmatprep.subr.msk.bf16.mxu1 %vm8572_vm6, %v5494_v35 }
 0x8cb   : > { %v4718_v41 = vadd.f32 %v8562_v7, %v4685_v62  ;;  %v5881_v16 = vpop.f32.mrb[62].mxu0  ;;  %5911 = vmatpush3.bf16.msk.msra.mxu1 %vm8572_vm6, %v5494_v35 }
 0x8cc   : > { %v4721_v28 = vadd.f32 %v5881_v16, %v8562_v7  ;;  %v4688_v22 = vpop.f32.mrb[63].mxu0  ;;  %5912 = vmatprep.subr.msk.bf16.mxu1 %vm8572_vm6, %v5497_v4  ;;  %v4941_v45 = vsel %vm3141_vm13, %v4720_v40, %v6049_v20 }
 0x8cd   : > { %v4719_v38 = vadd.f32 %v8562_v7, %v4688_v22  ;;  %v4939_v30 = vsel %vm3141_vm13, %v4718_v41, %v6044_v13  ;;  %v4994_v7 = vld [vmem:[#allocation4 + $0x10] sm:$0xff] }
 0x8ce   : > { %v4942_v61 = vsel %vm3141_vm13, %v4721_v28, %v6050_v29 }
 0x8cf   : > { %v5503_v21 = vpack.c.bf16 %v4942_v61, %v4941_v45  ;;  %v4940_v51 = vsel %vm3141_vm13, %v4719_v38, %v6045_v60  ;;  %5913 = vmatpush3.bf16.msk.msra.mxu1 %vm8572_vm6, %v5497_v4 }
 0x8d0   : > { %v5500_v8 = vpack.c.bf16 %v4940_v51, %v4939_v30 }
 0x8d2   : > { %5914 = vmatprep.subr.msk.bf16.mxu1 %vm8572_vm6, %v5500_v8 }
 0x8d3   : > { %5915 = vmatpush3.bf16.msk.msra.mxu1 %vm8572_vm6, %v5500_v8 }
 0x8d4   : > { %5916 = vmatprep.subr.msk.bf16.mxu1 %vm8572_vm6, %v5503_v21 }
 0x8d7   : > { %5917 = vmatpush3.bf16.msk.msra.mxu1 %vm8572_vm6, %v5503_v21 }
 0x8da   : > { %5919 = vmatmul.mubr.msk.bf16.vlgmr.msra.gmra.mrb[80].mxu1 %vm8553_vm10, %v6427_v18 }
 0x9ad   : > { %v5920_v31 = vpop.f32.mrb[80].mxu1 }
 0x9ae   : > { %v5047_v49 = vadd.f32 %v5920_v31, %v4994_v7  ;;  %v5030_v23 = vpop.f32.mrb[81].mxu1 }
 0x9af   : > { %v5045_v19 = vadd.f32 %v5030_v23, %v4992_v33  ;;  %v5921_v14 = vpop.f32.mrb[82].mxu1 }
 0x9b0   : > { %5051 = vst [vmem:[#allocation4 + $0x10] sm:$0xff] %v5047_v49  ;;  %v5048_v57 = vadd.f32 %v5921_v14, %v4995_v59  ;;  %v5033_v47 = vpop.f32.mrb[83].mxu1 }
 0x9b1   : > { %5049 = vst [vmem:[#allocation4] sm:$0xff] %v5045_v19  ;;  %v5046_v46 = vadd.f32 %v5033_v47, %v4993_v37 }
 0x9b2   : > { %5052 = vst [vmem:[#allocation4 + $0x18] sm:$0xff] %v5048_v57 }
 0x9b3   : > { %5050 = vst [vmem:[#allocation4 + $0x8] sm:$0xff] %v5046_v46 }
 0x9b4   : > { %6391 = shalt.err (!%p6388_p5)
}
 0x9b5   : > { %s8763_s19 = sld [smem:[#allocation40_spill]] }
 0x9bb   : > { %s6392_s30 = scalar_lea.hbm %s8763_s19, 512 }
 0x9bc   : > { %p6393_p6 = scmp.ne.s32.totalorder %s8763_s19, %s6392_s30  ;;  %p6398_p9 = scmp.lt.u32.totalorder %s6392_s30, %s8763_s19 }
 0x9be   : > { %p6394_p7 = pnand %p6393_p6, %p5989_p12 }
 0x9c0   : > { %p6395_p8 = pneg %p6394_p7 }
 0x9c2   : > { %p6400_p10 = pnand %p6398_p9, %p6395_p8 }
 0x9c4   : > { %6403 = shalt.err (!%p6400_p10)
}
 0x9c5   : > { %s6429_s1 = smov 128  }
 0x9c6   : > { %5986 = dma.vmem_to_hbm [thread:$0]  (%p5989_p12), %s5060_s27, 512, %s8763_s19, [#allocation5], %s6429_s1, %s6429_s1, %s6424_s23  }
 0x9c7   : > { %6411 = dma.done.wait (%p5989_p12), [#allocation5], 512  }
 0x9c8   : > { %6413 = vsyncadd (%p5989_p12), [#allocation5], 4294966784 }
 0x9c9 PF: > { %s8764_s8 = sld [smem:[#allocation8_spill]] }
 0x9cf   : > { %s36_s22 = sadd.s32 1, %s8764_s8  }
 0x9d0   : > { %p33_p11 = scmp.ge.s32.totalorder %s36_s22, 5  }
 0x9d2   :  { %35 = sbr.rel (!%p33_p11) target bundleno = 31 (0x1f), region = 174 }
 0x9d9   :  { %5075 = vsyncpa [#allocation5], 1 }
 0x9da   :  { %5077 = vsyncpa [#allocation5 + $0x1], 1 }

</bundles_post_ra>
